<compile_context>
chip_gen: v7x
topology: tpu7x:2x2x1
jax: 0.10.0
libtpu: 0.0.40
codegen_flags: <defaults>
</compile_context>

<pallas_src>
import functools

import jax
import jax.numpy as jnp
from jax.experimental import pallas as pl
from jax.experimental.pallas import tpu as pltpu


# ----------------------------------------------------------------------------
# Fused kernel: hoisted input projections + two reverse masked LSTM
# recurrences + folded BN/Linear/ReLU head.  Single invocation (no grid).
# ----------------------------------------------------------------------------
def _siamese_fused_kernel(lq_ref, lp_ref, xq_ref, xp_ref,
                          wih_q_ref, whh_q_ref, b_q_ref,
                          wih_p_ref, whh_p_ref, b_p_ref,
                          wlin_p_ref, wlin_q_ref, blin_ref,
                          out_ref):
    Bp = lq_ref.shape[0]
    TB, _E = xq_ref.shape
    T = TB // Bp
    Hp4 = wih_q_ref.shape[-1]
    Hp = Hp4 // 4

    def reverse_lstm(x_ref, len_ref, wih_ref, whh_ref, b_ref):
        # Hoisted input projection: one big MXU matmul over all T*Bp rows
        # (no serial dependence), instead of T tiny in-loop matmuls.
        gx = jnp.dot(x_ref[...], wih_ref[...],
                     preferred_element_type=jnp.float32) + b_ref[...]  # (T*Bp, 4Hp) f32

        whh = whh_ref[...]                       # (Hp, 4Hp) matmul dtype
        length = len_ref[...]                    # (Bp, 1) int32
        h = jnp.zeros((Bp, Hp), jnp.float32)
        c = jnp.zeros((Bp, Hp), jnp.float32)

        # Reverse-direction recurrence; only h@W_hh + elementwise on the serial
        # path.  T is a trace-time constant -> fully unrolled; all slices are
        # static and 8-sublane / 128-lane aligned.
        for tt in range(T - 1, -1, -1):
            g = gx[tt * Bp:(tt + 1) * Bp, :] + jnp.dot(
                h.astype(whh.dtype), whh, preferred_element_type=jnp.float32)
            # PyTorch gate order i, f, g, o; each gate block is Hp (=k*128) wide.
            i_g = jax.nn.sigmoid(g[:, 0 * Hp:1 * Hp])
            f_g = jax.nn.sigmoid(g[:, 1 * Hp:2 * Hp])
            g_g = jnp.tanh(g[:, 2 * Hp:3 * Hp])
            o_g = jax.nn.sigmoid(g[:, 3 * Hp:4 * Hp])
            c_new = f_g * c + i_g * g_g
            h_new = o_g * jnp.tanh(c_new)
            # packed-sequence semantics: sample b only processed while tt < len_b
            keep = length > tt
            h = jnp.where(keep, h_new, h)
            c = jnp.where(keep, c_new, c)
        return h

    h_q = reverse_lstm(xq_ref, lq_ref, wih_q_ref, whh_q_ref, b_q_ref)
    h_p = reverse_lstm(xp_ref, lp_ref, wih_p_ref, whh_p_ref, b_p_ref)

    # Head: eval-mode BatchNorm folded into the Linear; the concat of
    # (h_p, h_q) is replaced by two matmuls with split folded weights.
    y = (jnp.dot(h_p, wlin_p_ref[...], preferred_element_type=jnp.float32)
         + jnp.dot(h_q, wlin_q_ref[...], preferred_element_type=jnp.float32)
         + blin_ref[...])
    out_ref[...] = jnp.maximum(y, 0.0)


# ----------------------------------------------------------------------------
# Weight preparation (wrapper-side, traced once under jit)
# ----------------------------------------------------------------------------
def _round_up(n, m):
    return ((n + m - 1) // m) * m


def _pad_lstm_weights(w_ih, w_hh, b_ih, b_hh, hp, matmul_dtype):
    """PyTorch (4H,E)/(4H,H)/(4H,) params -> transposed, lane-aligned blocks.

    Gate g occupies columns [g*hp, g*hp + H); padded hidden units have zero
    weights and zero bias, so they stay exactly 0 through the recurrence.
    """
    E = w_ih.shape[1]
    H = w_hh.shape[1]
    wih_src = jnp.asarray(w_ih, jnp.float32).T                    # (E, 4H)
    whh_src = jnp.asarray(w_hh, jnp.float32).T                    # (H, 4H)
    b_src = jnp.asarray(b_ih, jnp.float32) + jnp.asarray(b_hh, jnp.float32)

    wih_t = jnp.zeros((E, 4 * hp), jnp.float32)
    whh_t = jnp.zeros((hp, 4 * hp), jnp.float32)
    bias = jnp.zeros((1, 4 * hp), jnp.float32)
    for g in range(4):
        wih_t = wih_t.at[:, g * hp:g * hp + H].set(wih_src[:, g * H:(g + 1) * H])
        whh_t = whh_t.at[:H, g * hp:g * hp + H].set(whh_src[:, g * H:(g + 1) * H])
        bias = bias.at[0, g * hp:g * hp + H].set(b_src[g * H:(g + 1) * H])
    return wih_t.astype(matmul_dtype), whh_t.astype(matmul_dtype), bias


def _fold_bn_linear(gamma, beta, run_mean, run_var, w_lin, b_lin, H, hp, npad,
                    eps=1e-5):
    """Fold eval-mode BatchNorm1d into the Linear (exact, done in f32).

    feat = cat(h_p, h_q): rows [0:H] of the folded weight act on h_p, rows
    [H:2H] on h_q, so the concat is replaced by two in-kernel matmuls.
    Padded rows/columns are zero; the output is lane-padded to `npad`.
    """
    gamma = jnp.asarray(gamma, jnp.float32)
    beta = jnp.asarray(beta, jnp.float32)
    run_mean = jnp.asarray(run_mean, jnp.float32)
    run_var = jnp.asarray(run_var, jnp.float32)
    w_lin = jnp.asarray(w_lin, jnp.float32)                       # (Nout, 2H)
    b_lin = jnp.asarray(b_lin, jnp.float32)                       # (Nout,)

    scale = gamma * jax.lax.rsqrt(run_var + eps)                  # (2H,)
    shift = beta - run_mean * scale
    w_fold = (w_lin * scale[None, :]).T                           # (2H, Nout)
    b_fold = b_lin + shift @ w_lin.T                              # (Nout,)
    nout = w_fold.shape[1]

    wlin_p = jnp.zeros((hp, npad), jnp.float32).at[:H, :nout].set(w_fold[:H])
    wlin_q = jnp.zeros((hp, npad), jnp.float32).at[:H, :nout].set(w_fold[H:])
    blin = jnp.zeros((1, npad), jnp.float32).at[0, :nout].set(b_fold)
    return wlin_p, wlin_q, blin


# ----------------------------------------------------------------------------
# Full forward (matches Siamese_LSTM_variable_input.forward in eval mode)
# ----------------------------------------------------------------------------
@functools.partial(jax.jit, static_argnames=("matmul_dtype",))
def siamese_forward(q_ids, p_ids, sq, sp, glove, q_lstm_rev, p_lstm_rev,
                    gamma, beta, run_mean, run_var, w_lin, b_lin,
                    matmul_dtype=jnp.bfloat16):
    B, T = q_ids.shape
    E = glove.shape[1]
    H = q_lstm_rev[1].shape[1]
    nout = w_lin.shape[0]
    Bp = _round_up(max(B, 8), 8)      # f32 sublane multiple
    Hp = _round_up(H, 128)            # lane-aligned gate blocks
    Np = _round_up(nout, 128)         # lane-dense output store

    # Embedding lookup is JAX glue (padding_idx=0 row is zero in the table).
    # TODO(synk): training-mode dropout on p not implemented (inference = identity).
    def prep(ids, lens):
        emb = jnp.take(glove, ids, axis=0)                        # (B, T, E)
        emb = jnp.pad(emb, ((0, Bp - B), (0, 0), (0, 0)))
        # Time-major flatten: rows of the single hoisted input-projection
        # matmul; per-timestep slices inside the kernel become contiguous,
        # tile-aligned 2-D row ranges.  Under jit this fuses with the gather.
        x = emb.transpose(1, 0, 2).reshape(T * Bp, E).astype(matmul_dtype)
        l = jnp.pad(lens.astype(jnp.int32), (0, Bp - B)).reshape(Bp, 1)
        return x, l

    xq, lq = prep(q_ids, sq)
    xp, lp = prep(p_ids, sp)

    wih_q, whh_q, b_q = _pad_lstm_weights(*q_lstm_rev, Hp, matmul_dtype)
    wih_p, whh_p, b_p = _pad_lstm_weights(*p_lstm_rev, Hp, matmul_dtype)
    wlin_p, wlin_q, blin = _fold_bn_linear(gamma, beta, run_mean, run_var,
                                           w_lin, b_lin, H, Hp, Np)

    vmem = pl.BlockSpec(memory_space=pltpu.MemorySpace.VMEM)
    out = pl.pallas_call(
        _siamese_fused_kernel,
        out_shape=jax.ShapeDtypeStruct((Bp, Np), jnp.float32),
        in_specs=[vmem] * 13,
        out_specs=vmem,
    )(lq, lp, xq, xp, wih_q, whh_q, b_q, wih_p, whh_p, b_p,
      wlin_p, wlin_q, blin)
    return out[:B, :nout]


# ----------------------------------------------------------------------------
# Pure-JAX f32 reference (module semantics) for a sanity check
# ----------------------------------------------------------------------------
def _ref_reverse_lstm(x_bte, lengths, w_ih, w_hh, b_ih, b_hh):
    B, T, _E = x_bte.shape
    H = w_hh.shape[1]
    h = jnp.zeros((B, H), jnp.float32)
    c = jnp.zeros((B, H), jnp.float32)
    for tt in range(T - 1, -1, -1):
        g = x_bte[:, tt, :] @ w_ih.T + h @ w_hh.T + b_ih + b_hh
        i = jax.nn.sigmoid(g[:, :H]); f = jax.nn.sigmoid(g[:, H:2 * H])
        gg = jnp.tanh(g[:, 2 * H:3 * H]); o = jax.nn.sigmoid(g[:, 3 * H:])
        c_new = f * c + i * gg
        h_new = o * jnp.tanh(c_new)
        m = (lengths > tt)[:, None]
        h = jnp.where(m, h_new, h)
        c = jnp.where(m, c_new, c)
    return h


def _ref_forward(q_ids, p_ids, sq, sp, glove, q_lstm_rev, p_lstm_rev,
                 gamma, beta, run_mean, run_var, w_lin, b_lin):
    q_emb = jnp.take(glove, q_ids, axis=0)
    p_emb = jnp.take(glove, p_ids, axis=0)
    ht_q = _ref_reverse_lstm(q_emb, sq, *q_lstm_rev)
    ht_p = _ref_reverse_lstm(p_emb, sp, *p_lstm_rev)
    x = jnp.concatenate([ht_p, ht_q], axis=1)
    xn = (x - run_mean) * jax.lax.rsqrt(run_var + 1e-5) * gamma + beta
    return jnp.maximum(xn @ w_lin.T + b_lin, 0.0)


if __name__ == "__main__":
    B, T, E, H, V = 4, 8, 32, 32, 50
    key = jax.random.PRNGKey(0)
    ks = jax.random.split(key, 12)

    # deterministic synthetic "glove" embedding table, padding row zeroed
    glove = (jax.random.normal(ks[0], (V, E), jnp.float32) * 0.1).at[0].set(0.0)

    # reverse-direction LSTM params (weight_ih_l0_reverse etc.) for lstm / lstm2
    def lstm_rev_params(k):
        k1, k2, k3, k4 = jax.random.split(k, 4)
        s = 1.0 / jnp.sqrt(H).astype(jnp.float32)
        return (jax.random.uniform(k1, (4 * H, E), jnp.float32, -s, s),
                jax.random.uniform(k2, (4 * H, H), jnp.float32, -s, s),
                jax.random.uniform(k3, (4 * H,), jnp.float32, -s, s),
                jax.random.uniform(k4, (4 * H,), jnp.float32, -s, s))

    q_lstm_rev = lstm_rev_params(ks[1])
    p_lstm_rev = lstm_rev_params(ks[2])

    # BatchNorm1d(2H) eval-mode params + Linear(2H, 2)
    gamma = jax.random.uniform(ks[3], (2 * H,), jnp.float32, 0.5, 1.5)
    beta = jax.random.normal(ks[4], (2 * H,), jnp.float32) * 0.1
    run_mean = jax.random.normal(ks[5], (2 * H,), jnp.float32) * 0.1
    run_var = jax.random.uniform(ks[6], (2 * H,), jnp.float32, 0.5, 1.5)
    w_lin = jax.random.normal(ks[7], (2, 2 * H), jnp.float32) * 0.1
    b_lin = jax.random.normal(ks[8], (2,), jnp.float32) * 0.1

    # padded token-id batches and their valid lengths
    sq = jnp.array([8, 5, 3, 7], jnp.int32)
    sp = jnp.array([6, 8, 2, 4], jnp.int32)
    q_ids = jax.random.randint(ks[9], (B, T), 1, V, jnp.int32)
    p_ids = jax.random.randint(ks[10], (B, T), 1, V, jnp.int32)
    pos = jnp.arange(T)[None, :]
    q_ids = jnp.where(pos < sq[:, None], q_ids, 0)
    p_ids = jnp.where(pos < sp[:, None], p_ids, 0)

    out = siamese_forward(q_ids, p_ids, sq, sp, glove,
                          q_lstm_rev, p_lstm_rev,
                          gamma, beta, run_mean, run_var, w_lin, b_lin)
    out = jax.block_until_ready(out)

    ref = _ref_forward(q_ids, p_ids, sq, sp, glove, q_lstm_rev, p_lstm_rev,
                       gamma, beta, run_mean, run_var, w_lin, b_lin)
    assert out.shape == (B, 2) and out.dtype == jnp.float32
    # bf16 MXU operands (f32 accumulate / f32 state) vs full-f32 reference.
    assert bool(jnp.allclose(out, ref, atol=3e-2, rtol=3e-2)), (out, ref)

    print("KERNEL_OK")
</pallas_src>

<mosaic_0001>
module attributes {stable_mosaic.version = 11 : i64} {
  func.func @_siamese_fused_kernel(%arg0: memref<8x1xi32, #tpu.memory_space<vmem>>, %arg1: memref<8x1xi32, #tpu.memory_space<vmem>>, %arg2: memref<64x32xbf16, #tpu.memory_space<vmem>>, %arg3: memref<64x32xbf16, #tpu.memory_space<vmem>>, %arg4: memref<32x512xbf16, #tpu.memory_space<vmem>>, %arg5: memref<128x512xbf16, #tpu.memory_space<vmem>>, %arg6: memref<1x512xf32, #tpu.memory_space<vmem>>, %arg7: memref<32x512xbf16, #tpu.memory_space<vmem>>, %arg8: memref<128x512xbf16, #tpu.memory_space<vmem>>, %arg9: memref<1x512xf32, #tpu.memory_space<vmem>>, %arg10: memref<128x128xf32, #tpu.memory_space<vmem>>, %arg11: memref<128x128xf32, #tpu.memory_space<vmem>>, %arg12: memref<1x128xf32, #tpu.memory_space<vmem>>, %arg13: memref<8x128xf32, #tpu.memory_space<vmem>>) attributes {dimension_semantics = [], scalar_prefetch = 0 : i64, scratch_operands = 0 : i64, tpu.core_type = #tpu.core_type<tc>} {
    %c0 = arith.constant 0 : index
    %c0_0 = arith.constant 0 : index
    %0 = vector.load %arg2[%c0, %c0_0] : memref<64x32xbf16, #tpu.memory_space<vmem>>, vector<64x32xbf16>
    %c0_1 = arith.constant 0 : index
    %c0_2 = arith.constant 0 : index
    %1 = vector.load %arg4[%c0_1, %c0_2] : memref<32x512xbf16, #tpu.memory_space<vmem>>, vector<32x512xbf16>
    %cst = arith.constant dense<0.000000e+00> : vector<64x512xf32>
    %2 = tpu.matmul %0, %1, %cst {dimension_numbers = #tpu.dot_dimension_numbers<[1], [0], [0], [1], [0, 0, 1, 1], [], []>} : vector<64x32xbf16>, vector<32x512xbf16>, vector<64x512xf32> -> vector<64x512xf32>
    %c0_3 = arith.constant 0 : index
    %c0_4 = arith.constant 0 : index
    %3 = vector.load %arg6[%c0_3, %c0_4] : memref<1x512xf32, #tpu.memory_space<vmem>>, vector<1x512xf32>
    %4 = vector.broadcast %3 : vector<1x512xf32> to vector<64x512xf32>
    %5 = arith.addf %2, %4 : vector<64x512xf32>
    %c0_5 = arith.constant 0 : index
    %c0_6 = arith.constant 0 : index
    %6 = vector.load %arg5[%c0_5, %c0_6] : memref<128x512xbf16, #tpu.memory_space<vmem>>, vector<128x512xbf16>
    %c0_7 = arith.constant 0 : index
    %c0_8 = arith.constant 0 : index
    %7 = vector.load %arg0[%c0_7, %c0_8] : memref<8x1xi32, #tpu.memory_space<vmem>>, vector<8x1xi32>
    %cst_9 = arith.constant 0.000000e+00 : f32
    %8 = vector.broadcast %cst_9 : f32 to vector<8x128xf32>
    %cst_10 = arith.constant 0.000000e+00 : f32
    %9 = vector.broadcast %cst_10 : f32 to vector<8x128xf32>
    %10 = vector.extract_strided_slice %5 {offsets = [56, 0], sizes = [8, 512], strides = [1, 1]} : vector<64x512xf32> to vector<8x512xf32>
    %11 = arith.truncf %8 : vector<8x128xf32> to vector<8x128xbf16>
    %cst_11 = arith.constant dense<0.000000e+00> : vector<8x512xf32>
    %12 = tpu.matmul %11, %6, %cst_11 {dimension_numbers = #tpu.dot_dimension_numbers<[1], [0], [0], [1], [0, 0, 1, 1], [], []>} : vector<8x128xbf16>, vector<128x512xbf16>, vector<8x512xf32> -> vector<8x512xf32>
    %13 = arith.addf %10, %12 : vector<8x512xf32>
    %14 = vector.extract_strided_slice %13 {offsets = [0, 0], sizes = [8, 128], strides = [1, 1]} : vector<8x512xf32> to vector<8x128xf32>
    %15 = arith.negf %14 : vector<8x128xf32>
    %16 = math.exp %15 : vector<8x128xf32>
    %cst_12 = arith.constant 1.000000e+00 : f32
    %17 = vector.broadcast %cst_12 : f32 to vector<8x128xf32>
    %18 = arith.addf %17, %16 : vector<8x128xf32>
    %19 = arith.divf %17, %18 : vector<8x128xf32>
    %20 = vector.extract_strided_slice %13 {offsets = [0, 128], sizes = [8, 128], strides = [1, 1]} : vector<8x512xf32> to vector<8x128xf32>
    %21 = arith.negf %20 : vector<8x128xf32>
    %22 = math.exp %21 : vector<8x128xf32>
    %cst_13 = arith.constant 1.000000e+00 : f32
    %23 = vector.broadcast %cst_13 : f32 to vector<8x128xf32>
    %24 = arith.addf %23, %22 : vector<8x128xf32>
    %25 = arith.divf %23, %24 : vector<8x128xf32>
    %26 = vector.extract_strided_slice %13 {offsets = [0, 256], sizes = [8, 128], strides = [1, 1]} : vector<8x512xf32> to vector<8x128xf32>
    %27 = math.tanh %26 : vector<8x128xf32>
    %28 = vector.extract_strided_slice %13 {offsets = [0, 384], sizes = [8, 128], strides = [1, 1]} : vector<8x512xf32> to vector<8x128xf32>
    %29 = arith.negf %28 : vector<8x128xf32>
    %30 = math.exp %29 : vector<8x128xf32>
    %cst_14 = arith.constant 1.000000e+00 : f32
    %31 = vector.broadcast %cst_14 : f32 to vector<8x128xf32>
    %32 = arith.addf %31, %30 : vector<8x128xf32>
    %33 = arith.divf %31, %32 : vector<8x128xf32>
    %34 = arith.mulf %25, %9 : vector<8x128xf32>
    %35 = arith.mulf %19, %27 : vector<8x128xf32>
    %36 = arith.addf %34, %35 : vector<8x128xf32>
    %37 = math.tanh %36 : vector<8x128xf32>
    %38 = arith.mulf %33, %37 : vector<8x128xf32>
    %c7_i32 = arith.constant 7 : i32
    %39 = vector.broadcast %c7_i32 : i32 to vector<8x1xi32>
    %40 = arith.cmpi sgt, %7, %39 : vector<8x1xi32>
    %41 = vector.shape_cast %40 : vector<8x1xi1> to vector<8x1xi1>
    %42 = vector.broadcast %41 : vector<8x1xi1> to vector<8x128xi1>
    %43 = arith.select %42, %38, %8 : vector<8x128xi1>, vector<8x128xf32>
    %44 = vector.shape_cast %40 : vector<8x1xi1> to vector<8x1xi1>
    %45 = vector.broadcast %44 : vector<8x1xi1> to vector<8x128xi1>
    %46 = arith.select %45, %36, %9 : vector<8x128xi1>, vector<8x128xf32>
    %47 = vector.extract_strided_slice %5 {offsets = [48, 0], sizes = [8, 512], strides = [1, 1]} : vector<64x512xf32> to vector<8x512xf32>
    %48 = arith.truncf %43 : vector<8x128xf32> to vector<8x128xbf16>
    %cst_15 = arith.constant dense<0.000000e+00> : vector<8x512xf32>
    %49 = tpu.matmul %48, %6, %cst_15 {dimension_numbers = #tpu.dot_dimension_numbers<[1], [0], [0], [1], [0, 0, 1, 1], [], []>} : vector<8x128xbf16>, vector<128x512xbf16>, vector<8x512xf32> -> vector<8x512xf32>
    %50 = arith.addf %47, %49 : vector<8x512xf32>
    %51 = vector.extract_strided_slice %50 {offsets = [0, 0], sizes = [8, 128], strides = [1, 1]} : vector<8x512xf32> to vector<8x128xf32>
    %52 = arith.negf %51 : vector<8x128xf32>
    %53 = math.exp %52 : vector<8x128xf32>
    %cst_16 = arith.constant 1.000000e+00 : f32
    %54 = vector.broadcast %cst_16 : f32 to vector<8x128xf32>
    %55 = arith.addf %54, %53 : vector<8x128xf32>
    %56 = arith.divf %54, %55 : vector<8x128xf32>
    %57 = vector.extract_strided_slice %50 {offsets = [0, 128], sizes = [8, 128], strides = [1, 1]} : vector<8x512xf32> to vector<8x128xf32>
    %58 = arith.negf %57 : vector<8x128xf32>
    %59 = math.exp %58 : vector<8x128xf32>
    %cst_17 = arith.constant 1.000000e+00 : f32
    %60 = vector.broadcast %cst_17 : f32 to vector<8x128xf32>
    %61 = arith.addf %60, %59 : vector<8x128xf32>
    %62 = arith.divf %60, %61 : vector<8x128xf32>
    %63 = vector.extract_strided_slice %50 {offsets = [0, 256], sizes = [8, 128], strides = [1, 1]} : vector<8x512xf32> to vector<8x128xf32>
    %64 = math.tanh %63 : vector<8x128xf32>
    %65 = vector.extract_strided_slice %50 {offsets = [0, 384], sizes = [8, 128], strides = [1, 1]} : vector<8x512xf32> to vector<8x128xf32>
    %66 = arith.negf %65 : vector<8x128xf32>
    %67 = math.exp %66 : vector<8x128xf32>
    %cst_18 = arith.constant 1.000000e+00 : f32
    %68 = vector.broadcast %cst_18 : f32 to vector<8x128xf32>
    %69 = arith.addf %68, %67 : vector<8x128xf32>
    %70 = arith.divf %68, %69 : vector<8x128xf32>
    %71 = arith.mulf %62, %46 : vector<8x128xf32>
    %72 = arith.mulf %56, %64 : vector<8x128xf32>
    %73 = arith.addf %71, %72 : vector<8x128xf32>
    %74 = math.tanh %73 : vector<8x128xf32>
    %75 = arith.mulf %70, %74 : vector<8x128xf32>
    %c6_i32 = arith.constant 6 : i32
    %76 = vector.broadcast %c6_i32 : i32 to vector<8x1xi32>
    %77 = arith.cmpi sgt, %7, %76 : vector<8x1xi32>
    %78 = vector.shape_cast %77 : vector<8x1xi1> to vector<8x1xi1>
    %79 = vector.broadcast %78 : vector<8x1xi1> to vector<8x128xi1>
    %80 = arith.select %79, %75, %43 : vector<8x128xi1>, vector<8x128xf32>
    %81 = vector.shape_cast %77 : vector<8x1xi1> to vector<8x1xi1>
    %82 = vector.broadcast %81 : vector<8x1xi1> to vector<8x128xi1>
    %83 = arith.select %82, %73, %46 : vector<8x128xi1>, vector<8x128xf32>
    %84 = vector.extract_strided_slice %5 {offsets = [40, 0], sizes = [8, 512], strides = [1, 1]} : vector<64x512xf32> to vector<8x512xf32>
    %85 = arith.truncf %80 : vector<8x128xf32> to vector<8x128xbf16>
    %cst_19 = arith.constant dense<0.000000e+00> : vector<8x512xf32>
    %86 = tpu.matmul %85, %6, %cst_19 {dimension_numbers = #tpu.dot_dimension_numbers<[1], [0], [0], [1], [0, 0, 1, 1], [], []>} : vector<8x128xbf16>, vector<128x512xbf16>, vector<8x512xf32> -> vector<8x512xf32>
    %87 = arith.addf %84, %86 : vector<8x512xf32>
    %88 = vector.extract_strided_slice %87 {offsets = [0, 0], sizes = [8, 128], strides = [1, 1]} : vector<8x512xf32> to vector<8x128xf32>
    %89 = arith.negf %88 : vector<8x128xf32>
    %90 = math.exp %89 : vector<8x128xf32>
    %cst_20 = arith.constant 1.000000e+00 : f32
    %91 = vector.broadcast %cst_20 : f32 to vector<8x128xf32>
    %92 = arith.addf %91, %90 : vector<8x128xf32>
    %93 = arith.divf %91, %92 : vector<8x128xf32>
    %94 = vector.extract_strided_slice %87 {offsets = [0, 128], sizes = [8, 128], strides = [1, 1]} : vector<8x512xf32> to vector<8x128xf32>
    %95 = arith.negf %94 : vector<8x128xf32>
    %96 = math.exp %95 : vector<8x128xf32>
    %cst_21 = arith.constant 1.000000e+00 : f32
    %97 = vector.broadcast %cst_21 : f32 to vector<8x128xf32>
    %98 = arith.addf %97, %96 : vector<8x128xf32>
    %99 = arith.divf %97, %98 : vector<8x128xf32>
    %100 = vector.extract_strided_slice %87 {offsets = [0, 256], sizes = [8, 128], strides = [1, 1]} : vector<8x512xf32> to vector<8x128xf32>
    %101 = math.tanh %100 : vector<8x128xf32>
    %102 = vector.extract_strided_slice %87 {offsets = [0, 384], sizes = [8, 128], strides = [1, 1]} : vector<8x512xf32> to vector<8x128xf32>
    %103 = arith.negf %102 : vector<8x128xf32>
    %104 = math.exp %103 : vector<8x128xf32>
    %cst_22 = arith.constant 1.000000e+00 : f32
    %105 = vector.broadcast %cst_22 : f32 to vector<8x128xf32>
    %106 = arith.addf %105, %104 : vector<8x128xf32>
    %107 = arith.divf %105, %106 : vector<8x128xf32>
    %108 = arith.mulf %99, %83 : vector<8x128xf32>
    %109 = arith.mulf %93, %101 : vector<8x128xf32>
    %110 = arith.addf %108, %109 : vector<8x128xf32>
    %111 = math.tanh %110 : vector<8x128xf32>
    %112 = arith.mulf %107, %111 : vector<8x128xf32>
    %c5_i32 = arith.constant 5 : i32
    %113 = vector.broadcast %c5_i32 : i32 to vector<8x1xi32>
    %114 = arith.cmpi sgt, %7, %113 : vector<8x1xi32>
    %115 = vector.shape_cast %114 : vector<8x1xi1> to vector<8x1xi1>
    %116 = vector.broadcast %115 : vector<8x1xi1> to vector<8x128xi1>
    %117 = arith.select %116, %112, %80 : vector<8x128xi1>, vector<8x128xf32>
    %118 = vector.shape_cast %114 : vector<8x1xi1> to vector<8x1xi1>
    %119 = vector.broadcast %118 : vector<8x1xi1> to vector<8x128xi1>
    %120 = arith.select %119, %110, %83 : vector<8x128xi1>, vector<8x128xf32>
    %121 = vector.extract_strided_slice %5 {offsets = [32, 0], sizes = [8, 512], strides = [1, 1]} : vector<64x512xf32> to vector<8x512xf32>
    %122 = arith.truncf %117 : vector<8x128xf32> to vector<8x128xbf16>
    %cst_23 = arith.constant dense<0.000000e+00> : vector<8x512xf32>
    %123 = tpu.matmul %122, %6, %cst_23 {dimension_numbers = #tpu.dot_dimension_numbers<[1], [0], [0], [1], [0, 0, 1, 1], [], []>} : vector<8x128xbf16>, vector<128x512xbf16>, vector<8x512xf32> -> vector<8x512xf32>
    %124 = arith.addf %121, %123 : vector<8x512xf32>
    %125 = vector.extract_strided_slice %124 {offsets = [0, 0], sizes = [8, 128], strides = [1, 1]} : vector<8x512xf32> to vector<8x128xf32>
    %126 = arith.negf %125 : vector<8x128xf32>
    %127 = math.exp %126 : vector<8x128xf32>
    %cst_24 = arith.constant 1.000000e+00 : f32
    %128 = vector.broadcast %cst_24 : f32 to vector<8x128xf32>
    %129 = arith.addf %128, %127 : vector<8x128xf32>
    %130 = arith.divf %128, %129 : vector<8x128xf32>
    %131 = vector.extract_strided_slice %124 {offsets = [0, 128], sizes = [8, 128], strides = [1, 1]} : vector<8x512xf32> to vector<8x128xf32>
    %132 = arith.negf %131 : vector<8x128xf32>
    %133 = math.exp %132 : vector<8x128xf32>
    %cst_25 = arith.constant 1.000000e+00 : f32
    %134 = vector.broadcast %cst_25 : f32 to vector<8x128xf32>
    %135 = arith.addf %134, %133 : vector<8x128xf32>
    %136 = arith.divf %134, %135 : vector<8x128xf32>
    %137 = vector.extract_strided_slice %124 {offsets = [0, 256], sizes = [8, 128], strides = [1, 1]} : vector<8x512xf32> to vector<8x128xf32>
    %138 = math.tanh %137 : vector<8x128xf32>
    %139 = vector.extract_strided_slice %124 {offsets = [0, 384], sizes = [8, 128], strides = [1, 1]} : vector<8x512xf32> to vector<8x128xf32>
    %140 = arith.negf %139 : vector<8x128xf32>
    %141 = math.exp %140 : vector<8x128xf32>
    %cst_26 = arith.constant 1.000000e+00 : f32
    %142 = vector.broadcast %cst_26 : f32 to vector<8x128xf32>
    %143 = arith.addf %142, %141 : vector<8x128xf32>
    %144 = arith.divf %142, %143 : vector<8x128xf32>
    %145 = arith.mulf %136, %120 : vector<8x128xf32>
    %146 = arith.mulf %130, %138 : vector<8x128xf32>
    %147 = arith.addf %145, %146 : vector<8x128xf32>
    %148 = math.tanh %147 : vector<8x128xf32>
    %149 = arith.mulf %144, %148 : vector<8x128xf32>
    %c4_i32 = arith.constant 4 : i32
    %150 = vector.broadcast %c4_i32 : i32 to vector<8x1xi32>
    %151 = arith.cmpi sgt, %7, %150 : vector<8x1xi32>
    %152 = vector.shape_cast %151 : vector<8x1xi1> to vector<8x1xi1>
    %153 = vector.broadcast %152 : vector<8x1xi1> to vector<8x128xi1>
    %154 = arith.select %153, %149, %117 : vector<8x128xi1>, vector<8x128xf32>
    %155 = vector.shape_cast %151 : vector<8x1xi1> to vector<8x1xi1>
    %156 = vector.broadcast %155 : vector<8x1xi1> to vector<8x128xi1>
    %157 = arith.select %156, %147, %120 : vector<8x128xi1>, vector<8x128xf32>
    %158 = vector.extract_strided_slice %5 {offsets = [24, 0], sizes = [8, 512], strides = [1, 1]} : vector<64x512xf32> to vector<8x512xf32>
    %159 = arith.truncf %154 : vector<8x128xf32> to vector<8x128xbf16>
    %cst_27 = arith.constant dense<0.000000e+00> : vector<8x512xf32>
    %160 = tpu.matmul %159, %6, %cst_27 {dimension_numbers = #tpu.dot_dimension_numbers<[1], [0], [0], [1], [0, 0, 1, 1], [], []>} : vector<8x128xbf16>, vector<128x512xbf16>, vector<8x512xf32> -> vector<8x512xf32>
    %161 = arith.addf %158, %160 : vector<8x512xf32>
    %162 = vector.extract_strided_slice %161 {offsets = [0, 0], sizes = [8, 128], strides = [1, 1]} : vector<8x512xf32> to vector<8x128xf32>
    %163 = arith.negf %162 : vector<8x128xf32>
    %164 = math.exp %163 : vector<8x128xf32>
    %cst_28 = arith.constant 1.000000e+00 : f32
    %165 = vector.broadcast %cst_28 : f32 to vector<8x128xf32>
    %166 = arith.addf %165, %164 : vector<8x128xf32>
    %167 = arith.divf %165, %166 : vector<8x128xf32>
    %168 = vector.extract_strided_slice %161 {offsets = [0, 128], sizes = [8, 128], strides = [1, 1]} : vector<8x512xf32> to vector<8x128xf32>
    %169 = arith.negf %168 : vector<8x128xf32>
    %170 = math.exp %169 : vector<8x128xf32>
    %cst_29 = arith.constant 1.000000e+00 : f32
    %171 = vector.broadcast %cst_29 : f32 to vector<8x128xf32>
    %172 = arith.addf %171, %170 : vector<8x128xf32>
    %173 = arith.divf %171, %172 : vector<8x128xf32>
    %174 = vector.extract_strided_slice %161 {offsets = [0, 256], sizes = [8, 128], strides = [1, 1]} : vector<8x512xf32> to vector<8x128xf32>
    %175 = math.tanh %174 : vector<8x128xf32>
    %176 = vector.extract_strided_slice %161 {offsets = [0, 384], sizes = [8, 128], strides = [1, 1]} : vector<8x512xf32> to vector<8x128xf32>
    %177 = arith.negf %176 : vector<8x128xf32>
    %178 = math.exp %177 : vector<8x128xf32>
    %cst_30 = arith.constant 1.000000e+00 : f32
    %179 = vector.broadcast %cst_30 : f32 to vector<8x128xf32>
    %180 = arith.addf %179, %178 : vector<8x128xf32>
    %181 = arith.divf %179, %180 : vector<8x128xf32>
    %182 = arith.mulf %173, %157 : vector<8x128xf32>
    %183 = arith.mulf %167, %175 : vector<8x128xf32>
    %184 = arith.addf %182, %183 : vector<8x128xf32>
    %185 = math.tanh %184 : vector<8x128xf32>
    %186 = arith.mulf %181, %185 : vector<8x128xf32>
    %c3_i32 = arith.constant 3 : i32
    %187 = vector.broadcast %c3_i32 : i32 to vector<8x1xi32>
    %188 = arith.cmpi sgt, %7, %187 : vector<8x1xi32>
    %189 = vector.shape_cast %188 : vector<8x1xi1> to vector<8x1xi1>
    %190 = vector.broadcast %189 : vector<8x1xi1> to vector<8x128xi1>
    %191 = arith.select %190, %186, %154 : vector<8x128xi1>, vector<8x128xf32>
    %192 = vector.shape_cast %188 : vector<8x1xi1> to vector<8x1xi1>
    %193 = vector.broadcast %192 : vector<8x1xi1> to vector<8x128xi1>
    %194 = arith.select %193, %184, %157 : vector<8x128xi1>, vector<8x128xf32>
    %195 = vector.extract_strided_slice %5 {offsets = [16, 0], sizes = [8, 512], strides = [1, 1]} : vector<64x512xf32> to vector<8x512xf32>
    %196 = arith.truncf %191 : vector<8x128xf32> to vector<8x128xbf16>
    %cst_31 = arith.constant dense<0.000000e+00> : vector<8x512xf32>
    %197 = tpu.matmul %196, %6, %cst_31 {dimension_numbers = #tpu.dot_dimension_numbers<[1], [0], [0], [1], [0, 0, 1, 1], [], []>} : vector<8x128xbf16>, vector<128x512xbf16>, vector<8x512xf32> -> vector<8x512xf32>
    %198 = arith.addf %195, %197 : vector<8x512xf32>
    %199 = vector.extract_strided_slice %198 {offsets = [0, 0], sizes = [8, 128], strides = [1, 1]} : vector<8x512xf32> to vector<8x128xf32>
    %200 = arith.negf %199 : vector<8x128xf32>
    %201 = math.exp %200 : vector<8x128xf32>
    %cst_32 = arith.constant 1.000000e+00 : f32
    %202 = vector.broadcast %cst_32 : f32 to vector<8x128xf32>
    %203 = arith.addf %202, %201 : vector<8x128xf32>
    %204 = arith.divf %202, %203 : vector<8x128xf32>
    %205 = vector.extract_strided_slice %198 {offsets = [0, 128], sizes = [8, 128], strides = [1, 1]} : vector<8x512xf32> to vector<8x128xf32>
    %206 = arith.negf %205 : vector<8x128xf32>
    %207 = math.exp %206 : vector<8x128xf32>
    %cst_33 = arith.constant 1.000000e+00 : f32
    %208 = vector.broadcast %cst_33 : f32 to vector<8x128xf32>
    %209 = arith.addf %208, %207 : vector<8x128xf32>
    %210 = arith.divf %208, %209 : vector<8x128xf32>
    %211 = vector.extract_strided_slice %198 {offsets = [0, 256], sizes = [8, 128], strides = [1, 1]} : vector<8x512xf32> to vector<8x128xf32>
    %212 = math.tanh %211 : vector<8x128xf32>
    %213 = vector.extract_strided_slice %198 {offsets = [0, 384], sizes = [8, 128], strides = [1, 1]} : vector<8x512xf32> to vector<8x128xf32>
    %214 = arith.negf %213 : vector<8x128xf32>
    %215 = math.exp %214 : vector<8x128xf32>
    %cst_34 = arith.constant 1.000000e+00 : f32
    %216 = vector.broadcast %cst_34 : f32 to vector<8x128xf32>
    %217 = arith.addf %216, %215 : vector<8x128xf32>
    %218 = arith.divf %216, %217 : vector<8x128xf32>
    %219 = arith.mulf %210, %194 : vector<8x128xf32>
    %220 = arith.mulf %204, %212 : vector<8x128xf32>
    %221 = arith.addf %219, %220 : vector<8x128xf32>
    %222 = math.tanh %221 : vector<8x128xf32>
    %223 = arith.mulf %218, %222 : vector<8x128xf32>
    %c2_i32 = arith.constant 2 : i32
    %224 = vector.broadcast %c2_i32 : i32 to vector<8x1xi32>
    %225 = arith.cmpi sgt, %7, %224 : vector<8x1xi32>
    %226 = vector.shape_cast %225 : vector<8x1xi1> to vector<8x1xi1>
    %227 = vector.broadcast %226 : vector<8x1xi1> to vector<8x128xi1>
    %228 = arith.select %227, %223, %191 : vector<8x128xi1>, vector<8x128xf32>
    %229 = vector.shape_cast %225 : vector<8x1xi1> to vector<8x1xi1>
    %230 = vector.broadcast %229 : vector<8x1xi1> to vector<8x128xi1>
    %231 = arith.select %230, %221, %194 : vector<8x128xi1>, vector<8x128xf32>
    %232 = vector.extract_strided_slice %5 {offsets = [8, 0], sizes = [8, 512], strides = [1, 1]} : vector<64x512xf32> to vector<8x512xf32>
    %233 = arith.truncf %228 : vector<8x128xf32> to vector<8x128xbf16>
    %cst_35 = arith.constant dense<0.000000e+00> : vector<8x512xf32>
    %234 = tpu.matmul %233, %6, %cst_35 {dimension_numbers = #tpu.dot_dimension_numbers<[1], [0], [0], [1], [0, 0, 1, 1], [], []>} : vector<8x128xbf16>, vector<128x512xbf16>, vector<8x512xf32> -> vector<8x512xf32>
    %235 = arith.addf %232, %234 : vector<8x512xf32>
    %236 = vector.extract_strided_slice %235 {offsets = [0, 0], sizes = [8, 128], strides = [1, 1]} : vector<8x512xf32> to vector<8x128xf32>
    %237 = arith.negf %236 : vector<8x128xf32>
    %238 = math.exp %237 : vector<8x128xf32>
    %cst_36 = arith.constant 1.000000e+00 : f32
    %239 = vector.broadcast %cst_36 : f32 to vector<8x128xf32>
    %240 = arith.addf %239, %238 : vector<8x128xf32>
    %241 = arith.divf %239, %240 : vector<8x128xf32>
    %242 = vector.extract_strided_slice %235 {offsets = [0, 128], sizes = [8, 128], strides = [1, 1]} : vector<8x512xf32> to vector<8x128xf32>
    %243 = arith.negf %242 : vector<8x128xf32>
    %244 = math.exp %243 : vector<8x128xf32>
    %cst_37 = arith.constant 1.000000e+00 : f32
    %245 = vector.broadcast %cst_37 : f32 to vector<8x128xf32>
    %246 = arith.addf %245, %244 : vector<8x128xf32>
    %247 = arith.divf %245, %246 : vector<8x128xf32>
    %248 = vector.extract_strided_slice %235 {offsets = [0, 256], sizes = [8, 128], strides = [1, 1]} : vector<8x512xf32> to vector<8x128xf32>
    %249 = math.tanh %248 : vector<8x128xf32>
    %250 = vector.extract_strided_slice %235 {offsets = [0, 384], sizes = [8, 128], strides = [1, 1]} : vector<8x512xf32> to vector<8x128xf32>
    %251 = arith.negf %250 : vector<8x128xf32>
    %252 = math.exp %251 : vector<8x128xf32>
    %cst_38 = arith.constant 1.000000e+00 : f32
    %253 = vector.broadcast %cst_38 : f32 to vector<8x128xf32>
    %254 = arith.addf %253, %252 : vector<8x128xf32>
    %255 = arith.divf %253, %254 : vector<8x128xf32>
    %256 = arith.mulf %247, %231 : vector<8x128xf32>
    %257 = arith.mulf %241, %249 : vector<8x128xf32>
    %258 = arith.addf %256, %257 : vector<8x128xf32>
    %259 = math.tanh %258 : vector<8x128xf32>
    %260 = arith.mulf %255, %259 : vector<8x128xf32>
    %c1_i32 = arith.constant 1 : i32
    %261 = vector.broadcast %c1_i32 : i32 to vector<8x1xi32>
    %262 = arith.cmpi sgt, %7, %261 : vector<8x1xi32>
    %263 = vector.shape_cast %262 : vector<8x1xi1> to vector<8x1xi1>
    %264 = vector.broadcast %263 : vector<8x1xi1> to vector<8x128xi1>
    %265 = arith.select %264, %260, %228 : vector<8x128xi1>, vector<8x128xf32>
    %266 = vector.shape_cast %262 : vector<8x1xi1> to vector<8x1xi1>
    %267 = vector.broadcast %266 : vector<8x1xi1> to vector<8x128xi1>
    %268 = arith.select %267, %258, %231 : vector<8x128xi1>, vector<8x128xf32>
    %269 = vector.extract_strided_slice %5 {offsets = [0, 0], sizes = [8, 512], strides = [1, 1]} : vector<64x512xf32> to vector<8x512xf32>
    %270 = arith.truncf %265 : vector<8x128xf32> to vector<8x128xbf16>
    %cst_39 = arith.constant dense<0.000000e+00> : vector<8x512xf32>
    %271 = tpu.matmul %270, %6, %cst_39 {dimension_numbers = #tpu.dot_dimension_numbers<[1], [0], [0], [1], [0, 0, 1, 1], [], []>} : vector<8x128xbf16>, vector<128x512xbf16>, vector<8x512xf32> -> vector<8x512xf32>
    %272 = arith.addf %269, %271 : vector<8x512xf32>
    %273 = vector.extract_strided_slice %272 {offsets = [0, 0], sizes = [8, 128], strides = [1, 1]} : vector<8x512xf32> to vector<8x128xf32>
    %274 = arith.negf %273 : vector<8x128xf32>
    %275 = math.exp %274 : vector<8x128xf32>
    %cst_40 = arith.constant 1.000000e+00 : f32
    %276 = vector.broadcast %cst_40 : f32 to vector<8x128xf32>
    %277 = arith.addf %276, %275 : vector<8x128xf32>
    %278 = arith.divf %276, %277 : vector<8x128xf32>
    %279 = vector.extract_strided_slice %272 {offsets = [0, 128], sizes = [8, 128], strides = [1, 1]} : vector<8x512xf32> to vector<8x128xf32>
    %280 = arith.negf %279 : vector<8x128xf32>
    %281 = math.exp %280 : vector<8x128xf32>
    %cst_41 = arith.constant 1.000000e+00 : f32
    %282 = vector.broadcast %cst_41 : f32 to vector<8x128xf32>
    %283 = arith.addf %282, %281 : vector<8x128xf32>
    %284 = arith.divf %282, %283 : vector<8x128xf32>
    %285 = vector.extract_strided_slice %272 {offsets = [0, 256], sizes = [8, 128], strides = [1, 1]} : vector<8x512xf32> to vector<8x128xf32>
    %286 = math.tanh %285 : vector<8x128xf32>
    %287 = vector.extract_strided_slice %272 {offsets = [0, 384], sizes = [8, 128], strides = [1, 1]} : vector<8x512xf32> to vector<8x128xf32>
    %288 = arith.negf %287 : vector<8x128xf32>
    %289 = math.exp %288 : vector<8x128xf32>
    %cst_42 = arith.constant 1.000000e+00 : f32
    %290 = vector.broadcast %cst_42 : f32 to vector<8x128xf32>
    %291 = arith.addf %290, %289 : vector<8x128xf32>
    %292 = arith.divf %290, %291 : vector<8x128xf32>
    %293 = arith.mulf %284, %268 : vector<8x128xf32>
    %294 = arith.mulf %278, %286 : vector<8x128xf32>
    %295 = arith.addf %293, %294 : vector<8x128xf32>
    %296 = math.tanh %295 : vector<8x128xf32>
    %297 = arith.mulf %292, %296 : vector<8x128xf32>
    %c0_i32 = arith.constant 0 : i32
    %298 = vector.broadcast %c0_i32 : i32 to vector<8x1xi32>
    %299 = arith.cmpi sgt, %7, %298 : vector<8x1xi32>
    %300 = vector.shape_cast %299 : vector<8x1xi1> to vector<8x1xi1>
    %301 = vector.broadcast %300 : vector<8x1xi1> to vector<8x128xi1>
    %302 = arith.select %301, %297, %265 : vector<8x128xi1>, vector<8x128xf32>
    %c0_43 = arith.constant 0 : index
    %c0_44 = arith.constant 0 : index
    %303 = vector.load %arg3[%c0_43, %c0_44] : memref<64x32xbf16, #tpu.memory_space<vmem>>, vector<64x32xbf16>
    %c0_45 = arith.constant 0 : index
    %c0_46 = arith.constant 0 : index
    %304 = vector.load %arg7[%c0_45, %c0_46] : memref<32x512xbf16, #tpu.memory_space<vmem>>, vector<32x512xbf16>
    %cst_47 = arith.constant dense<0.000000e+00> : vector<64x512xf32>
    %305 = tpu.matmul %303, %304, %cst_47 {dimension_numbers = #tpu.dot_dimension_numbers<[1], [0], [0], [1], [0, 0, 1, 1], [], []>} : vector<64x32xbf16>, vector<32x512xbf16>, vector<64x512xf32> -> vector<64x512xf32>
    %c0_48 = arith.constant 0 : index
    %c0_49 = arith.constant 0 : index
    %306 = vector.load %arg9[%c0_48, %c0_49] : memref<1x512xf32, #tpu.memory_space<vmem>>, vector<1x512xf32>
    %307 = vector.broadcast %306 : vector<1x512xf32> to vector<64x512xf32>
    %308 = arith.addf %305, %307 : vector<64x512xf32>
    %c0_50 = arith.constant 0 : index
    %c0_51 = arith.constant 0 : index
    %309 = vector.load %arg8[%c0_50, %c0_51] : memref<128x512xbf16, #tpu.memory_space<vmem>>, vector<128x512xbf16>
    %c0_52 = arith.constant 0 : index
    %c0_53 = arith.constant 0 : index
    %310 = vector.load %arg1[%c0_52, %c0_53] : memref<8x1xi32, #tpu.memory_space<vmem>>, vector<8x1xi32>
    %cst_54 = arith.constant 0.000000e+00 : f32
    %311 = vector.broadcast %cst_54 : f32 to vector<8x128xf32>
    %cst_55 = arith.constant 0.000000e+00 : f32
    %312 = vector.broadcast %cst_55 : f32 to vector<8x128xf32>
    %313 = vector.extract_strided_slice %308 {offsets = [56, 0], sizes = [8, 512], strides = [1, 1]} : vector<64x512xf32> to vector<8x512xf32>
    %314 = arith.truncf %311 : vector<8x128xf32> to vector<8x128xbf16>
    %cst_56 = arith.constant dense<0.000000e+00> : vector<8x512xf32>
    %315 = tpu.matmul %314, %309, %cst_56 {dimension_numbers = #tpu.dot_dimension_numbers<[1], [0], [0], [1], [0, 0, 1, 1], [], []>} : vector<8x128xbf16>, vector<128x512xbf16>, vector<8x512xf32> -> vector<8x512xf32>
    %316 = arith.addf %313, %315 : vector<8x512xf32>
    %317 = vector.extract_strided_slice %316 {offsets = [0, 0], sizes = [8, 128], strides = [1, 1]} : vector<8x512xf32> to vector<8x128xf32>
    %318 = arith.negf %317 : vector<8x128xf32>
    %319 = math.exp %318 : vector<8x128xf32>
    %cst_57 = arith.constant 1.000000e+00 : f32
    %320 = vector.broadcast %cst_57 : f32 to vector<8x128xf32>
    %321 = arith.addf %320, %319 : vector<8x128xf32>
    %322 = arith.divf %320, %321 : vector<8x128xf32>
    %323 = vector.extract_strided_slice %316 {offsets = [0, 128], sizes = [8, 128], strides = [1, 1]} : vector<8x512xf32> to vector<8x128xf32>
    %324 = arith.negf %323 : vector<8x128xf32>
    %325 = math.exp %324 : vector<8x128xf32>
    %cst_58 = arith.constant 1.000000e+00 : f32
    %326 = vector.broadcast %cst_58 : f32 to vector<8x128xf32>
    %327 = arith.addf %326, %325 : vector<8x128xf32>
    %328 = arith.divf %326, %327 : vector<8x128xf32>
    %329 = vector.extract_strided_slice %316 {offsets = [0, 256], sizes = [8, 128], strides = [1, 1]} : vector<8x512xf32> to vector<8x128xf32>
    %330 = math.tanh %329 : vector<8x128xf32>
    %331 = vector.extract_strided_slice %316 {offsets = [0, 384], sizes = [8, 128], strides = [1, 1]} : vector<8x512xf32> to vector<8x128xf32>
    %332 = arith.negf %331 : vector<8x128xf32>
    %333 = math.exp %332 : vector<8x128xf32>
    %cst_59 = arith.constant 1.000000e+00 : f32
    %334 = vector.broadcast %cst_59 : f32 to vector<8x128xf32>
    %335 = arith.addf %334, %333 : vector<8x128xf32>
    %336 = arith.divf %334, %335 : vector<8x128xf32>
    %337 = arith.mulf %328, %312 : vector<8x128xf32>
    %338 = arith.mulf %322, %330 : vector<8x128xf32>
    %339 = arith.addf %337, %338 : vector<8x128xf32>
    %340 = math.tanh %339 : vector<8x128xf32>
    %341 = arith.mulf %336, %340 : vector<8x128xf32>
    %c7_i32_60 = arith.constant 7 : i32
    %342 = vector.broadcast %c7_i32_60 : i32 to vector<8x1xi32>
    %343 = arith.cmpi sgt, %310, %342 : vector<8x1xi32>
    %344 = vector.shape_cast %343 : vector<8x1xi1> to vector<8x1xi1>
    %345 = vector.broadcast %344 : vector<8x1xi1> to vector<8x128xi1>
    %346 = arith.select %345, %341, %311 : vector<8x128xi1>, vector<8x128xf32>
    %347 = vector.shape_cast %343 : vector<8x1xi1> to vector<8x1xi1>
    %348 = vector.broadcast %347 : vector<8x1xi1> to vector<8x128xi1>
    %349 = arith.select %348, %339, %312 : vector<8x128xi1>, vector<8x128xf32>
    %350 = vector.extract_strided_slice %308 {offsets = [48, 0], sizes = [8, 512], strides = [1, 1]} : vector<64x512xf32> to vector<8x512xf32>
    %351 = arith.truncf %346 : vector<8x128xf32> to vector<8x128xbf16>
    %cst_61 = arith.constant dense<0.000000e+00> : vector<8x512xf32>
    %352 = tpu.matmul %351, %309, %cst_61 {dimension_numbers = #tpu.dot_dimension_numbers<[1], [0], [0], [1], [0, 0, 1, 1], [], []>} : vector<8x128xbf16>, vector<128x512xbf16>, vector<8x512xf32> -> vector<8x512xf32>
    %353 = arith.addf %350, %352 : vector<8x512xf32>
    %354 = vector.extract_strided_slice %353 {offsets = [0, 0], sizes = [8, 128], strides = [1, 1]} : vector<8x512xf32> to vector<8x128xf32>
    %355 = arith.negf %354 : vector<8x128xf32>
    %356 = math.exp %355 : vector<8x128xf32>
    %cst_62 = arith.constant 1.000000e+00 : f32
    %357 = vector.broadcast %cst_62 : f32 to vector<8x128xf32>
    %358 = arith.addf %357, %356 : vector<8x128xf32>
    %359 = arith.divf %357, %358 : vector<8x128xf32>
    %360 = vector.extract_strided_slice %353 {offsets = [0, 128], sizes = [8, 128], strides = [1, 1]} : vector<8x512xf32> to vector<8x128xf32>
    %361 = arith.negf %360 : vector<8x128xf32>
    %362 = math.exp %361 : vector<8x128xf32>
    %cst_63 = arith.constant 1.000000e+00 : f32
    %363 = vector.broadcast %cst_63 : f32 to vector<8x128xf32>
    %364 = arith.addf %363, %362 : vector<8x128xf32>
    %365 = arith.divf %363, %364 : vector<8x128xf32>
    %366 = vector.extract_strided_slice %353 {offsets = [0, 256], sizes = [8, 128], strides = [1, 1]} : vector<8x512xf32> to vector<8x128xf32>
    %367 = math.tanh %366 : vector<8x128xf32>
    %368 = vector.extract_strided_slice %353 {offsets = [0, 384], sizes = [8, 128], strides = [1, 1]} : vector<8x512xf32> to vector<8x128xf32>
    %369 = arith.negf %368 : vector<8x128xf32>
    %370 = math.exp %369 : vector<8x128xf32>
    %cst_64 = arith.constant 1.000000e+00 : f32
    %371 = vector.broadcast %cst_64 : f32 to vector<8x128xf32>
    %372 = arith.addf %371, %370 : vector<8x128xf32>
    %373 = arith.divf %371, %372 : vector<8x128xf32>
    %374 = arith.mulf %365, %349 : vector<8x128xf32>
    %375 = arith.mulf %359, %367 : vector<8x128xf32>
    %376 = arith.addf %374, %375 : vector<8x128xf32>
    %377 = math.tanh %376 : vector<8x128xf32>
    %378 = arith.mulf %373, %377 : vector<8x128xf32>
    %c6_i32_65 = arith.constant 6 : i32
    %379 = vector.broadcast %c6_i32_65 : i32 to vector<8x1xi32>
    %380 = arith.cmpi sgt, %310, %379 : vector<8x1xi32>
    %381 = vector.shape_cast %380 : vector<8x1xi1> to vector<8x1xi1>
    %382 = vector.broadcast %381 : vector<8x1xi1> to vector<8x128xi1>
    %383 = arith.select %382, %378, %346 : vector<8x128xi1>, vector<8x128xf32>
    %384 = vector.shape_cast %380 : vector<8x1xi1> to vector<8x1xi1>
    %385 = vector.broadcast %384 : vector<8x1xi1> to vector<8x128xi1>
    %386 = arith.select %385, %376, %349 : vector<8x128xi1>, vector<8x128xf32>
    %387 = vector.extract_strided_slice %308 {offsets = [40, 0], sizes = [8, 512], strides = [1, 1]} : vector<64x512xf32> to vector<8x512xf32>
    %388 = arith.truncf %383 : vector<8x128xf32> to vector<8x128xbf16>
    %cst_66 = arith.constant dense<0.000000e+00> : vector<8x512xf32>
    %389 = tpu.matmul %388, %309, %cst_66 {dimension_numbers = #tpu.dot_dimension_numbers<[1], [0], [0], [1], [0, 0, 1, 1], [], []>} : vector<8x128xbf16>, vector<128x512xbf16>, vector<8x512xf32> -> vector<8x512xf32>
    %390 = arith.addf %387, %389 : vector<8x512xf32>
    %391 = vector.extract_strided_slice %390 {offsets = [0, 0], sizes = [8, 128], strides = [1, 1]} : vector<8x512xf32> to vector<8x128xf32>
    %392 = arith.negf %391 : vector<8x128xf32>
    %393 = math.exp %392 : vector<8x128xf32>
    %cst_67 = arith.constant 1.000000e+00 : f32
    %394 = vector.broadcast %cst_67 : f32 to vector<8x128xf32>
    %395 = arith.addf %394, %393 : vector<8x128xf32>
    %396 = arith.divf %394, %395 : vector<8x128xf32>
    %397 = vector.extract_strided_slice %390 {offsets = [0, 128], sizes = [8, 128], strides = [1, 1]} : vector<8x512xf32> to vector<8x128xf32>
    %398 = arith.negf %397 : vector<8x128xf32>
    %399 = math.exp %398 : vector<8x128xf32>
    %cst_68 = arith.constant 1.000000e+00 : f32
    %400 = vector.broadcast %cst_68 : f32 to vector<8x128xf32>
    %401 = arith.addf %400, %399 : vector<8x128xf32>
    %402 = arith.divf %400, %401 : vector<8x128xf32>
    %403 = vector.extract_strided_slice %390 {offsets = [0, 256], sizes = [8, 128], strides = [1, 1]} : vector<8x512xf32> to vector<8x128xf32>
    %404 = math.tanh %403 : vector<8x128xf32>
    %405 = vector.extract_strided_slice %390 {offsets = [0, 384], sizes = [8, 128], strides = [1, 1]} : vector<8x512xf32> to vector<8x128xf32>
    %406 = arith.negf %405 : vector<8x128xf32>
    %407 = math.exp %406 : vector<8x128xf32>
    %cst_69 = arith.constant 1.000000e+00 : f32
    %408 = vector.broadcast %cst_69 : f32 to vector<8x128xf32>
    %409 = arith.addf %408, %407 : vector<8x128xf32>
    %410 = arith.divf %408, %409 : vector<8x128xf32>
    %411 = arith.mulf %402, %386 : vector<8x128xf32>
    %412 = arith.mulf %396, %404 : vector<8x128xf32>
    %413 = arith.addf %411, %412 : vector<8x128xf32>
    %414 = math.tanh %413 : vector<8x128xf32>
    %415 = arith.mulf %410, %414 : vector<8x128xf32>
    %c5_i32_70 = arith.constant 5 : i32
    %416 = vector.broadcast %c5_i32_70 : i32 to vector<8x1xi32>
    %417 = arith.cmpi sgt, %310, %416 : vector<8x1xi32>
    %418 = vector.shape_cast %417 : vector<8x1xi1> to vector<8x1xi1>
    %419 = vector.broadcast %418 : vector<8x1xi1> to vector<8x128xi1>
    %420 = arith.select %419, %415, %383 : vector<8x128xi1>, vector<8x128xf32>
    %421 = vector.shape_cast %417 : vector<8x1xi1> to vector<8x1xi1>
    %422 = vector.broadcast %421 : vector<8x1xi1> to vector<8x128xi1>
    %423 = arith.select %422, %413, %386 : vector<8x128xi1>, vector<8x128xf32>
    %424 = vector.extract_strided_slice %308 {offsets = [32, 0], sizes = [8, 512], strides = [1, 1]} : vector<64x512xf32> to vector<8x512xf32>
    %425 = arith.truncf %420 : vector<8x128xf32> to vector<8x128xbf16>
    %cst_71 = arith.constant dense<0.000000e+00> : vector<8x512xf32>
    %426 = tpu.matmul %425, %309, %cst_71 {dimension_numbers = #tpu.dot_dimension_numbers<[1], [0], [0], [1], [0, 0, 1, 1], [], []>} : vector<8x128xbf16>, vector<128x512xbf16>, vector<8x512xf32> -> vector<8x512xf32>
    %427 = arith.addf %424, %426 : vector<8x512xf32>
    %428 = vector.extract_strided_slice %427 {offsets = [0, 0], sizes = [8, 128], strides = [1, 1]} : vector<8x512xf32> to vector<8x128xf32>
    %429 = arith.negf %428 : vector<8x128xf32>
    %430 = math.exp %429 : vector<8x128xf32>
    %cst_72 = arith.constant 1.000000e+00 : f32
    %431 = vector.broadcast %cst_72 : f32 to vector<8x128xf32>
    %432 = arith.addf %431, %430 : vector<8x128xf32>
    %433 = arith.divf %431, %432 : vector<8x128xf32>
    %434 = vector.extract_strided_slice %427 {offsets = [0, 128], sizes = [8, 128], strides = [1, 1]} : vector<8x512xf32> to vector<8x128xf32>
    %435 = arith.negf %434 : vector<8x128xf32>
    %436 = math.exp %435 : vector<8x128xf32>
    %cst_73 = arith.constant 1.000000e+00 : f32
    %437 = vector.broadcast %cst_73 : f32 to vector<8x128xf32>
    %438 = arith.addf %437, %436 : vector<8x128xf32>
    %439 = arith.divf %437, %438 : vector<8x128xf32>
    %440 = vector.extract_strided_slice %427 {offsets = [0, 256], sizes = [8, 128], strides = [1, 1]} : vector<8x512xf32> to vector<8x128xf32>
    %441 = math.tanh %440 : vector<8x128xf32>
    %442 = vector.extract_strided_slice %427 {offsets = [0, 384], sizes = [8, 128], strides = [1, 1]} : vector<8x512xf32> to vector<8x128xf32>
    %443 = arith.negf %442 : vector<8x128xf32>
    %444 = math.exp %443 : vector<8x128xf32>
    %cst_74 = arith.constant 1.000000e+00 : f32
    %445 = vector.broadcast %cst_74 : f32 to vector<8x128xf32>
    %446 = arith.addf %445, %444 : vector<8x128xf32>
    %447 = arith.divf %445, %446 : vector<8x128xf32>
    %448 = arith.mulf %439, %423 : vector<8x128xf32>
    %449 = arith.mulf %433, %441 : vector<8x128xf32>
    %450 = arith.addf %448, %449 : vector<8x128xf32>
    %451 = math.tanh %450 : vector<8x128xf32>
    %452 = arith.mulf %447, %451 : vector<8x128xf32>
    %c4_i32_75 = arith.constant 4 : i32
    %453 = vector.broadcast %c4_i32_75 : i32 to vector<8x1xi32>
    %454 = arith.cmpi sgt, %310, %453 : vector<8x1xi32>
    %455 = vector.shape_cast %454 : vector<8x1xi1> to vector<8x1xi1>
    %456 = vector.broadcast %455 : vector<8x1xi1> to vector<8x128xi1>
    %457 = arith.select %456, %452, %420 : vector<8x128xi1>, vector<8x128xf32>
    %458 = vector.shape_cast %454 : vector<8x1xi1> to vector<8x1xi1>
    %459 = vector.broadcast %458 : vector<8x1xi1> to vector<8x128xi1>
    %460 = arith.select %459, %450, %423 : vector<8x128xi1>, vector<8x128xf32>
    %461 = vector.extract_strided_slice %308 {offsets = [24, 0], sizes = [8, 512], strides = [1, 1]} : vector<64x512xf32> to vector<8x512xf32>
    %462 = arith.truncf %457 : vector<8x128xf32> to vector<8x128xbf16>
    %cst_76 = arith.constant dense<0.000000e+00> : vector<8x512xf32>
    %463 = tpu.matmul %462, %309, %cst_76 {dimension_numbers = #tpu.dot_dimension_numbers<[1], [0], [0], [1], [0, 0, 1, 1], [], []>} : vector<8x128xbf16>, vector<128x512xbf16>, vector<8x512xf32> -> vector<8x512xf32>
    %464 = arith.addf %461, %463 : vector<8x512xf32>
    %465 = vector.extract_strided_slice %464 {offsets = [0, 0], sizes = [8, 128], strides = [1, 1]} : vector<8x512xf32> to vector<8x128xf32>
    %466 = arith.negf %465 : vector<8x128xf32>
    %467 = math.exp %466 : vector<8x128xf32>
    %cst_77 = arith.constant 1.000000e+00 : f32
    %468 = vector.broadcast %cst_77 : f32 to vector<8x128xf32>
    %469 = arith.addf %468, %467 : vector<8x128xf32>
    %470 = arith.divf %468, %469 : vector<8x128xf32>
    %471 = vector.extract_strided_slice %464 {offsets = [0, 128], sizes = [8, 128], strides = [1, 1]} : vector<8x512xf32> to vector<8x128xf32>
    %472 = arith.negf %471 : vector<8x128xf32>
    %473 = math.exp %472 : vector<8x128xf32>
    %cst_78 = arith.constant 1.000000e+00 : f32
    %474 = vector.broadcast %cst_78 : f32 to vector<8x128xf32>
    %475 = arith.addf %474, %473 : vector<8x128xf32>
    %476 = arith.divf %474, %475 : vector<8x128xf32>
    %477 = vector.extract_strided_slice %464 {offsets = [0, 256], sizes = [8, 128], strides = [1, 1]} : vector<8x512xf32> to vector<8x128xf32>
    %478 = math.tanh %477 : vector<8x128xf32>
    %479 = vector.extract_strided_slice %464 {offsets = [0, 384], sizes = [8, 128], strides = [1, 1]} : vector<8x512xf32> to vector<8x128xf32>
    %480 = arith.negf %479 : vector<8x128xf32>
    %481 = math.exp %480 : vector<8x128xf32>
    %cst_79 = arith.constant 1.000000e+00 : f32
    %482 = vector.broadcast %cst_79 : f32 to vector<8x128xf32>
    %483 = arith.addf %482, %481 : vector<8x128xf32>
    %484 = arith.divf %482, %483 : vector<8x128xf32>
    %485 = arith.mulf %476, %460 : vector<8x128xf32>
    %486 = arith.mulf %470, %478 : vector<8x128xf32>
    %487 = arith.addf %485, %486 : vector<8x128xf32>
    %488 = math.tanh %487 : vector<8x128xf32>
    %489 = arith.mulf %484, %488 : vector<8x128xf32>
    %c3_i32_80 = arith.constant 3 : i32
    %490 = vector.broadcast %c3_i32_80 : i32 to vector<8x1xi32>
    %491 = arith.cmpi sgt, %310, %490 : vector<8x1xi32>
    %492 = vector.shape_cast %491 : vector<8x1xi1> to vector<8x1xi1>
    %493 = vector.broadcast %492 : vector<8x1xi1> to vector<8x128xi1>
    %494 = arith.select %493, %489, %457 : vector<8x128xi1>, vector<8x128xf32>
    %495 = vector.shape_cast %491 : vector<8x1xi1> to vector<8x1xi1>
    %496 = vector.broadcast %495 : vector<8x1xi1> to vector<8x128xi1>
    %497 = arith.select %496, %487, %460 : vector<8x128xi1>, vector<8x128xf32>
    %498 = vector.extract_strided_slice %308 {offsets = [16, 0], sizes = [8, 512], strides = [1, 1]} : vector<64x512xf32> to vector<8x512xf32>
    %499 = arith.truncf %494 : vector<8x128xf32> to vector<8x128xbf16>
    %cst_81 = arith.constant dense<0.000000e+00> : vector<8x512xf32>
    %500 = tpu.matmul %499, %309, %cst_81 {dimension_numbers = #tpu.dot_dimension_numbers<[1], [0], [0], [1], [0, 0, 1, 1], [], []>} : vector<8x128xbf16>, vector<128x512xbf16>, vector<8x512xf32> -> vector<8x512xf32>
    %501 = arith.addf %498, %500 : vector<8x512xf32>
    %502 = vector.extract_strided_slice %501 {offsets = [0, 0], sizes = [8, 128], strides = [1, 1]} : vector<8x512xf32> to vector<8x128xf32>
    %503 = arith.negf %502 : vector<8x128xf32>
    %504 = math.exp %503 : vector<8x128xf32>
    %cst_82 = arith.constant 1.000000e+00 : f32
    %505 = vector.broadcast %cst_82 : f32 to vector<8x128xf32>
    %506 = arith.addf %505, %504 : vector<8x128xf32>
    %507 = arith.divf %505, %506 : vector<8x128xf32>
    %508 = vector.extract_strided_slice %501 {offsets = [0, 128], sizes = [8, 128], strides = [1, 1]} : vector<8x512xf32> to vector<8x128xf32>
    %509 = arith.negf %508 : vector<8x128xf32>
    %510 = math.exp %509 : vector<8x128xf32>
    %cst_83 = arith.constant 1.000000e+00 : f32
    %511 = vector.broadcast %cst_83 : f32 to vector<8x128xf32>
    %512 = arith.addf %511, %510 : vector<8x128xf32>
    %513 = arith.divf %511, %512 : vector<8x128xf32>
    %514 = vector.extract_strided_slice %501 {offsets = [0, 256], sizes = [8, 128], strides = [1, 1]} : vector<8x512xf32> to vector<8x128xf32>
    %515 = math.tanh %514 : vector<8x128xf32>
    %516 = vector.extract_strided_slice %501 {offsets = [0, 384], sizes = [8, 128], strides = [1, 1]} : vector<8x512xf32> to vector<8x128xf32>
    %517 = arith.negf %516 : vector<8x128xf32>
    %518 = math.exp %517 : vector<8x128xf32>
    %cst_84 = arith.constant 1.000000e+00 : f32
    %519 = vector.broadcast %cst_84 : f32 to vector<8x128xf32>
    %520 = arith.addf %519, %518 : vector<8x128xf32>
    %521 = arith.divf %519, %520 : vector<8x128xf32>
    %522 = arith.mulf %513, %497 : vector<8x128xf32>
    %523 = arith.mulf %507, %515 : vector<8x128xf32>
    %524 = arith.addf %522, %523 : vector<8x128xf32>
    %525 = math.tanh %524 : vector<8x128xf32>
    %526 = arith.mulf %521, %525 : vector<8x128xf32>
    %c2_i32_85 = arith.constant 2 : i32
    %527 = vector.broadcast %c2_i32_85 : i32 to vector<8x1xi32>
    %528 = arith.cmpi sgt, %310, %527 : vector<8x1xi32>
    %529 = vector.shape_cast %528 : vector<8x1xi1> to vector<8x1xi1>
    %530 = vector.broadcast %529 : vector<8x1xi1> to vector<8x128xi1>
    %531 = arith.select %530, %526, %494 : vector<8x128xi1>, vector<8x128xf32>
    %532 = vector.shape_cast %528 : vector<8x1xi1> to vector<8x1xi1>
    %533 = vector.broadcast %532 : vector<8x1xi1> to vector<8x128xi1>
    %534 = arith.select %533, %524, %497 : vector<8x128xi1>, vector<8x128xf32>
    %535 = vector.extract_strided_slice %308 {offsets = [8, 0], sizes = [8, 512], strides = [1, 1]} : vector<64x512xf32> to vector<8x512xf32>
    %536 = arith.truncf %531 : vector<8x128xf32> to vector<8x128xbf16>
    %cst_86 = arith.constant dense<0.000000e+00> : vector<8x512xf32>
    %537 = tpu.matmul %536, %309, %cst_86 {dimension_numbers = #tpu.dot_dimension_numbers<[1], [0], [0], [1], [0, 0, 1, 1], [], []>} : vector<8x128xbf16>, vector<128x512xbf16>, vector<8x512xf32> -> vector<8x512xf32>
    %538 = arith.addf %535, %537 : vector<8x512xf32>
    %539 = vector.extract_strided_slice %538 {offsets = [0, 0], sizes = [8, 128], strides = [1, 1]} : vector<8x512xf32> to vector<8x128xf32>
    %540 = arith.negf %539 : vector<8x128xf32>
    %541 = math.exp %540 : vector<8x128xf32>
    %cst_87 = arith.constant 1.000000e+00 : f32
    %542 = vector.broadcast %cst_87 : f32 to vector<8x128xf32>
    %543 = arith.addf %542, %541 : vector<8x128xf32>
    %544 = arith.divf %542, %543 : vector<8x128xf32>
    %545 = vector.extract_strided_slice %538 {offsets = [0, 128], sizes = [8, 128], strides = [1, 1]} : vector<8x512xf32> to vector<8x128xf32>
    %546 = arith.negf %545 : vector<8x128xf32>
    %547 = math.exp %546 : vector<8x128xf32>
    %cst_88 = arith.constant 1.000000e+00 : f32
    %548 = vector.broadcast %cst_88 : f32 to vector<8x128xf32>
    %549 = arith.addf %548, %547 : vector<8x128xf32>
    %550 = arith.divf %548, %549 : vector<8x128xf32>
    %551 = vector.extract_strided_slice %538 {offsets = [0, 256], sizes = [8, 128], strides = [1, 1]} : vector<8x512xf32> to vector<8x128xf32>
    %552 = math.tanh %551 : vector<8x128xf32>
    %553 = vector.extract_strided_slice %538 {offsets = [0, 384], sizes = [8, 128], strides = [1, 1]} : vector<8x512xf32> to vector<8x128xf32>
    %554 = arith.negf %553 : vector<8x128xf32>
    %555 = math.exp %554 : vector<8x128xf32>
    %cst_89 = arith.constant 1.000000e+00 : f32
    %556 = vector.broadcast %cst_89 : f32 to vector<8x128xf32>
    %557 = arith.addf %556, %555 : vector<8x128xf32>
    %558 = arith.divf %556, %557 : vector<8x128xf32>
    %559 = arith.mulf %550, %534 : vector<8x128xf32>
    %560 = arith.mulf %544, %552 : vector<8x128xf32>
    %561 = arith.addf %559, %560 : vector<8x128xf32>
    %562 = math.tanh %561 : vector<8x128xf32>
    %563 = arith.mulf %558, %562 : vector<8x128xf32>
    %c1_i32_90 = arith.constant 1 : i32
    %564 = vector.broadcast %c1_i32_90 : i32 to vector<8x1xi32>
    %565 = arith.cmpi sgt, %310, %564 : vector<8x1xi32>
    %566 = vector.shape_cast %565 : vector<8x1xi1> to vector<8x1xi1>
    %567 = vector.broadcast %566 : vector<8x1xi1> to vector<8x128xi1>
    %568 = arith.select %567, %563, %531 : vector<8x128xi1>, vector<8x128xf32>
    %569 = vector.shape_cast %565 : vector<8x1xi1> to vector<8x1xi1>
    %570 = vector.broadcast %569 : vector<8x1xi1> to vector<8x128xi1>
    %571 = arith.select %570, %561, %534 : vector<8x128xi1>, vector<8x128xf32>
    %572 = vector.extract_strided_slice %308 {offsets = [0, 0], sizes = [8, 512], strides = [1, 1]} : vector<64x512xf32> to vector<8x512xf32>
    %573 = arith.truncf %568 : vector<8x128xf32> to vector<8x128xbf16>
    %cst_91 = arith.constant dense<0.000000e+00> : vector<8x512xf32>
    %574 = tpu.matmul %573, %309, %cst_91 {dimension_numbers = #tpu.dot_dimension_numbers<[1], [0], [0], [1], [0, 0, 1, 1], [], []>} : vector<8x128xbf16>, vector<128x512xbf16>, vector<8x512xf32> -> vector<8x512xf32>
    %575 = arith.addf %572, %574 : vector<8x512xf32>
    %576 = vector.extract_strided_slice %575 {offsets = [0, 0], sizes = [8, 128], strides = [1, 1]} : vector<8x512xf32> to vector<8x128xf32>
    %577 = arith.negf %576 : vector<8x128xf32>
    %578 = math.exp %577 : vector<8x128xf32>
    %cst_92 = arith.constant 1.000000e+00 : f32
    %579 = vector.broadcast %cst_92 : f32 to vector<8x128xf32>
    %580 = arith.addf %579, %578 : vector<8x128xf32>
    %581 = arith.divf %579, %580 : vector<8x128xf32>
    %582 = vector.extract_strided_slice %575 {offsets = [0, 128], sizes = [8, 128], strides = [1, 1]} : vector<8x512xf32> to vector<8x128xf32>
    %583 = arith.negf %582 : vector<8x128xf32>
    %584 = math.exp %583 : vector<8x128xf32>
    %cst_93 = arith.constant 1.000000e+00 : f32
    %585 = vector.broadcast %cst_93 : f32 to vector<8x128xf32>
    %586 = arith.addf %585, %584 : vector<8x128xf32>
    %587 = arith.divf %585, %586 : vector<8x128xf32>
    %588 = vector.extract_strided_slice %575 {offsets = [0, 256], sizes = [8, 128], strides = [1, 1]} : vector<8x512xf32> to vector<8x128xf32>
    %589 = math.tanh %588 : vector<8x128xf32>
    %590 = vector.extract_strided_slice %575 {offsets = [0, 384], sizes = [8, 128], strides = [1, 1]} : vector<8x512xf32> to vector<8x128xf32>
    %591 = arith.negf %590 : vector<8x128xf32>
    %592 = math.exp %591 : vector<8x128xf32>
    %cst_94 = arith.constant 1.000000e+00 : f32
    %593 = vector.broadcast %cst_94 : f32 to vector<8x128xf32>
    %594 = arith.addf %593, %592 : vector<8x128xf32>
    %595 = arith.divf %593, %594 : vector<8x128xf32>
    %596 = arith.mulf %587, %571 : vector<8x128xf32>
    %597 = arith.mulf %581, %589 : vector<8x128xf32>
    %598 = arith.addf %596, %597 : vector<8x128xf32>
    %599 = math.tanh %598 : vector<8x128xf32>
    %600 = arith.mulf %595, %599 : vector<8x128xf32>
    %c0_i32_95 = arith.constant 0 : i32
    %601 = vector.broadcast %c0_i32_95 : i32 to vector<8x1xi32>
    %602 = arith.cmpi sgt, %310, %601 : vector<8x1xi32>
    %603 = vector.shape_cast %602 : vector<8x1xi1> to vector<8x1xi1>
    %604 = vector.broadcast %603 : vector<8x1xi1> to vector<8x128xi1>
    %605 = arith.select %604, %600, %568 : vector<8x128xi1>, vector<8x128xf32>
    %c0_96 = arith.constant 0 : index
    %c0_97 = arith.constant 0 : index
    %606 = vector.load %arg10[%c0_96, %c0_97] : memref<128x128xf32, #tpu.memory_space<vmem>>, vector<128x128xf32>
    %cst_98 = arith.constant dense<0.000000e+00> : vector<8x128xf32>
    %607 = tpu.matmul %605, %606, %cst_98 {dimension_numbers = #tpu.dot_dimension_numbers<[1], [0], [0], [1], [0, 0, 1, 1], [], []>} : vector<8x128xf32>, vector<128x128xf32>, vector<8x128xf32> -> vector<8x128xf32>
    %c0_99 = arith.constant 0 : index
    %c0_100 = arith.constant 0 : index
    %608 = vector.load %arg11[%c0_99, %c0_100] : memref<128x128xf32, #tpu.memory_space<vmem>>, vector<128x128xf32>
    %cst_101 = arith.constant dense<0.000000e+00> : vector<8x128xf32>
    %609 = tpu.matmul %302, %608, %cst_101 {dimension_numbers = #tpu.dot_dimension_numbers<[1], [0], [0], [1], [0, 0, 1, 1], [], []>} : vector<8x128xf32>, vector<128x128xf32>, vector<8x128xf32> -> vector<8x128xf32>
    %610 = arith.addf %607, %609 : vector<8x128xf32>
    %c0_102 = arith.constant 0 : index
    %c0_103 = arith.constant 0 : index
    %611 = vector.load %arg12[%c0_102, %c0_103] : memref<1x128xf32, #tpu.memory_space<vmem>>, vector<1x128xf32>
    %612 = vector.broadcast %611 : vector<1x128xf32> to vector<8x128xf32>
    %613 = arith.addf %610, %612 : vector<8x128xf32>
    %cst_104 = arith.constant 0.000000e+00 : f32
    %614 = vector.broadcast %cst_104 : f32 to vector<8x128xf32>
    %615 = arith.maximumf %613, %614 : vector<8x128xf32>
    %c0_105 = arith.constant 0 : index
    %c0_106 = arith.constant 0 : index
    %616 = vector.load %arg13[%c0_105, %c0_106] : memref<8x128xf32, #tpu.memory_space<vmem>>, vector<8x128xf32>
    tpu.vector_store %arg13[%c0_105, %c0_106], %615 {strides = array<i32>} : memref<8x128xf32, #tpu.memory_space<vmem>>, vector<8x128xf32>,
    return
  }
}

</mosaic_0001>

<bundles_post_ra>
// kernel: siamese_forward.1
= control target key start
LH: loop header
LB: loop body
LE: loop exit
PB: predicated region body
PF: predicated region fallthrough
CT: control target
= control target key end

     0   :  { %v5770_v1 = vmov 0   ;;  %vm143_vm0 = vcmask 261120   ;;  %v63_v55 = vlaneseq  ;;  %s5752_s4 = inlined_call_operand.vmem [shape: bf16[32,512], index: 4, kind: input, shape index: {}]   ;;  %s5753_s2 = inlined_call_operand.vmem [shape: bf16[64,32], index: 2, kind: input, shape index: {}]   ;;  %s5754_s5 = inlined_call_operand.vmem [shape: bf16[128,512], index: 5, kind: input, shape index: {}]   ;;  %s5755_s0 = inlined_call_operand.vmem [shape: s32[8,1], index: 0, kind: input, shape index: {}]   ;;  %s5756_s1 = inlined_call_operand.vmem [shape: s32[8,1], index: 1, kind: input, shape index: {}]   ;;  %s5757_s6 = inlined_call_operand.vmem [shape: f32[1,512], index: 6, kind: input, shape index: {}]   ;;  %s5758_s7 = inlined_call_operand.vmem [shape: bf16[32,512], index: 7, kind: input, shape index: {}]   ;;  %s5759_s3 = inlined_call_operand.vmem [shape: bf16[64,32], index: 3, kind: input, shape index: {}]   ;;  %s5760_s8 = inlined_call_operand.vmem [shape: bf16[128,512], index: 8, kind: input, shape index: {}]   ;;  %s5761_s9 = inlined_call_operand.vmem [shape: f32[1,512], index: 9, kind: input, shape index: {}]   ;;  %s5762_s11 = inlined_call_operand.vmem [shape: f32[128,128], index: 11, kind: input, shape index: {}]   ;;  %s5763_s10 = inlined_call_operand.vmem [shape: f32[128,128], index: 10, kind: input, shape index: {}]   ;;  %s5764_s12 = inlined_call_operand.vmem [shape: f32[1,128], index: 12, kind: input, shape index: {}]   ;;  %s5765_s13 = inlined_call_operand.vmem [shape: f32[8,128], index: 13, kind: output, shape index: {}]  }
   0x1   :  { %v3353_v0 = vld [vmem:[%s5752_s4 + $0x4] ss:$16 sps:$4 sm:$0xff]   ;;  %188 = vmatprep.mubr.bf16.mxu0 %v5770_v1  ;;  %261 = vmatprep.mubr.bf16.mxu1 %v5770_v1  ;;  %v3355_v2 = vld [vmem:[%s5752_s4] ss:$16 sps:$4 sm:$0xff]   ;;  %v3362_v7 = vld [vmem:[%s5752_s4 + $0xc] ss:$16 sps:$4 sm:$0xff]  }
   0x2   :  { %3351 = vset.pattern.permute.xlu0 %v5770_v1  ;;  %3352 = vset.pattern.permute.xlu1 %v5770_v1  ;;  %v3356_v3 = vld [vmem:[%s5752_s4 + $0x24] ss:$16 sps:$4 sm:$0xff]   ;;  %v3358_v4 = vld [vmem:[%s5752_s4 + $0x20] ss:$16 sps:$4 sm:$0xff]   ;;  %v3365_v8 = vld [vmem:[%s5752_s4 + $0x8] ss:$16 sps:$4 sm:$0xff]  }
   0x3   :  { %156 = vmatprep.subr.bf16.mxu0 %v3353_v0  ;;  %v3894_v5 = vld [vmem:[%s5754_s5 + $0x4] ss:$16 sps:$4 sm:$0xff]   ;;  %229 = vmatprep.subr.bf16.mxu1 %v3362_v7  ;;  %v3908_v9 = vld [vmem:[%s5754_s5] ss:$16 sps:$4 sm:$0xff]   ;;  %v3368_v11 = vld [vmem:[%s5752_s4 + $0x2c] ss:$16 sps:$4 sm:$0xff]  }
   0x4   :  { %157 = vmatpush1.bf16.msra.mxu0 %v3355_v2  ;;  %v3359_v6 = vld [vmem:[%s5753_s2] sm:$0xff]   ;;  %230 = vmatpush1.bf16.msra.mxu1 %v3365_v8  ;;  %v3371_v12 = vld [vmem:[%s5752_s4 + $0x28] ss:$16 sps:$4 sm:$0xff]   ;;  %v3939_v15 = vld [vmem:[%s5754_s5 + $0xc] ss:$16 sps:$4 sm:$0xff]   ;;  %v4187_v56 = vshrl.u32 %v63_v55, 7 }
   0x5   :  { %158 = vmatprep.subr.bf16.mxu0 %v3356_v3  ;;  %v3914_v10 = vld [vmem:[%s5754_s5 + $0x24] ss:$16 sps:$4 sm:$0xff]   ;;  %231 = vmatprep.subr.bf16.mxu1 %v3368_v11  ;;  %v3926_v13 = vld [vmem:[%s5754_s5 + $0x20] ss:$16 sps:$4 sm:$0xff]   ;;  %v3944_v16 = vld [vmem:[%s5754_s5 + $0x8] ss:$16 sps:$4 sm:$0xff]  }
   0x6   :  { %v3933_v14 = vld [vmem:[%s5754_s5 + $0x44] ss:$16 sps:$4 sm:$0xff]   ;;  %v3372_v17 = vld [vmem:[%s5753_s2 + $0x8] sm:$0xff]   ;;  %v3952_v18 = vld [vmem:[%s5754_s5 + $0x40] ss:$16 sps:$4 sm:$0xff]   ;;  %5775 = vst [vmem:[#allocation2_spill] sm:$0xff] %v4187_v56 }
   0x7   :  { %v3958_v19 = vld [vmem:[%s5754_s5 + $0x2c] ss:$16 sps:$4 sm:$0xff]   ;;  %v3965_v20 = vld [vmem:[%s5754_s5 + $0x64] ss:$16 sps:$4 sm:$0xff]   ;;  %v3972_v21 = vld [vmem:[%s5754_s5 + $0x28] ss:$16 sps:$4 sm:$0xff]  }
   0x8   :  { %159 = vmatpush1.bf16.msra.mxu0 %v3358_v4  ;;  %232 = vmatpush1.bf16.msra.mxu1 %v3371_v12  ;;  %v3980_v22 = vld [vmem:[%s5754_s5 + $0x60] ss:$16 sps:$4 sm:$0xff]   ;;  %v3985_v23 = vld [vmem:[%s5754_s5 + $0x4c] ss:$16 sps:$4 sm:$0xff]   ;;  %v3992_v24 = vld [vmem:[%s5754_s5 + $0x84] ss:$16 sps:$4 sm:$0xff]  }
   0x9   :  { %495 = vmatprep.subr.bf16.mxu0 %v3894_v5  ;;  %536 = vmatprep.subr.bf16.mxu1 %v3939_v15  ;;  %v3999_v25 = vld [vmem:[%s5754_s5 + $0x48] ss:$16 sps:$4 sm:$0xff]   ;;  %v4005_v26 = vld [vmem:[%s5754_s5 + $0x6c] ss:$16 sps:$4 sm:$0xff]   ;;  %v3385_v27 = vld [vmem:[%s5753_s2 + $0x10] sm:$0xff]   ;;  %v5769_v57 = vsub.s32 0, %v4187_v56 }
   0xa   :  { %v4015_v28 = vld [vmem:[%s5754_s5 + $0x80] ss:$16 sps:$4 sm:$0xff]   ;;  %v4020_v29 = vld [vmem:[%s5754_s5 + $0xa4] ss:$16 sps:$4 sm:$0xff]   ;;  %v4027_v30 = vld [vmem:[%s5754_s5 + $0x68] ss:$16 sps:$4 sm:$0xff]  }
   0xb   :  { %3042 = vmatmul.mubr.msk.bf16.vlgmr.msra.gmra.mrb[0].mxu0 %vm143_vm0, %v3359_v6  ;;  %3046 = vmatmul.mubr.msk.bf16.vlgmr.msra.gmra.mrb[0].mxu1 %vm143_vm0, %v3359_v6  ;;  %v4034_v31 = vld [vmem:[%s5754_s5 + $0x8c] ss:$16 sps:$4 sm:$0xff]   ;;  %v4041_v32 = vld [vmem:[%s5754_s5 + $0xa0] ss:$16 sps:$4 sm:$0xff]   ;;  %v4047_v33 = vld [vmem:[%s5754_s5 + $0xc4] ss:$16 sps:$4 sm:$0xff]  }
   0xc   :  { %496 = vmatpush1.bf16.msra.mxu0 %v3908_v9  ;;  %198 = vmatprep.mubr.bf16.mxu0 %v5770_v1  ;;  %v4054_v34 = vld [vmem:[%s5754_s5 + $0x88] ss:$16 sps:$4 sm:$0xff]   ;;  %v4060_v35 = vld [vmem:[%s5754_s5 + $0xac] ss:$16 sps:$4 sm:$0xff]   ;;  %v4068_v37 = vld [vmem:[%s5755_s0] sm:$0xff]  ;;  %v5768_v59 = vsub.s32 1, %v4187_v56 }
   0xd   :  { %497 = vmatprep.subr.bf16.mxu0 %v3914_v10  ;;  %537 = vmatpush1.bf16.msra.mxu1 %v3944_v16  ;;  %v3398_v36 = vld [vmem:[%s5753_s2 + $0x18] sm:$0xff]   ;;  %v4075_v38 = vld [vmem:[%s5754_s5 + $0xc0] ss:$16 sps:$4 sm:$0xff]   ;;  %vm605_vm1 = vcmp.gt.s32.totalorder %v4068_v37, 7  ;;  %v4083_v39 = vld [vmem:[%s5754_s5 + $0xe4] ss:$16 sps:$4 sm:$0xff]  }
   0xe   :  { %538 = vmatprep.subr.bf16.mxu1 %v3958_v19  ;;  %271 = vmatprep.mubr.bf16.mxu1 %v5770_v1  ;;  %v4088_v40 = vld [vmem:[%s5754_s5 + $0xa8] ss:$16 sps:$4 sm:$0xff]   ;;  %v606_v41 = vsel %vm605_vm1, 1, %v5770_v1  ;;  %vm724_vm2 = vcmp.gt.s32.totalorder %v4068_v37, 6  ;;  %v4097_v42 = vld [vmem:[%s5754_s5 + $0xcc] ss:$16 sps:$4 sm:$0xff]  }
   0xf   :  { %608 = vperm.xlu0 %3351, %v606_v41   ;;  %v4104_v43 = vld [vmem:[%s5754_s5 + $0xe0] ss:$16 sps:$4 sm:$0xff]   ;;  %v725_v44 = vsel %vm724_vm2, 1, %v5770_v1  ;;  %v4113_v45 = vld [vmem:[%s5754_s5 + $0xc8] ss:$16 sps:$4 sm:$0xff]   ;;  %vm1081_vm3 = vcmp.gt.s32.totalorder %v4068_v37, 3 }
  0x10   :  { %498 = vmatpush1.bf16.msra.mxu0 %v3926_v13  ;;  %v4120_v46 = vld [vmem:[%s5754_s5 + $0xec] ss:$16 sps:$4 sm:$0xff]   ;;  %v1082_v47 = vsel %vm1081_vm3, 1, %v5770_v1  ;;  %v4129_v48 = vld [vmem:[%s5754_s5 + $0xe8] ss:$16 sps:$4 sm:$0xff]   ;;  %vm1319_vm4 = vcmp.gt.s32.totalorder %v4068_v37, 1 }
  0x11   :  { %499 = vmatprep.subr.bf16.mxu0 %v3933_v14  ;;  %539 = vmatpush1.bf16.msra.mxu1 %v3972_v21  ;;  %v4137_v49 = vld [vmem:[%s5756_s1] sm:$0xff]  ;;  %v1320_v50 = vsel %vm1319_vm4, 1, %v5770_v1  ;;  %vm1438_vm8 = vcmp.gt.s32.totalorder %v4068_v37, 0  ;;  %v5767_v62 = vsub.s32 2, %v4187_v56  ;;  %v5766_v63 = vsub.s32 3, %v4187_v56 }
  0x12   :  { %540 = vmatprep.subr.bf16.mxu1 %v3985_v23  ;;  %vm2123_vm5 = vcmp.gt.s32.totalorder %v4137_v49, 6  ;;  %vm2361_vm6 = vcmp.gt.s32.totalorder %v4137_v49, 4  ;;  %vm2599_vm7 = vcmp.gt.s32.totalorder %v4137_v49, 2  ;;  %v1439_v54 = vsel %vm1438_vm8, 1, %v5770_v1  ;;  %v61_v58 = vld [vmem:[%s5757_s6] sm:$0xf] }
  0x13   :  { %3043 = vmatmul.mubr.msk.bf16.gmra.mrb[4].mxu0 %vm143_vm0, %v3372_v17  ;;  %3047 = vmatmul.mubr.msk.bf16.gmra.mrb[4].mxu1 %vm143_vm0, %v3372_v17  ;;  %v2124_v51 = vsel %vm2123_vm5, 1, %v5770_v1  ;;  %v2362_v52 = vsel %vm2361_vm6, 1, %v5770_v1  ;;  %v2600_v53 = vsel %vm2599_vm7, 1, %v5770_v1  ;;  %v4196_v60 = vrot.slane %v61_v58, %v5769_v57 }
  0x14   :  { %500 = vmatpush1.bf16.msra.mxu0 %v3952_v18  ;;  %208 = vmatprep.mubr.bf16.mxu0 %v5770_v1  ;;  %v4200_v61 = vrot.slane %v61_v58, %v5768_v59  ;;  %v4212_v7 = vrot.slane %v61_v58, %v5767_v62  ;;  %v4219_v12 = vrot.slane %v61_v58, %v5766_v63  ;;  %vm843_vm11 = vcmp.gt.s32.totalorder %v4068_v37, 5 }
  0x15   :  { %501 = vmatprep.subr.bf16.mxu0 %v3965_v20  ;;  %541 = vmatpush1.bf16.msra.mxu1 %v3999_v25  ;;  %vm962_vm12 = vcmp.gt.s32.totalorder %v4068_v37, 4  ;;  %vm1200_vm13 = vcmp.gt.s32.totalorder %v4068_v37, 2  ;;  %vm2004_vm14 = vcmp.gt.s32.totalorder %v4137_v49, 7  ;;  %vm2242_vm15 = vcmp.gt.s32.totalorder %v4137_v49, 5 }
  0x16   :  { %542 = vmatprep.subr.bf16.mxu1 %v4005_v26  ;;  %281 = vmatprep.mubr.bf16.mxu1 %v5770_v1  ;;  %vm2480_vm1 = vcmp.gt.s32.totalorder %v4137_v49, 3  ;;  %vm2718_vm2 = vcmp.gt.s32.totalorder %v4137_v49, 1  ;;  %vm2837_vm3 = vcmp.gt.s32.totalorder %v4137_v49, 0 }
  0x17   :  { %727 = vperm.xlu0 %3351, %v725_v44  }
  0x18   :  { %502 = vmatpush1.bf16.msra.mxu0 %v3980_v22 }
  0x19   :  { %503 = vmatprep.subr.bf16.mxu0 %v3992_v24  ;;  %543 = vmatpush1.bf16.msra.mxu1 %v4027_v30 }
  0x1a   :  { %544 = vmatprep.subr.bf16.mxu1 %v4034_v31 }
  0x1b   :  { %3044 = vmatmul.mubr.msk.bf16.gmra.mrb[8].mxu0 %vm143_vm0, %v3385_v27  ;;  %3048 = vmatmul.mubr.msk.bf16.gmra.mrb[8].mxu1 %vm143_vm0, %v3385_v27 }
  0x1c   :  { %504 = vmatpush1.bf16.msra.mxu0 %v4015_v28  ;;  %218 = vmatprep.mubr.bf16.mxu0 %v5770_v1 }
  0x1d   :  { %505 = vmatprep.subr.bf16.mxu0 %v4020_v29  ;;  %545 = vmatpush1.bf16.msra.mxu1 %v4054_v34 }
  0x1e   :  { %546 = vmatprep.subr.bf16.mxu1 %v4060_v35  ;;  %291 = vmatprep.mubr.bf16.mxu1 %v5770_v1 }
  0x1f   :  { %1084 = vperm.xlu0 %3351, %v1082_v47  }
  0x20   :  { %506 = vmatpush1.bf16.msra.mxu0 %v4041_v32 }
  0x21   :  { %507 = vmatprep.subr.bf16.mxu0 %v4047_v33  ;;  %547 = vmatpush1.bf16.msra.mxu1 %v4088_v40 }
  0x22   :  { %548 = vmatprep.subr.bf16.mxu1 %v4097_v42 }
  0x23   :  { %3045 = vmatmul.mubr.msk.bf16.gmra.mrb[12].mxu0 %vm143_vm0, %v3398_v36  ;;  %3049 = vmatmul.mubr.msk.bf16.gmra.mrb[12].mxu1 %vm143_vm0, %v3398_v36 }
  0x24   :  { %508 = vmatpush1.bf16.msra.mxu0 %v4075_v38  ;;  %527 = vmatprep.mubr.bf16.mxu0 %v5770_v1 }
  0x25   :  { %509 = vmatprep.subr.bf16.mxu0 %v4083_v39  ;;  %549 = vmatpush1.bf16.msra.mxu1 %v4113_v45 }
  0x26   :  { %568 = vmatprep.mubr.bf16.mxu1 %v5770_v1  ;;  %550 = vmatprep.subr.bf16.mxu1 %v4120_v46 }
  0x27   :  { %1322 = vperm.xlu0 %3351, %v1320_v50  }
  0x28   :  { %510 = vmatpush1.bf16.msra.mxu0 %v4104_v43 }
  0x29   :  { %614 = vmatprep.subr.bf16.mxu0 %v3894_v5  ;;  %551 = vmatpush1.bf16.msra.mxu1 %v4129_v48 }
  0x2a   :  { %655 = vmatprep.subr.bf16.mxu1 %v3939_v15 }
  0x2b   :  { %528 = vmatmul.mubr.bf16.vlgmr.msra.gmra.mrb[16].mxu0 %v5770_v1  ;;  %2126 = vperm.xlu0 %3351, %v2124_v51  }
  0x2c   :  { %615 = vmatpush1.bf16.msra.mxu0 %v3908_v9  ;;  %646 = vmatprep.mubr.bf16.mxu0 %v5770_v1 }
  0x2d   :  { %616 = vmatprep.subr.bf16.mxu0 %v3914_v10  ;;  %569 = vmatmul.mubr.bf16.vlgmr.msra.gmra.mrb[16].mxu1 %v5770_v1 }
  0x2e   :  { %656 = vmatpush1.bf16.msra.mxu1 %v3944_v16  ;;  %687 = vmatprep.mubr.bf16.mxu1 %v5770_v1 }
  0x2f   :  { %657 = vmatprep.subr.bf16.mxu1 %v3958_v19  ;;  %2364 = vperm.xlu0 %3351, %v2362_v52  }
  0x30   :  { %617 = vmatpush1.bf16.msra.mxu0 %v3926_v13 }
  0x31   :  { %618 = vmatprep.subr.bf16.mxu0 %v3933_v14 }
  0x32   :  { %658 = vmatpush1.bf16.msra.mxu1 %v3972_v21 }
  0x33   :  { %659 = vmatprep.subr.bf16.mxu1 %v3985_v23  ;;  %2602 = vperm.xlu0 %3351, %v2600_v53  }
  0x34   :  { %619 = vmatpush1.bf16.msra.mxu0 %v3952_v18 }
  0x35   :  { %620 = vmatprep.subr.bf16.mxu0 %v3965_v20 }
  0x36   :  { %660 = vmatpush1.bf16.msra.mxu1 %v3999_v25 }
  0x37   :  { %661 = vmatprep.subr.bf16.mxu1 %v4005_v26  ;;  %1441 = vperm.xlu0 %3351, %v1439_v54  }
  0x38   :  { %621 = vmatpush1.bf16.msra.mxu0 %v3980_v22 }
  0x39   :  { %622 = vmatprep.subr.bf16.mxu0 %v3992_v24 }
  0x3a   :  { %662 = vmatpush1.bf16.msra.mxu1 %v4027_v30 }
  0x3b   :  { %663 = vmatprep.subr.bf16.mxu1 %v4034_v31 }
  0x3c   :  { %623 = vmatpush1.bf16.msra.mxu0 %v4015_v28 }
  0x3d   :  { %624 = vmatprep.subr.bf16.mxu0 %v4020_v29 }
  0x3e   :  { %664 = vmatpush1.bf16.msra.mxu1 %v4054_v34 }
  0x3f   :  { %665 = vmatprep.subr.bf16.mxu1 %v4060_v35 }
  0x40   :  { %625 = vmatpush1.bf16.msra.mxu0 %v4041_v32 }
  0x41   :  { %626 = vmatprep.subr.bf16.mxu0 %v4047_v33 }
  0x42   :  { %666 = vmatpush1.bf16.msra.mxu1 %v4088_v40 }
  0x43   :  { %667 = vmatprep.subr.bf16.mxu1 %v4097_v42 }
  0x44   :  { %627 = vmatpush1.bf16.msra.mxu0 %v4075_v38 }
  0x45   :  { %628 = vmatprep.subr.bf16.mxu0 %v4083_v39 }
  0x46   :  { %668 = vmatpush1.bf16.msra.mxu1 %v4113_v45 }
  0x47   :  { %669 = vmatprep.subr.bf16.mxu1 %v4120_v46 }
  0x48   :  { %629 = vmatpush1.bf16.msra.mxu0 %v4104_v43 }
  0x49   :  { %733 = vmatprep.subr.bf16.mxu0 %v3894_v5 }
  0x4a   :  { %670 = vmatpush1.bf16.msra.mxu1 %v4129_v48 }
  0x4b   :  { %774 = vmatprep.subr.bf16.mxu1 %v3939_v15 }
  0xde   :  { %v190_v0 = vpop.f32.mrb[0].mxu0  ;;  %v263_v27 = vpop.f32.mrb[0].mxu1 }
  0xdf   :  { %v4205_v2 = vadd.f32 %v190_v0, %v4196_v60  ;;  %v192_v3 = vpop.f32.mrb[1].mxu0  ;;  %v4225_v36 = vadd.f32 %v263_v27, %v4212_v7  ;;  %v265_v41 = vpop.f32.mrb[1].mxu1 }
  0xe0   :  { %v4208_v4 = vadd.f32 %v192_v3, %v4200_v61  ;;  %v194_v6 = vpop.f32.mrb[2].mxu0  ;;  %v4228_v44 = vadd.f32 %v265_v41, %v4219_v12  ;;  %v267_v47 = vpop.f32.mrb[2].mxu1 }
  0xe1   :  { %5776 = vst [vmem:[#allocation3_spill] sm:$0xff] %v4205_v2  ;;  %v4215_v8 = vadd.f32 %v194_v6, %v4196_v60  ;;  %v196_v11 = vpop.f32.mrb[3].mxu0  ;;  %5780 = vst [vmem:[#allocation7_spill] sm:$0xff] %v4225_v36  ;;  %v4231_v51 = vadd.f32 %v267_v47, %v4212_v7  ;;  %v269_v52 = vpop.f32.mrb[3].mxu1 }
  0xe2   :  { %5777 = vst [vmem:[#allocation4_spill] sm:$0xff] %v4208_v4  ;;  %v4222_v17 = vadd.f32 %v196_v11, %v4200_v61  ;;  %5781 = vst [vmem:[#allocation8_spill] sm:$0xff] %v4228_v44  ;;  %v4237_v55 = vadd.f32 %v269_v52, %v4219_v12 }
  0xe3   :  { %5778 = vst [vmem:[#allocation5_spill] sm:$0xff] %v4215_v8  ;;  %5782 = vst [vmem:[#allocation9_spill] sm:$0xff] %v4231_v51 }
  0xe4   :  { %5779 = vst [vmem:[#allocation6_spill] sm:$0xff] %v4222_v17  ;;  %5784 = vst [vmem:[#allocation11_spill] sm:$0xff] %v4237_v55 }
  0xe6   :  { %v200_v50 = vpop.f32.mrb[4].mxu0  ;;  %v273_v27 = vpop.f32.mrb[4].mxu1 }
  0xe7   :  { %v4234_v53 = vadd.f32 %v200_v50, %v4196_v60  ;;  %v202_v54 = vpop.f32.mrb[5].mxu0  ;;  %v4249_v41 = vadd.f32 %v273_v27, %v4212_v7  ;;  %v275_v47 = vpop.f32.mrb[5].mxu1 }
  0xe8   :  { %v4240_v58 = vadd.f32 %v202_v54, %v4200_v61  ;;  %v204_v0 = vpop.f32.mrb[6].mxu0  ;;  %v4252_v50 = vadd.f32 %v275_v47, %v4219_v12  ;;  %v277_v52 = vpop.f32.mrb[6].mxu1 }
  0xe9   :  { %5783 = vst [vmem:[#allocation10_spill] sm:$0xff] %v4234_v53  ;;  %v4243_v3 = vadd.f32 %v204_v0, %v4196_v60  ;;  %v206_v6 = vpop.f32.mrb[7].mxu0  ;;  %5788 = vst [vmem:[#allocation15_spill] sm:$0xff] %v4249_v41  ;;  %v4255_v54 = vadd.f32 %v277_v52, %v4212_v7  ;;  %v279_v62 = vpop.f32.mrb[7].mxu1 }
  0xea   :  { %5785 = vst [vmem:[#allocation12_spill] sm:$0xff] %v4240_v58  ;;  %v4246_v11 = vadd.f32 %v206_v6, %v4200_v61  ;;  %5789 = vst [vmem:[#allocation16_spill] sm:$0xff] %v4252_v50  ;;  %v4261_v6 = vadd.f32 %v279_v62, %v4219_v12 }
  0xeb   :  { %5786 = vst [vmem:[#allocation13_spill] sm:$0xff] %v4243_v3  ;;  %5790 = vst [vmem:[#allocation17_spill] sm:$0xff] %v4255_v54 }
  0xec   :  { %5787 = vst [vmem:[#allocation14_spill] sm:$0xff] %v4246_v11  ;;  %5792 = vst [vmem:[#allocation19_spill] sm:$0xff] %v4261_v6 }
  0xee   :  { %v210_v63 = vpop.f32.mrb[8].mxu0  ;;  %v283_v52 = vpop.f32.mrb[8].mxu1 }
  0xef   :  { %v4258_v0 = vadd.f32 %v210_v63, %v4196_v60  ;;  %v212_v59 = vpop.f32.mrb[9].mxu0  ;;  %v4273_v44 = vadd.f32 %v283_v52, %v4212_v7  ;;  %v285_v63 = vpop.f32.mrb[9].mxu1 }
  0xf0   :  { %v4264_v27 = vadd.f32 %v212_v59, %v4200_v61  ;;  %v214_v57 = vpop.f32.mrb[10].mxu0  ;;  %v4276_v4 = vadd.f32 %v285_v63, %v4219_v12  ;;  %v287_v62 = vpop.f32.mrb[10].mxu1 }
  0xf1   :  { %5791 = vst [vmem:[#allocation18_spill] sm:$0xff] %v4258_v0  ;;  %v4267_v47 = vadd.f32 %v214_v57, %v4196_v60  ;;  %v216_v1 = vpop.f32.mrb[11].mxu0  ;;  %5794 = vst [vmem:[#allocation21_spill] sm:$0xff] %v4273_v44  ;;  %v4279_v59 = vadd.f32 %v287_v62, %v4212_v7  ;;  %v289_v2 = vpop.f32.mrb[11].mxu1 }
  0xf2   :  { %5793 = vst [vmem:[#allocation20_spill] sm:$0xff] %v4264_v27  ;;  %v4270_v56 = vadd.f32 %v216_v1, %v4200_v61  ;;  %5795 = vst [vmem:[#allocation22_spill] sm:$0xff] %v4276_v4  ;;  %v4285_v1 = vadd.f32 %v289_v2, %v4219_v12 }
  0xf4   :  { %5796 = vst [vmem:[#allocation23_spill] sm:$0xff] %v4285_v1 }
  0xf6   :  { %v220_v36 = vpop.f32.mrb[12].mxu0  ;;  %v293_v63 = vpop.f32.mrb[12].mxu1 }
  0xf7   :  { %v4282_v57 = vadd.f32 %v220_v36, %v4196_v60  ;;  %v222_v55 = vpop.f32.mrb[13].mxu0  ;;  %v4291_v8 = vadd.f32 %v293_v63, %v4212_v7  ;;  %v295_v50 = vpop.f32.mrb[13].mxu1 }
  0xf8   :  { %v4288_v52 = vadd.f32 %v222_v55, %v4200_v61  ;;  %v224_v17 = vpop.f32.mrb[14].mxu0  ;;  %v4295_v58 = vadd.f32 %v295_v50, %v4219_v12  ;;  %v297_v36 = vpop.f32.mrb[14].mxu1 }
  0xf9   :  { %v226_v51 = vpop.f32.mrb[15].mxu0  ;;  %v225_v62 = vadd.f32 %v224_v17, %v4196_v60  ;;  %v299_v53 = vpop.f32.mrb[15].mxu1  ;;  %v298_v3 = vadd.f32 %v297_v36, %v4212_v7 }
  0xfa   :  { %v227_v41 = vadd.f32 %v226_v51, %v4200_v61  ;;  %v300_v27 = vadd.f32 %v299_v53, %v4219_v12  ;;  %v4303_v36 = vpop.permute.xlu0 %608 }
  0xfb   :  { %vm610_vm9 = vcmp.eq.s32.totalorder %v4303_v36, 1 }
  0xfc   :  { %vm3085_vm10 = vmpackc.low %vm610_vm9, %vm610_vm9 }
  0xfe   :  { %v529_v2 = vpop.f32.mrb[16].mxu0 }
  0xff   :  { %v577_v6 = vadd.f32 %v529_v2, %v225_v62  ;;  %v531_v55 = vpop.f32.mrb[17].mxu0 }
 0x100   :  { %v578_v11 = vadd.f32 %v531_v55, %v227_v41  ;;  %v533_v54 = vpop.f32.mrb[18].mxu0  ;;  %v570_v60 = vpop.f32.mrb[16].mxu1 }
 0x101   :  { %v3082_v4 = vmul.f32 -1.442695, %v577_v6  ;;  %v534_v63 = vpop.f32.mrb[19].mxu0  ;;  %v579_v17 = vadd.f32 %v570_v60, %v298_v3  ;;  %v572_v50 = vpop.f32.mrb[17].mxu1 }
 0x102   :  { %v3083_v44 = vmul.f32 -1.442695, %v578_v11  ;;  %v580_v0 = vadd.f32 %v572_v50, %v300_v27  ;;  %v574_v61 = vpop.f32.mrb[18].mxu1  ;;  %v5797_v63 = vmov 0  }
 0x103   :  { %3481 = vpow2.f32 %v3082_v4  ;;  %v575_v51 = vpop.f32.mrb[19].mxu1  ;;  %v844_v60 = vsel %vm843_vm11, 1, %v5797_v63  ;;  %v1201_v50 = vsel %vm1200_vm13, 1, %v5797_v63  ;;  %v2005_v61 = vsel %vm2004_vm14, 1, %v5797_v63 }
 0x104   :  { %3483 = vpow2.f32 %v3083_v44  ;;  %v3084_v1 = vmul.f32 -1.442695, %v580_v0  ;;  %846 = vperm.xlu1 %3352, %v844_v60   ;;  %v2243_v51 = vsel %vm2242_vm15, 1, %v5797_v63  ;;  %v2719_v37 = vsel %vm2718_vm2, 1, %v5797_v63 }
 0x105   :  { %vm3803_vm2 = vmmov 0  }
 0x106   :  { %3485 = vpow2.f32 %v3084_v1 }
 0x107   :  { %3487 = vtanh.f32 %v579_v17  ;;  %v963_v17 = vsel %vm962_vm12, 1, %v5797_v63 }
 0x108   :  { %965 = vperm.xlu1 %3352, %v963_v17  }
 0x10c   :  { %1203 = vperm.xlu1 %3352, %v1201_v50  }
 0x10d   :  { %v3482_v62 = vpop.eup %3481 }
 0x10e   :  { %v3484_v2 = vpop.eup %3483  ;;  %v584_v41 = vadd.f32 1.0, %v3482_v62  ;;  %v2481_v62 = vsel %vm2480_vm1, 1, %v5797_v63 }
 0x10f   :  { %v590_v54 = vadd.f32 1.0, %v3484_v2  ;;  %v2838_v2 = vsel %vm2837_vm3, 1, %v5797_v63 }
 0x110   :  { %3489 = vrcp.f32 %v584_v41  ;;  %v3486_v7 = vpop.eup %3485  ;;  %2007 = vperm.xlu1 %3352, %v2005_v61  }
 0x111   :  { %3491 = vrcp.f32 %v590_v54  ;;  %v3488_v12 = vpop.eup %3487  ;;  %v597_v11 = vadd.f32 1.0, %v3486_v7 }
 0x113   :  { %3493 = vrcp.f32 %v597_v11 }
 0x114   :  { %2245 = vperm.xlu1 %3352, %v2243_v51  }
 0x118   :  { %2483 = vperm.xlu1 %3352, %v2481_v62  }
 0x11a   :  { %v3490_v53 = vpop.eup %3489 }
 0x11b   :  { %v3492_v4 = vpop.eup %3491  ;;  %v601_v44 = vmul.f32 %v3490_v53, %v3488_v12 }
 0x11c   :  { %v600_v3 = vmul.f32 0.0, %v3492_v4  ;;  %2721 = vperm.xlu1 %3352, %v2719_v37  }
 0x11d   :  { %v3494_v0 = vpop.eup %3493 }
 0x11e   :  { %v4300_v6 = vadd.f32 %v601_v44, %v600_v3 }
 0x120   :  { %3495 = vtanh.f32 %v4300_v6  ;;  %2840 = vperm.xlu1 %3352, %v2838_v2   ;;  %v612_v37 = vsel %vm610_vm9, %v4300_v6, 0.0 }
 0x12a   :  { %v3496_v27 = vpop.eup %3495 }
 0x12b   :  { %v4305_v1 = vmul.f32 %v3496_v27, %v3494_v0 }
 0x12d   :  { %v3086_v55 = vpack.c.bf16 %v4305_v1, %v4305_v1 }
 0x12f   :  { %3087 = vmatmul.mubr.msk.bf16.vlgmr.msra.gmra.mrb[20].mxu0 %vm3085_vm10, %v3086_v55  ;;  %3090 = vmatmul.mubr.msk.bf16.vlgmr.msra.gmra.mrb[20].mxu1 %vm3085_vm10, %v3086_v55 }
 0x130   :  { %734 = vmatpush1.bf16.msra.mxu0 %v3908_v9  ;;  %775 = vmatpush1.bf16.msra.mxu1 %v3944_v16 }
 0x131   :  { %735 = vmatprep.subr.bf16.mxu0 %v3914_v10  ;;  %776 = vmatprep.subr.bf16.mxu1 %v3958_v19 }
 0x132   :  { %765 = vmatprep.mubr.bf16.mxu0 %v5797_v63  ;;  %806 = vmatprep.mubr.bf16.mxu1 %v5797_v63 }
 0x134   :  { %736 = vmatpush1.bf16.msra.mxu0 %v3926_v13  ;;  %777 = vmatpush1.bf16.msra.mxu1 %v3972_v21 }
 0x135   :  { %737 = vmatprep.subr.bf16.mxu0 %v3933_v14  ;;  %778 = vmatprep.subr.bf16.mxu1 %v3985_v23 }
 0x138   :  { %738 = vmatpush1.bf16.msra.mxu0 %v3952_v18  ;;  %779 = vmatpush1.bf16.msra.mxu1 %v3999_v25 }
 0x139   :  { %739 = vmatprep.subr.bf16.mxu0 %v3965_v20  ;;  %780 = vmatprep.subr.bf16.mxu1 %v4005_v26 }
 0x13c   :  { %740 = vmatpush1.bf16.msra.mxu0 %v3980_v22  ;;  %781 = vmatpush1.bf16.msra.mxu1 %v4027_v30 }
 0x13d   :  { %741 = vmatprep.subr.bf16.mxu0 %v3992_v24  ;;  %782 = vmatprep.subr.bf16.mxu1 %v4034_v31 }
 0x140   :  { %742 = vmatpush1.bf16.msra.mxu0 %v4015_v28  ;;  %783 = vmatpush1.bf16.msra.mxu1 %v4054_v34 }
 0x141   :  { %743 = vmatprep.subr.bf16.mxu0 %v4020_v29  ;;  %784 = vmatprep.subr.bf16.mxu1 %v4060_v35 }
 0x144   :  { %744 = vmatpush1.bf16.msra.mxu0 %v4041_v32  ;;  %785 = vmatpush1.bf16.msra.mxu1 %v4088_v40 }
 0x145   :  { %745 = vmatprep.subr.bf16.mxu0 %v4047_v33  ;;  %786 = vmatprep.subr.bf16.mxu1 %v4097_v42 }
 0x148   :  { %746 = vmatpush1.bf16.msra.mxu0 %v4075_v38  ;;  %787 = vmatpush1.bf16.msra.mxu1 %v4113_v45 }
 0x149   :  { %747 = vmatprep.subr.bf16.mxu0 %v4083_v39  ;;  %788 = vmatprep.subr.bf16.mxu1 %v4120_v46 }
 0x14c   :  { %748 = vmatpush1.bf16.msra.mxu0 %v4104_v43  ;;  %789 = vmatpush1.bf16.msra.mxu1 %v4129_v48 }
 0x14d   :  { %852 = vmatprep.subr.bf16.mxu0 %v3894_v5  ;;  %893 = vmatprep.subr.bf16.mxu1 %v3939_v15 }
 0x202   :  { %v648_v41 = vpop.f32.mrb[20].mxu0  ;;  %v689_v54 = vpop.f32.mrb[20].mxu1 }
 0x203   :  { %v696_v7 = vadd.f32 %v648_v41, %v4282_v57  ;;  %v698_v12 = vadd.f32 %v689_v54, %v4291_v8  ;;  %v650_v53 = vpop.f32.mrb[21].mxu0  ;;  %v691_v4 = vpop.f32.mrb[21].mxu1 }
 0x204   :  { %v697_v11 = vadd.f32 %v650_v53, %v4288_v52  ;;  %v699_v44 = vadd.f32 %v691_v4, %v4295_v58  ;;  %v652_v3 = vpop.f32.mrb[22].mxu0  ;;  %v693_v0 = vpop.f32.mrb[22].mxu1 }
 0x205   :  { %v3091_v27 = vmul.f32 -1.442695, %v696_v7  ;;  %v653_v49 = vpop.f32.mrb[23].mxu0  ;;  %v694_v55 = vpop.f32.mrb[23].mxu1  ;;  %v611_v3 = vsel %vm610_vm9, %v4305_v1, 0.0 }
 0x206   :  { %v3092_v60 = vmul.f32 -1.442695, %v697_v11  ;;  %v3093_v17 = vmul.f32 -1.442695, %v699_v44  ;;  %v728_v7 = vpop.permute.xlu0 %727 }
 0x207   :  { %3497 = vpow2.f32 %v3091_v27  ;;  %vm729_vm4 = vcmp.eq.s32.totalorder %v728_v7, 1 }
 0x208   :  { %3499 = vpow2.f32 %v3092_v60 }
 0x209   :  { %3501 = vpow2.f32 %v3093_v17 }
 0x20a   :  { %3503 = vtanh.f32 %v698_v12 }
 0x211   :  { %v3498_v50 = vpop.eup %3497 }
 0x212   :  { %v3500_v61 = vpop.eup %3499  ;;  %v703_v57 = vadd.f32 1.0, %v3498_v50  ;;  %v5798_v50 = vld [vmem:[#allocation23_spill] sm:$0xff] }
 0x213   :  { %v709_v8 = vadd.f32 1.0, %v3500_v61  ;;  %v3502_v52 = vpop.eup %3501 }
 0x214   :  { %3505 = vrcp.f32 %v703_v57  ;;  %v3504_v51 = vpop.eup %3503  ;;  %v716_v41 = vadd.f32 1.0, %v3502_v52 }
 0x215   :  { %3507 = vrcp.f32 %v709_v8 }
 0x216   :  { %3509 = vrcp.f32 %v716_v41 }
 0x21e   :  { %v3506_v58 = vpop.eup %3505 }
 0x21f   :  { %v3508_v62 = vpop.eup %3507  ;;  %v720_v2 = vmul.f32 %v3506_v58, %v3504_v51 }
 0x220   :  { %v719_v54 = vmul.f32 %v3508_v62, %v612_v37  ;;  %v3510_v4 = vpop.eup %3509 }
 0x222   :  { %v721_v53 = vadd.f32 %v720_v2, %v719_v54 }
 0x224   :  { %3511 = vtanh.f32 %v721_v53  ;;  %v4370_v12 = vsel %vm729_vm4, %v721_v53, %v612_v37 }
 0x22e   :  { %v3512_v11 = vpop.eup %3511 }
 0x22f   :  { %v723_v44 = vmul.f32 %v3512_v11, %v3510_v4  ;;  %v847_v11 = vpop.permute.xlu1 %846 }
 0x230   :  { %vm848_vm5 = vcmp.eq.s32.totalorder %v847_v11, 1  ;;  %v4499_v11 = vld [vmem:[%s5754_s5 + $0x2c] ss:$16 sps:$4 sm:$0xff]  }
 0x231   :  { %v4375_v0 = vsel %vm729_vm4, %v723_v44, %v611_v3 }
 0x232   :  { %v732_v6 = vpack.c.bf16 %v4375_v0, %v4375_v0 }
 0x234   :  { %766 = vmatmul.mubr.bf16.vlgmr.msra.gmra.mrb[24].mxu0 %v732_v6  ;;  %807 = vmatmul.mubr.bf16.vlgmr.msra.gmra.mrb[24].mxu1 %v732_v6 }
 0x235   :  { %853 = vmatpush1.bf16.msra.mxu0 %v3908_v9  ;;  %894 = vmatpush1.bf16.msra.mxu1 %v3944_v16 }
 0x236   :  { %854 = vmatprep.subr.bf16.mxu0 %v3914_v10  ;;  %895 = vmatprep.subr.bf16.mxu1 %v3958_v19 }
 0x237   :  { %884 = vmatprep.mubr.bf16.mxu0 %v5797_v63  ;;  %925 = vmatprep.mubr.bf16.mxu1 %v5797_v63 }
 0x239   :  { %855 = vmatpush1.bf16.msra.mxu0 %v3926_v13  ;;  %896 = vmatpush1.bf16.msra.mxu1 %v3972_v21 }
 0x23a   :  { %856 = vmatprep.subr.bf16.mxu0 %v3933_v14  ;;  %897 = vmatprep.subr.bf16.mxu1 %v3985_v23 }
 0x23d   :  { %857 = vmatpush1.bf16.msra.mxu0 %v3952_v18  ;;  %898 = vmatpush1.bf16.msra.mxu1 %v3999_v25 }
 0x23e   :  { %858 = vmatprep.subr.bf16.mxu0 %v3965_v20  ;;  %899 = vmatprep.subr.bf16.mxu1 %v4005_v26 }
 0x241   :  { %859 = vmatpush1.bf16.msra.mxu0 %v3980_v22  ;;  %900 = vmatpush1.bf16.msra.mxu1 %v4027_v30 }
 0x242   :  { %860 = vmatprep.subr.bf16.mxu0 %v3992_v24  ;;  %901 = vmatprep.subr.bf16.mxu1 %v4034_v31 }
 0x245   :  { %861 = vmatpush1.bf16.msra.mxu0 %v4015_v28  ;;  %902 = vmatpush1.bf16.msra.mxu1 %v4054_v34 }
 0x246   :  { %862 = vmatprep.subr.bf16.mxu0 %v4020_v29  ;;  %903 = vmatprep.subr.bf16.mxu1 %v4060_v35 }
 0x249   :  { %863 = vmatpush1.bf16.msra.mxu0 %v4041_v32  ;;  %904 = vmatpush1.bf16.msra.mxu1 %v4088_v40 }
 0x24a   :  { %864 = vmatprep.subr.bf16.mxu0 %v4047_v33  ;;  %905 = vmatprep.subr.bf16.mxu1 %v4097_v42 }
 0x24d   :  { %865 = vmatpush1.bf16.msra.mxu0 %v4075_v38  ;;  %906 = vmatpush1.bf16.msra.mxu1 %v4113_v45 }
 0x24e   :  { %866 = vmatprep.subr.bf16.mxu0 %v4083_v39  ;;  %907 = vmatprep.subr.bf16.mxu1 %v4120_v46 }
 0x251   :  { %867 = vmatpush1.bf16.msra.mxu0 %v4104_v43  ;;  %908 = vmatpush1.bf16.msra.mxu1 %v4129_v48 }
 0x252   :  { %971 = vmatprep.subr.bf16.mxu0 %v3894_v5  ;;  %1012 = vmatprep.subr.bf16.mxu1 %v3939_v15 }
 0x307   :  { %v767_v36 = vpop.f32.mrb[24].mxu0  ;;  %v808_v1 = vpop.f32.mrb[24].mxu1 }
 0x308   :  { %v815_v27 = vadd.f32 %v767_v36, %v4267_v47  ;;  %v817_v49 = vadd.f32 %v808_v1, %v4279_v59  ;;  %v769_v55 = vpop.f32.mrb[25].mxu0  ;;  %v810_v60 = vpop.f32.mrb[25].mxu1 }
 0x309   :  { %v816_v17 = vadd.f32 %v769_v55, %v4270_v56  ;;  %v818_v61 = vadd.f32 %v810_v60, %v5798_v50  ;;  %v771_v57 = vpop.f32.mrb[26].mxu0  ;;  %v812_v8 = vpop.f32.mrb[26].mxu1 }
 0x30a   :  { %v3094_v52 = vmul.f32 -1.442695, %v815_v27  ;;  %v772_v51 = vpop.f32.mrb[27].mxu0  ;;  %v813_v58 = vpop.f32.mrb[27].mxu1 }
 0x30b   :  { %v3095_v5 = vmul.f32 -1.442695, %v816_v17  ;;  %v3096_v62 = vmul.f32 -1.442695, %v818_v61 }
 0x30c   :  { %3513 = vpow2.f32 %v3094_v52 }
 0x30d   :  { %3515 = vpow2.f32 %v3095_v5 }
 0x30e   :  { %3517 = vpow2.f32 %v3096_v62  ;;  %v966_v62 = vpop.permute.xlu1 %965 }
 0x30f   :  { %3519 = vtanh.f32 %v817_v49  ;;  %vm967_vm6 = vcmp.eq.s32.totalorder %v966_v62, 1 }
 0x316   :  { %v3514_v37 = vpop.eup %3513 }
 0x317   :  { %v3516_v2 = vpop.eup %3515  ;;  %v822_v47 = vadd.f32 1.0, %v3514_v37 }
 0x318   :  { %v828_v59 = vadd.f32 1.0, %v3516_v2  ;;  %v3518_v56 = vpop.eup %3517 }
 0x319   :  { %3521 = vrcp.f32 %v822_v47  ;;  %v3520_v41 = vpop.eup %3519  ;;  %v835_v53 = vadd.f32 1.0, %v3518_v56 }
 0x31a   :  { %3523 = vrcp.f32 %v828_v59 }
 0x31b   :  { %3525 = vrcp.f32 %v835_v53  ;;  %v4487_v53 = vld [vmem:[%s5754_s5 + $0x8] ss:$16 sps:$4 sm:$0xff]  }
 0x323   :  { %v3522_v54 = vpop.eup %3521 }
 0x324   :  { %v3524_v7 = vpop.eup %3523  ;;  %v839_v4 = vmul.f32 %v3522_v54, %v3520_v41 }
 0x325   :  { %v838_v44 = vmul.f32 %v3524_v7, %v4370_v12  ;;  %v3526_v36 = vpop.eup %3525  ;;  %v4481_v7 = vld [vmem:[%s5754_s5] ss:$16 sps:$4 sm:$0xff]  }
 0x327   :  { %v840_v3 = vadd.f32 %v839_v4, %v838_v44  ;;  %v4493_v4 = vld [vmem:[%s5754_s5 + $0x24] ss:$16 sps:$4 sm:$0xff]   ;;  %v4507_v44 = vld [vmem:[%s5754_s5 + $0x20] ss:$16 sps:$4 sm:$0xff]  }
 0x329   :  { %3527 = vtanh.f32 %v840_v3  ;;  %v4419_v6 = vsel %vm848_vm5, %v840_v3, %v4370_v12  ;;  %v4513_v3 = vld [vmem:[%s5754_s5 + $0x28] ss:$16 sps:$4 sm:$0xff]  }
 0x333   :  { %v3528_v1 = vpop.eup %3527 }
 0x334   :  { %v842_v27 = vmul.f32 %v3528_v1, %v3526_v36  ;;  %v4525_v36 = vld [vmem:[%s5754_s5 + $0x4c] ss:$16 sps:$4 sm:$0xff]   ;;  %v4531_v1 = vld [vmem:[%s5754_s5 + $0x40] ss:$16 sps:$4 sm:$0xff]  }
 0x336   :  { %v4422_v49 = vsel %vm848_vm5, %v842_v27, %v4375_v0  ;;  %v4537_v27 = vld [vmem:[%s5754_s5 + $0x48] ss:$16 sps:$4 sm:$0xff]  }
 0x337   :  { %v851_v55 = vpack.c.bf16 %v4422_v49, %v4422_v49 }
 0x339   :  { %885 = vmatmul.mubr.bf16.vlgmr.msra.gmra.mrb[28].mxu0 %v851_v55  ;;  %926 = vmatmul.mubr.bf16.vlgmr.msra.gmra.mrb[28].mxu1 %v851_v55  ;;  %v4549_v55 = vld [vmem:[%s5754_s5 + $0x6c] ss:$16 sps:$4 sm:$0xff]  }
 0x33a   :  { %972 = vmatpush1.bf16.msra.mxu0 %v3908_v9  ;;  %1013 = vmatpush1.bf16.msra.mxu1 %v3944_v16  ;;  %v4461_v9 = vld [vmem:[%s5754_s5 + $0x4] ss:$16 sps:$4 sm:$0xff]  }
 0x33b   :  { %973 = vmatprep.subr.bf16.mxu0 %v3914_v10  ;;  %1014 = vmatprep.subr.bf16.mxu1 %v3958_v19 }
 0x33c   :  { %1003 = vmatprep.mubr.bf16.mxu0 %v5797_v63  ;;  %1044 = vmatprep.mubr.bf16.mxu1 %v5797_v63 }
 0x33e   :  { %974 = vmatpush1.bf16.msra.mxu0 %v3926_v13  ;;  %1015 = vmatpush1.bf16.msra.mxu1 %v3972_v21 }
 0x33f   :  { %975 = vmatprep.subr.bf16.mxu0 %v3933_v14  ;;  %1016 = vmatprep.subr.bf16.mxu1 %v3985_v23  ;;  %v5799_v14 = vld [vmem:[#allocation18_spill] sm:$0xff] }
 0x342   :  { %976 = vmatpush1.bf16.msra.mxu0 %v3952_v18  ;;  %1017 = vmatpush1.bf16.msra.mxu1 %v3999_v25  ;;  %v5800_v18 = vld [vmem:[#allocation21_spill] sm:$0xff] }
 0x343   :  { %977 = vmatprep.subr.bf16.mxu0 %v3965_v20  ;;  %1018 = vmatprep.subr.bf16.mxu1 %v4005_v26 }
 0x346   :  { %978 = vmatpush1.bf16.msra.mxu0 %v3980_v22  ;;  %1019 = vmatpush1.bf16.msra.mxu1 %v4027_v30  ;;  %v5801_v22 = vld [vmem:[#allocation20_spill] sm:$0xff] }
 0x347   :  { %979 = vmatprep.subr.bf16.mxu0 %v3992_v24  ;;  %1020 = vmatprep.subr.bf16.mxu1 %v4034_v31  ;;  %v5802_v24 = vld [vmem:[#allocation22_spill] sm:$0xff] }
 0x34a   :  { %980 = vmatpush1.bf16.msra.mxu0 %v4015_v28  ;;  %1021 = vmatpush1.bf16.msra.mxu1 %v4054_v34 }
 0x34b   :  { %981 = vmatprep.subr.bf16.mxu0 %v4020_v29  ;;  %1022 = vmatprep.subr.bf16.mxu1 %v4060_v35 }
 0x34e   :  { %982 = vmatpush1.bf16.msra.mxu0 %v4041_v32  ;;  %1023 = vmatpush1.bf16.msra.mxu1 %v4088_v40 }
 0x34f   :  { %983 = vmatprep.subr.bf16.mxu0 %v4047_v33  ;;  %1024 = vmatprep.subr.bf16.mxu1 %v4097_v42 }
 0x352   :  { %984 = vmatpush1.bf16.msra.mxu0 %v4075_v38  ;;  %1025 = vmatpush1.bf16.msra.mxu1 %v4113_v45 }
 0x353   :  { %985 = vmatprep.subr.bf16.mxu0 %v4083_v39  ;;  %1026 = vmatprep.subr.bf16.mxu1 %v4120_v46 }
 0x356   :  { %986 = vmatpush1.bf16.msra.mxu0 %v4104_v43  ;;  %1027 = vmatpush1.bf16.msra.mxu1 %v4129_v48 }
 0x357   :  { %1090 = vmatprep.subr.bf16.mxu0 %v4461_v9  ;;  %1131 = vmatprep.subr.bf16.mxu1 %v3939_v15 }
 0x40c   :  { %v886_v10 = vpop.f32.mrb[28].mxu0  ;;  %v927_v13 = vpop.f32.mrb[28].mxu1 }
 0x40d   :  { %v934_v16 = vadd.f32 %v886_v10, %v5799_v14  ;;  %v936_v19 = vadd.f32 %v927_v13, %v5800_v18  ;;  %v888_v20 = vpop.f32.mrb[29].mxu0  ;;  %v929_v21 = vpop.f32.mrb[29].mxu1  ;;  %v4555_v10 = vld [vmem:[%s5754_s5 + $0x60] ss:$16 sps:$4 sm:$0xff]   ;;  %v4561_v13 = vld [vmem:[%s5754_s5 + $0x68] ss:$16 sps:$4 sm:$0xff]  }
 0x40e   :  { %v935_v23 = vadd.f32 %v888_v20, %v5801_v22  ;;  %v937_v25 = vadd.f32 %v929_v21, %v5802_v24  ;;  %v890_v26 = vpop.f32.mrb[30].mxu0  ;;  %v931_v28 = vpop.f32.mrb[30].mxu1  ;;  %v4567_v14 = vld [vmem:[%s5754_s5 + $0x84] ss:$16 sps:$4 sm:$0xff]   ;;  %v4579_v18 = vld [vmem:[%s5754_s5 + $0x80] ss:$16 sps:$4 sm:$0xff]  }
 0x40f   :  { %v3097_v29 = vmul.f32 -1.442695, %v934_v16  ;;  %v891_v30 = vpop.f32.mrb[31].mxu0  ;;  %v932_v31 = vpop.f32.mrb[31].mxu1  ;;  %v4573_v16 = vld [vmem:[%s5754_s5 + $0x8c] ss:$16 sps:$4 sm:$0xff]  }
 0x410   :  { %v3098_v12 = vmul.f32 -1.442695, %v935_v23  ;;  %v3099_v15 = vmul.f32 -1.442695, %v937_v25 }
 0x411   :  { %3529 = vpow2.f32 %v3097_v29 }
 0x412   :  { %3531 = vpow2.f32 %v3098_v12 }
 0x413   :  { %3533 = vpow2.f32 %v3099_v15 }
 0x414   :  { %3535 = vtanh.f32 %v936_v19  ;;  %v4586_v19 = vld [vmem:[%s5754_s5 + $0xa4] ss:$16 sps:$4 sm:$0xff]  }
 0x41b   :  { %v3530_v0 = vpop.eup %3529 }
 0x41c   :  { %v3532_v60 = vpop.eup %3531  ;;  %v941_v17 = vadd.f32 1.0, %v3530_v0 }
 0x41d   :  { %v947_v50 = vadd.f32 1.0, %v3532_v60  ;;  %v3534_v61 = vpop.eup %3533 }
 0x41e   :  { %3537 = vrcp.f32 %v941_v17  ;;  %v3536_v57 = vpop.eup %3535  ;;  %v954_v58 = vadd.f32 1.0, %v3534_v61 }
 0x41f   :  { %3539 = vrcp.f32 %v947_v50 }
 0x420   :  { %3541 = vrcp.f32 %v954_v58 }
 0x428   :  { %v3538_v8 = vpop.eup %3537 }
 0x429   :  { %v3540_v52 = vpop.eup %3539  ;;  %v958_v51 = vmul.f32 %v3538_v8, %v3536_v57  ;;  %v1085_v8 = vpop.permute.xlu0 %1084 }
 0x42a   :  { %v957_v5 = vmul.f32 %v3540_v52, %v4419_v6  ;;  %v3542_v47 = vpop.eup %3541  ;;  %vm1086_vm7 = vcmp.eq.s32.totalorder %v1085_v8, 1 }
 0x42c   :  { %v959_v37 = vadd.f32 %v958_v51, %v957_v5 }
 0x42e   :  { %3543 = vtanh.f32 %v959_v37  ;;  %v4471_v2 = vsel %vm967_vm6, %v959_v37, %v4419_v6  ;;  %v4519_v6 = vld [vmem:[%s5754_s5 + $0x44] ss:$16 sps:$4 sm:$0xff]  }
 0x438   :  { %v3544_v59 = vpop.eup %3543 }
 0x439   :  { %v961_v56 = vmul.f32 %v3544_v59, %v3542_v47  ;;  %v4649_v59 = vld [vmem:[%s5754_s5 + $0xac] ss:$16 sps:$4 sm:$0xff]  }
 0x43b   :  { %v4474_v41 = vsel %vm967_vm6, %v961_v56, %v4422_v49  ;;  %v4543_v49 = vld [vmem:[%s5754_s5 + $0x64] ss:$16 sps:$4 sm:$0xff]   ;;  %v4655_v56 = vld [vmem:[%s5754_s5 + $0xa0] ss:$16 sps:$4 sm:$0xff]  }
 0x43c   :  { %v970_v54 = vpack.c.bf16 %v4474_v41, %v4474_v41 }
 0x43e   :  { %1004 = vmatmul.mubr.bf16.vlgmr.msra.gmra.mrb[32].mxu0 %v970_v54  ;;  %1045 = vmatmul.mubr.bf16.vlgmr.msra.gmra.mrb[32].mxu1 %v970_v54  ;;  %v4667_v54 = vld [vmem:[%s5754_s5 + $0xc4] ss:$16 sps:$4 sm:$0xff]  }
 0x43f   :  { %1091 = vmatpush1.bf16.msra.mxu0 %v4481_v7  ;;  %1132 = vmatpush1.bf16.msra.mxu1 %v4487_v53 }
 0x440   :  { %1092 = vmatprep.subr.bf16.mxu0 %v4493_v4  ;;  %1133 = vmatprep.subr.bf16.mxu1 %v4499_v11 }
 0x441   :  { %1122 = vmatprep.mubr.bf16.mxu0 %v5797_v63  ;;  %1163 = vmatprep.mubr.bf16.mxu1 %v5797_v63 }
 0x443   :  { %1093 = vmatpush1.bf16.msra.mxu0 %v4507_v44  ;;  %1134 = vmatpush1.bf16.msra.mxu1 %v4513_v3 }
 0x444   :  { %1094 = vmatprep.subr.bf16.mxu0 %v4519_v6  ;;  %1135 = vmatprep.subr.bf16.mxu1 %v4525_v36 }
 0x447   :  { %1095 = vmatpush1.bf16.msra.mxu0 %v4531_v1  ;;  %1136 = vmatpush1.bf16.msra.mxu1 %v4537_v27 }
 0x448   :  { %1096 = vmatprep.subr.bf16.mxu0 %v4543_v49  ;;  %1137 = vmatprep.subr.bf16.mxu1 %v4549_v55 }
 0x44b   :  { %1097 = vmatpush1.bf16.msra.mxu0 %v4555_v10  ;;  %1138 = vmatpush1.bf16.msra.mxu1 %v4561_v13 }
 0x44c   :  { %1098 = vmatprep.subr.bf16.mxu0 %v4567_v14  ;;  %1139 = vmatprep.subr.bf16.mxu1 %v4573_v16 }
 0x44f   :  { %1099 = vmatpush1.bf16.msra.mxu0 %v4579_v18  ;;  %1140 = vmatpush1.bf16.msra.mxu1 %v4054_v34 }
 0x450   :  { %1100 = vmatprep.subr.bf16.mxu0 %v4586_v19  ;;  %1141 = vmatprep.subr.bf16.mxu1 %v4060_v35  ;;  %v5803_v35 = vld [vmem:[#allocation13_spill] sm:$0xff] }
 0x453   :  { %1101 = vmatpush1.bf16.msra.mxu0 %v4041_v32  ;;  %1142 = vmatpush1.bf16.msra.mxu1 %v4088_v40  ;;  %v4604_v32 = vld [vmem:[%s5754_s5 + $0xc] ss:$16 sps:$4 sm:$0xff]  }
 0x454   :  { %1102 = vmatprep.subr.bf16.mxu0 %v4047_v33  ;;  %1143 = vmatprep.subr.bf16.mxu1 %v4097_v42 }
 0x457   :  { %1103 = vmatpush1.bf16.msra.mxu0 %v4075_v38  ;;  %1144 = vmatpush1.bf16.msra.mxu1 %v4113_v45 }
 0x458   :  { %1104 = vmatprep.subr.bf16.mxu0 %v4083_v39  ;;  %1145 = vmatprep.subr.bf16.mxu1 %v4120_v46  ;;  %v5804_v39 = vld [vmem:[#allocation17_spill] sm:$0xff] }
 0x45b   :  { %1105 = vmatpush1.bf16.msra.mxu0 %v4104_v43  ;;  %1146 = vmatpush1.bf16.msra.mxu1 %v4129_v48  ;;  %v5805_v43 = vld [vmem:[#allocation14_spill] sm:$0xff]  ;;  %v5806_v48 = vld [vmem:[#allocation19_spill] sm:$0xff] }
 0x45c   :  { %1209 = vmatprep.subr.bf16.mxu0 %v4461_v9  ;;  %1250 = vmatprep.subr.bf16.mxu1 %v4604_v32 }
 0x511   :  { %v1005_v33 = vpop.f32.mrb[32].mxu0  ;;  %v1046_v34 = vpop.f32.mrb[32].mxu1 }
 0x512   :  { %v1053_v38 = vadd.f32 %v1005_v33, %v5803_v35  ;;  %v1055_v40 = vadd.f32 %v1046_v34, %v5804_v39  ;;  %v1007_v42 = vpop.f32.mrb[33].mxu0  ;;  %v1048_v45 = vpop.f32.mrb[33].mxu1  ;;  %v4673_v33 = vld [vmem:[%s5754_s5 + $0xcc] ss:$16 sps:$4 sm:$0xff]   ;;  %v4679_v34 = vld [vmem:[%s5754_s5 + $0xc0] ss:$16 sps:$4 sm:$0xff]  }
 0x513   :  { %v1054_v46 = vadd.f32 %v1007_v42, %v5805_v43  ;;  %v1056_v20 = vadd.f32 %v1048_v45, %v5806_v48  ;;  %v1009_v21 = vpop.f32.mrb[34].mxu0  ;;  %v1050_v22 = vpop.f32.mrb[34].mxu1  ;;  %v4685_v35 = vld [vmem:[%s5754_s5 + $0xc8] ss:$16 sps:$4 sm:$0xff]   ;;  %v4697_v39 = vld [vmem:[%s5754_s5 + $0xec] ss:$16 sps:$4 sm:$0xff]  }
 0x514   :  { %v3100_v23 = vmul.f32 -1.442695, %v1053_v38  ;;  %v1010_v24 = vpop.f32.mrb[35].mxu0  ;;  %v1051_v25 = vpop.f32.mrb[35].mxu1  ;;  %v4691_v38 = vld [vmem:[%s5754_s5 + $0xe4] ss:$16 sps:$4 sm:$0xff]  }
 0x515   :  { %v3101_v26 = vmul.f32 -1.442695, %v1054_v46  ;;  %v3102_v28 = vmul.f32 -1.442695, %v1056_v20  ;;  %v4709_v42 = vld [vmem:[%s5754_s5 + $0xe8] ss:$16 sps:$4 sm:$0xff]  }
 0x516   :  { %3545 = vpow2.f32 %v3100_v23  ;;  %v5807_v46 = vld [vmem:[#allocation10_spill] sm:$0xff]  ;;  %v5808_v20 = vld [vmem:[#allocation15_spill] sm:$0xff]  ;;  %v5809_v24 = vld [vmem:[#allocation12_spill] sm:$0xff] }
 0x517   :  { %3547 = vpow2.f32 %v3101_v26  ;;  %v5810_v26 = vld [vmem:[#allocation16_spill] sm:$0xff] }
 0x518   :  { %3549 = vpow2.f32 %v3102_v28 }
 0x519   :  { %3551 = vtanh.f32 %v1055_v40  ;;  %v4703_v40 = vld [vmem:[%s5754_s5 + $0xe0] ss:$16 sps:$4 sm:$0xff]  }
 0x520   :  { %v3546_v29 = vpop.eup %3545 }
 0x521   :  { %v3548_v30 = vpop.eup %3547  ;;  %v1060_v31 = vadd.f32 1.0, %v3546_v29 }
 0x522   :  { %v1066_v12 = vadd.f32 1.0, %v3548_v30  ;;  %v3550_v15 = vpop.eup %3549 }
 0x523   :  { %3553 = vrcp.f32 %v1060_v31  ;;  %v3552_v0 = vpop.eup %3551  ;;  %v1073_v61 = vadd.f32 1.0, %v3550_v15 }
 0x524   :  { %3555 = vrcp.f32 %v1066_v12 }
 0x525   :  { %3557 = vrcp.f32 %v1073_v61 }
 0x52d   :  { %v3554_v60 = vpop.eup %3553 }
 0x52e   :  { %v3556_v17 = vpop.eup %3555  ;;  %v1077_v50 = vmul.f32 %v3554_v60, %v3552_v0 }
 0x52f   :  { %v1076_v57 = vmul.f32 %v3556_v17, %v4471_v2  ;;  %v3558_v58 = vpop.eup %3557 }
 0x531   :  { %v1078_v52 = vadd.f32 %v1077_v50, %v1076_v57 }
 0x533   :  { %3559 = vtanh.f32 %v1078_v52  ;;  %v4613_v51 = vsel %vm1086_vm7, %v1078_v52, %v4471_v2  ;;  %v4642_v2 = vld [vmem:[%s5754_s5 + $0x88] ss:$16 sps:$4 sm:$0xff]  }
 0x53d   :  { %v3560_v5 = vpop.eup %3559 }
 0x53e   :  { %v1080_v62 = vmul.f32 %v3560_v5, %v3558_v58 }
 0x540   :  { %v4616_v37 = vsel %vm1086_vm7, %v1080_v62, %v4474_v41  ;;  %v4661_v41 = vld [vmem:[%s5754_s5 + $0xa8] ss:$16 sps:$4 sm:$0xff]  }
 0x541   :  { %v1089_v47 = vpack.c.bf16 %v4616_v37, %v4616_v37 }
 0x543   :  { %1123 = vmatmul.mubr.bf16.vlgmr.msra.gmra.mrb[36].mxu0 %v1089_v47  ;;  %1164 = vmatmul.mubr.bf16.vlgmr.msra.gmra.mrb[36].mxu1 %v1089_v47  ;;  %v1204_v47 = vpop.permute.xlu1 %1203 }
 0x544   :  { %1210 = vmatpush1.bf16.msra.mxu0 %v4481_v7  ;;  %1251 = vmatpush1.bf16.msra.mxu1 %v4487_v53  ;;  %vm1205_vm8 = vcmp.eq.s32.totalorder %v1204_v47, 1  ;;  %v4852_v47 = vld [vmem:[%s5760_s8 + $0x28] ss:$16 sps:$4 sm:$0xff]  }
 0x545   :  { %1211 = vmatprep.subr.bf16.mxu0 %v4493_v4  ;;  %1252 = vmatprep.subr.bf16.mxu1 %v4499_v11 }
 0x546   :  { %1241 = vmatprep.mubr.bf16.mxu0 %v5797_v63  ;;  %1282 = vmatprep.mubr.bf16.mxu1 %v5797_v63 }
 0x548   :  { %1212 = vmatpush1.bf16.msra.mxu0 %v4507_v44  ;;  %1253 = vmatpush1.bf16.msra.mxu1 %v4513_v3 }
 0x549   :  { %1213 = vmatprep.subr.bf16.mxu0 %v4519_v6  ;;  %1254 = vmatprep.subr.bf16.mxu1 %v4525_v36 }
 0x54c   :  { %1214 = vmatpush1.bf16.msra.mxu0 %v4531_v1  ;;  %1255 = vmatpush1.bf16.msra.mxu1 %v4537_v27 }
 0x54d   :  { %1215 = vmatprep.subr.bf16.mxu0 %v4543_v49  ;;  %1256 = vmatprep.subr.bf16.mxu1 %v4549_v55 }
 0x550   :  { %1216 = vmatpush1.bf16.msra.mxu0 %v4555_v10  ;;  %1257 = vmatpush1.bf16.msra.mxu1 %v4561_v13 }
 0x551   :  { %1217 = vmatprep.subr.bf16.mxu0 %v4567_v14  ;;  %1258 = vmatprep.subr.bf16.mxu1 %v4573_v16 }
 0x554   :  { %1218 = vmatpush1.bf16.msra.mxu0 %v4579_v18  ;;  %1259 = vmatpush1.bf16.msra.mxu1 %v4642_v2 }
 0x555   :  { %1219 = vmatprep.subr.bf16.mxu0 %v4586_v19  ;;  %1260 = vmatprep.subr.bf16.mxu1 %v4649_v59 }
 0x558   :  { %1220 = vmatpush1.bf16.msra.mxu0 %v4655_v56  ;;  %1261 = vmatpush1.bf16.msra.mxu1 %v4661_v41 }
 0x559   :  { %1221 = vmatprep.subr.bf16.mxu0 %v4667_v54  ;;  %1262 = vmatprep.subr.bf16.mxu1 %v4673_v33 }
 0x55c   :  { %1222 = vmatpush1.bf16.msra.mxu0 %v4679_v34  ;;  %1263 = vmatpush1.bf16.msra.mxu1 %v4685_v35 }
 0x55d   :  { %1223 = vmatprep.subr.bf16.mxu0 %v4691_v38  ;;  %1264 = vmatprep.subr.bf16.mxu1 %v4697_v39 }
 0x560   :  { %1224 = vmatpush1.bf16.msra.mxu0 %v4703_v40  ;;  %1265 = vmatpush1.bf16.msra.mxu1 %v4709_v42 }
 0x561   :  { %1328 = vmatprep.subr.bf16.mxu0 %v4461_v9  ;;  %1369 = vmatprep.subr.bf16.mxu1 %v4604_v32 }
 0x616   :  { %v1124_v45 = vpop.f32.mrb[36].mxu0  ;;  %v1165_v43 = vpop.f32.mrb[36].mxu1 }
 0x617   :  { %v1172_v48 = vadd.f32 %v1124_v45, %v5807_v46  ;;  %v1174_v21 = vadd.f32 %v1165_v43, %v5808_v20  ;;  %v1126_v22 = vpop.f32.mrb[37].mxu0  ;;  %v1167_v23 = vpop.f32.mrb[37].mxu1 }
 0x618   :  { %v1173_v25 = vadd.f32 %v1126_v22, %v5809_v24  ;;  %v1175_v28 = vadd.f32 %v1167_v23, %v5810_v26  ;;  %v1128_v29 = vpop.f32.mrb[38].mxu0  ;;  %v1169_v30 = vpop.f32.mrb[38].mxu1 }
 0x619   :  { %v3103_v31 = vmul.f32 -1.442695, %v1172_v48  ;;  %v1129_v12 = vpop.f32.mrb[39].mxu0  ;;  %v1170_v15 = vpop.f32.mrb[39].mxu1 }
 0x61a   :  { %v3104_v9 = vmul.f32 -1.442695, %v1173_v25  ;;  %v3105_v32 = vmul.f32 -1.442695, %v1175_v28  ;;  %v1323_v23 = vpop.permute.xlu0 %1322  ;;  %v3422_v15 = vld [vmem:[%s5758_s7 + $0x24] ss:$16 sps:$4 sm:$0xff]  }
 0x61b   :  { %3561 = vpow2.f32 %v3103_v31  ;;  %vm1324_vm9 = vcmp.eq.s32.totalorder %v1323_v23, 1  ;;  %v3417_v31 = vld [vmem:[%s5758_s7] ss:$16 sps:$4 sm:$0xff]  }
 0x61c   :  { %3563 = vpow2.f32 %v3104_v9  ;;  %v3426_v9 = vld [vmem:[%s5758_s7 + $0x8] ss:$16 sps:$4 sm:$0xff]  }
 0x61d   :  { %3565 = vpow2.f32 %v3105_v32  ;;  %v3434_v32 = vld [vmem:[%s5758_s7 + $0x2c] ss:$16 sps:$4 sm:$0xff]  }
 0x61e   :  { %3567 = vtanh.f32 %v1174_v21 }
 0x625   :  { %v3562_v0 = vpop.eup %3561 }
 0x626   :  { %v3564_v60 = vpop.eup %3563  ;;  %v1179_v17 = vadd.f32 1.0, %v3562_v0  ;;  %v3420_v0 = vld [vmem:[%s5758_s7 + $0x20] ss:$16 sps:$4 sm:$0xff]  }
 0x627   :  { %v1185_v50 = vadd.f32 1.0, %v3564_v60  ;;  %v3566_v61 = vpop.eup %3565  ;;  %v4797_v60 = vld [vmem:[%s5760_s8 + $0x4] ss:$16 sps:$4 sm:$0xff]  }
 0x628   :  { %3569 = vrcp.f32 %v1179_v17  ;;  %v3568_v57 = vpop.eup %3567  ;;  %v1192_v5 = vadd.f32 1.0, %v3566_v61  ;;  %v3432_v17 = vld [vmem:[%s5758_s7 + $0x28] ss:$16 sps:$4 sm:$0xff]   ;;  %v3423_v61 = vld [vmem:[%s5759_s3] sm:$0xff]  }
 0x629   :  { %3571 = vrcp.f32 %v1185_v50  ;;  %v4806_v50 = vld [vmem:[%s5760_s8 + $0xc] ss:$16 sps:$4 sm:$0xff]  }
 0x62a   :  { %3573 = vrcp.f32 %v1192_v5  ;;  %v4838_v5 = vld [vmem:[%s5760_s8 + $0x20] ss:$16 sps:$4 sm:$0xff]  }
 0x632   :  { %v3570_v8 = vpop.eup %3569 }
 0x633   :  { %v3572_v52 = vpop.eup %3571  ;;  %v1196_v58 = vmul.f32 %v3570_v8, %v3568_v57  ;;  %v4814_v57 = vld [vmem:[%s5760_s8] ss:$16 sps:$4 sm:$0xff]   ;;  %v4820_v8 = vld [vmem:[%s5760_s8 + $0x24] ss:$16 sps:$4 sm:$0xff]  }
 0x634   :  { %v1195_v62 = vmul.f32 %v3572_v52, %v4613_v51  ;;  %v3574_v46 = vpop.eup %3573  ;;  %v4826_v52 = vld [vmem:[%s5760_s8 + $0x8] ss:$16 sps:$4 sm:$0xff]  }
 0x636   :  { %v1197_v45 = vadd.f32 %v1196_v58, %v1195_v62  ;;  %v4832_v58 = vld [vmem:[%s5760_s8 + $0x2c] ss:$16 sps:$4 sm:$0xff]   ;;  %v4845_v62 = vld [vmem:[%s5760_s8 + $0x44] ss:$16 sps:$4 sm:$0xff]  }
 0x638   :  { %3575 = vtanh.f32 %v1197_v45  ;;  %v4720_v43 = vsel %vm1205_vm8, %v1197_v45, %v4613_v51  ;;  %v3436_v45 = vld [vmem:[%s5759_s3 + $0x8] sm:$0xff]  }
 0x642   :  { %v3576_v48 = vpop.eup %3575 }
 0x643   :  { %v1199_v20 = vmul.f32 %v3576_v48, %v3574_v46  ;;  %v4868_v46 = vld [vmem:[%s5760_s8 + $0x40] ss:$16 sps:$4 sm:$0xff]   ;;  %v4874_v48 = vld [vmem:[%s5760_s8 + $0x64] ss:$16 sps:$4 sm:$0xff]  }
 0x645   :  { %v4723_v21 = vsel %vm1205_vm8, %v1199_v20, %v4616_v37  ;;  %v4880_v20 = vld [vmem:[%s5760_s8 + $0x48] ss:$16 sps:$4 sm:$0xff]  }
 0x646   :  { %v1208_v22 = vpack.c.bf16 %v4723_v21, %v4723_v21 }
 0x648   :  { %1242 = vmatmul.mubr.bf16.vlgmr.msra.gmra.mrb[40].mxu0 %v1208_v22  ;;  %1283 = vmatmul.mubr.bf16.vlgmr.msra.gmra.mrb[40].mxu1 %v1208_v22  ;;  %v4893_v22 = vld [vmem:[%s5760_s8 + $0x60] ss:$16 sps:$4 sm:$0xff]  }
 0x649   :  { %1329 = vmatpush1.bf16.msra.mxu0 %v4481_v7  ;;  %1370 = vmatpush1.bf16.msra.mxu1 %v4487_v53  ;;  %v3419_v7 = vld [vmem:[%s5758_s7 + $0x4] ss:$16 sps:$4 sm:$0xff]   ;;  %v3428_v53 = vld [vmem:[%s5758_s7 + $0xc] ss:$16 sps:$4 sm:$0xff]  }
 0x64a   :  { %1330 = vmatprep.subr.bf16.mxu0 %v4493_v4  ;;  %1371 = vmatprep.subr.bf16.mxu1 %v4499_v11 }
 0x64b   :  { %1360 = vmatprep.mubr.bf16.mxu0 %v5797_v63  ;;  %1401 = vmatprep.mubr.bf16.mxu1 %v5797_v63 }
 0x64d   :  { %1331 = vmatpush1.bf16.msra.mxu0 %v4507_v44  ;;  %1372 = vmatpush1.bf16.msra.mxu1 %v4513_v3  ;;  %v5811_v44 = vld [vmem:[#allocation5_spill] sm:$0xff] }
 0x64e   :  { %1332 = vmatprep.subr.bf16.mxu0 %v4519_v6  ;;  %1373 = vmatprep.subr.bf16.mxu1 %v4525_v36  ;;  %v5812_v6 = vld [vmem:[#allocation9_spill] sm:$0xff] }
 0x651   :  { %1333 = vmatpush1.bf16.msra.mxu0 %v4531_v1  ;;  %1374 = vmatpush1.bf16.msra.mxu1 %v4537_v27 }
 0x652   :  { %1334 = vmatprep.subr.bf16.mxu0 %v4543_v49  ;;  %1375 = vmatprep.subr.bf16.mxu1 %v4549_v55  ;;  %v5813_v49 = vld [vmem:[#allocation6_spill] sm:$0xff] }
 0x655   :  { %1335 = vmatpush1.bf16.msra.mxu0 %v4555_v10  ;;  %1376 = vmatpush1.bf16.msra.mxu1 %v4561_v13  ;;  %v5814_v10 = vld [vmem:[#allocation11_spill] sm:$0xff] }
 0x656   :  { %1336 = vmatprep.subr.bf16.mxu0 %v4567_v14  ;;  %1377 = vmatprep.subr.bf16.mxu1 %v4573_v16 }
 0x659   :  { %1337 = vmatpush1.bf16.msra.mxu0 %v4579_v18  ;;  %1378 = vmatpush1.bf16.msra.mxu1 %v4642_v2 }
 0x65a   :  { %1338 = vmatprep.subr.bf16.mxu0 %v4586_v19  ;;  %1379 = vmatprep.subr.bf16.mxu1 %v4649_v59 }
 0x65d   :  { %1339 = vmatpush1.bf16.msra.mxu0 %v4655_v56  ;;  %1380 = vmatpush1.bf16.msra.mxu1 %v4661_v41 }
 0x65e   :  { %1340 = vmatprep.subr.bf16.mxu0 %v4667_v54  ;;  %1381 = vmatprep.subr.bf16.mxu1 %v4673_v33 }
 0x661   :  { %1341 = vmatpush1.bf16.msra.mxu0 %v4679_v34  ;;  %1382 = vmatpush1.bf16.msra.mxu1 %v4685_v35 }
 0x662   :  { %1342 = vmatprep.subr.bf16.mxu0 %v4691_v38  ;;  %1383 = vmatprep.subr.bf16.mxu1 %v4697_v39 }
 0x665   :  { %1343 = vmatpush1.bf16.msra.mxu0 %v4703_v40  ;;  %1384 = vmatpush1.bf16.msra.mxu1 %v4709_v42 }
 0x666   :  { %1555 = vmatprep.subr.bf16.mxu0 %v3419_v7  ;;  %1628 = vmatprep.subr.bf16.mxu1 %v3428_v53  ;;  %v4900_v7 = vld [vmem:[%s5760_s8 + $0x84] ss:$16 sps:$4 sm:$0xff]   ;;  %v4907_v53 = vld [vmem:[%s5760_s8 + $0x68] ss:$16 sps:$4 sm:$0xff]  }
 0x71b   :  { %v1243_v4 = vpop.f32.mrb[40].mxu0  ;;  %v1284_v11 = vpop.f32.mrb[40].mxu1 }
 0x71c   :  { %v1291_v3 = vadd.f32 %v1243_v4, %v5811_v44  ;;  %v1293_v36 = vadd.f32 %v1284_v11, %v5812_v6  ;;  %v1245_v1 = vpop.f32.mrb[41].mxu0  ;;  %v1286_v27 = vpop.f32.mrb[41].mxu1  ;;  %v3449_v4 = vld [vmem:[%s5759_s3 + $0x10] sm:$0xff]   ;;  %v4917_v11 = vld [vmem:[%s5760_s8 + $0x8c] ss:$16 sps:$4 sm:$0xff]  }
 0x71d   :  { %v1292_v55 = vadd.f32 %v1245_v1, %v5813_v49  ;;  %v1294_v13 = vadd.f32 %v1286_v27, %v5814_v10  ;;  %v1247_v14 = vpop.f32.mrb[42].mxu0  ;;  %v1288_v16 = vpop.f32.mrb[42].mxu1  ;;  %v4923_v44 = vld [vmem:[%s5760_s8 + $0x80] ss:$16 sps:$4 sm:$0xff]   ;;  %v4935_v6 = vld [vmem:[%s5760_s8 + $0x88] ss:$16 sps:$4 sm:$0xff]  }
 0x71e   :  { %v3106_v18 = vmul.f32 -1.442695, %v1291_v3  ;;  %v1248_v19 = vpop.f32.mrb[43].mxu0  ;;  %v1289_v51 = vpop.f32.mrb[43].mxu1  ;;  %v4929_v3 = vld [vmem:[%s5760_s8 + $0xa4] ss:$16 sps:$4 sm:$0xff]  }
 0x71f   :  { %v3107_v37 = vmul.f32 -1.442695, %v1292_v55  ;;  %v3108_v2 = vmul.f32 -1.442695, %v1294_v13  ;;  %v4948_v1 = vld [vmem:[%s5760_s8 + $0xa0] ss:$16 sps:$4 sm:$0xff]  }
 0x720   :  { %3577 = vpow2.f32 %v3106_v18  ;;  %v4955_v27 = vld [vmem:[%s5760_s8 + $0xc4] ss:$16 sps:$4 sm:$0xff]   ;;  %v4962_v49 = vld [vmem:[%s5760_s8 + $0xa8] ss:$16 sps:$4 sm:$0xff]   ;;  %v4972_v10 = vld [vmem:[%s5760_s8 + $0xcc] ss:$16 sps:$4 sm:$0xff]  }
 0x721   :  { %3579 = vpow2.f32 %v3107_v37  ;;  %v3462_v55 = vld [vmem:[%s5759_s3 + $0x18] sm:$0xff]   ;;  %v4978_v13 = vld [vmem:[%s5760_s8 + $0xc0] ss:$16 sps:$4 sm:$0xff]   ;;  %v4984_v14 = vld [vmem:[%s5760_s8 + $0xe4] ss:$16 sps:$4 sm:$0xff]  }
 0x722   :  { %3581 = vpow2.f32 %v3108_v2  ;;  %v4990_v16 = vld [vmem:[%s5760_s8 + $0xc8] ss:$16 sps:$4 sm:$0xff]   ;;  %v4997_v18 = vld [vmem:[%s5760_s8 + $0xec] ss:$16 sps:$4 sm:$0xff]   ;;  %v5003_v19 = vld [vmem:[%s5760_s8 + $0xe0] ss:$16 sps:$4 sm:$0xff]  }
 0x723   :  { %3583 = vtanh.f32 %v1293_v36  ;;  %v4942_v36 = vld [vmem:[%s5760_s8 + $0xac] ss:$16 sps:$4 sm:$0xff]   ;;  %v5012_v51 = vld [vmem:[%s5760_s8 + $0xe8] ss:$16 sps:$4 sm:$0xff]  }
 0x72a   :  { %v3578_v59 = vpop.eup %3577 }
 0x72b   :  { %v3580_v56 = vpop.eup %3579  ;;  %v1298_v41 = vadd.f32 1.0, %v3578_v59  ;;  %v5816_v59 = vld [vmem:[#allocation3_spill] sm:$0xff] }
 0x72c   :  { %v1304_v54 = vadd.f32 1.0, %v3580_v56  ;;  %v3582_v33 = vpop.eup %3581 }
 0x72d   :  { %3585 = vrcp.f32 %v1298_v41  ;;  %v3584_v34 = vpop.eup %3583  ;;  %v1311_v40 = vadd.f32 1.0, %v3582_v33  ;;  %v5817_v41 = vld [vmem:[#allocation7_spill] sm:$0xff] }
 0x72e   :  { %3587 = vrcp.f32 %v1304_v54 }
 0x72f   :  { %3589 = vrcp.f32 %v1311_v40 }
 0x737   :  { %v3586_v35 = vpop.eup %3585 }
 0x738   :  { %v3588_v38 = vpop.eup %3587  ;;  %v1315_v39 = vmul.f32 %v3586_v35, %v3584_v34  ;;  %v5818_v35 = vld [vmem:[#allocation4_spill] sm:$0xff] }
 0x739   :  { %v1314_v42 = vmul.f32 %v3588_v38, %v4720_v43  ;;  %v3590_v26 = vpop.eup %3589 }
 0x73b   :  { %v1316_v24 = vadd.f32 %v1315_v39, %v1314_v42  ;;  %v5819_v39 = vld [vmem:[#allocation8_spill] sm:$0xff] }
 0x73d   :  { %3591 = vtanh.f32 %v1316_v24  ;;  %v4771_v25 = vsel %vm1324_vm9, %v1316_v24, %v4720_v43  ;;  %v4862_v43 = vld [vmem:[%s5760_s8 + $0x4c] ss:$16 sps:$4 sm:$0xff]   ;;  %v1461_v24 = vld [vmem:[%s5761_s9] sm:$0xf] }
 0x747   :  { %v3592_v28 = vpop.eup %3591 }
 0x748   :  { %v1318_v29 = vmul.f32 %v3592_v28, %v3590_v26 }
 0x74a   :  { %v4774_v30 = vsel %vm1324_vm9, %v1318_v29, %v4723_v21  ;;  %v4887_v21 = vld [vmem:[%s5760_s8 + $0x6c] ss:$16 sps:$4 sm:$0xff]  }
 0x74b   :  { %5815 = vst [vmem:[#allocation23_spill] sm:$0xff] %v4774_v30  ;;  %v1327_v12 = vpack.c.bf16 %v4774_v30, %v4774_v30 }
 0x74d   :  { %1361 = vmatmul.mubr.bf16.vlgmr.msra.gmra.mrb[44].mxu0 %v1327_v12  ;;  %1402 = vmatmul.mubr.bf16.vlgmr.msra.gmra.mrb[44].mxu1 %v1327_v12  ;;  %v5820_v12 = vld [vmem:[#allocation2_spill] sm:$0xff] }
 0x74e   :  { %1556 = vmatpush1.bf16.msra.mxu0 %v3417_v31  ;;  %1587 = vmatprep.mubr.bf16.mxu0 %v5797_v63 }
 0x74f   :  { %1557 = vmatprep.subr.bf16.mxu0 %v3422_v15  ;;  %1629 = vmatpush1.bf16.msra.mxu1 %v3426_v9  ;;  %v5821_v15 = vsub.s32 0, %v5820_v12 }
 0x750   :  { %1630 = vmatprep.subr.bf16.mxu1 %v3434_v32  ;;  %1660 = vmatprep.mubr.bf16.mxu1 %v5797_v63  ;;  %v5822_v32 = vsub.s32 1, %v5820_v12 }
 0x751   :  { %v5065_v9 = vrot.slane %v1461_v24, %v5821_v15 }
 0x752   :  { %1558 = vmatpush1.bf16.msra.mxu0 %v3420_v0  ;;  %v5069_v0 = vrot.slane %v1461_v24, %v5822_v32 }
 0x753   :  { %1894 = vmatprep.subr.bf16.mxu0 %v4797_v60  ;;  %1631 = vmatpush1.bf16.msra.mxu1 %v3432_v17  ;;  %v5823_v17 = vsub.s32 2, %v5820_v12 }
 0x754   :  { %1935 = vmatprep.subr.bf16.mxu1 %v4806_v50 }
 0x755   :  { %3124 = vmatmul.mubr.msk.bf16.vlgmr.msra.gmra.mrb[48].mxu0 %vm143_vm0, %v3423_v61 }
 0x756   :  { %1895 = vmatpush1.bf16.msra.mxu0 %v4814_v57  ;;  %1597 = vmatprep.mubr.bf16.mxu0 %v5797_v63 }
 0x757   :  { %1896 = vmatprep.subr.bf16.mxu0 %v4820_v8  ;;  %3128 = vmatmul.mubr.msk.bf16.vlgmr.msra.gmra.mrb[48].mxu1 %vm143_vm0, %v3423_v61  ;;  %v5073_v61 = vrot.slane %v1461_v24, %v5823_v17 }
 0x758   :  { %1936 = vmatpush1.bf16.msra.mxu1 %v4826_v52  ;;  %1670 = vmatprep.mubr.bf16.mxu1 %v5797_v63 }
 0x759   :  { %1937 = vmatprep.subr.bf16.mxu1 %v4832_v58 }
 0x75a   :  { %1897 = vmatpush1.bf16.msra.mxu0 %v4838_v5 }
 0x75b   :  { %1898 = vmatprep.subr.bf16.mxu0 %v4845_v62 }
 0x75c   :  { %1938 = vmatpush1.bf16.msra.mxu1 %v4852_v47 }
 0x75d   :  { %3125 = vmatmul.mubr.msk.bf16.gmra.mrb[52].mxu0 %vm143_vm0, %v3436_v45  ;;  %1939 = vmatprep.subr.bf16.mxu1 %v4862_v43 }
 0x75e   :  { %1899 = vmatpush1.bf16.msra.mxu0 %v4868_v46  ;;  %1607 = vmatprep.mubr.bf16.mxu0 %v5797_v63 }
 0x75f   :  { %1900 = vmatprep.subr.bf16.mxu0 %v4874_v48  ;;  %3129 = vmatmul.mubr.msk.bf16.gmra.mrb[52].mxu1 %vm143_vm0, %v3436_v45 }
 0x760   :  { %1940 = vmatpush1.bf16.msra.mxu1 %v4880_v20  ;;  %1680 = vmatprep.mubr.bf16.mxu1 %v5797_v63 }
 0x761   :  { %1941 = vmatprep.subr.bf16.mxu1 %v4887_v21 }
 0x762   :  { %1901 = vmatpush1.bf16.msra.mxu0 %v4893_v22 }
 0x763   :  { %1902 = vmatprep.subr.bf16.mxu0 %v4900_v7 }
 0x764   :  { %1942 = vmatpush1.bf16.msra.mxu1 %v4907_v53 }
 0x765   :  { %3126 = vmatmul.mubr.msk.bf16.gmra.mrb[56].mxu0 %vm143_vm0, %v3449_v4  ;;  %1943 = vmatprep.subr.bf16.mxu1 %v4917_v11 }
 0x766   :  { %1903 = vmatpush1.bf16.msra.mxu0 %v4923_v44  ;;  %1617 = vmatprep.mubr.bf16.mxu0 %v5797_v63 }
 0x767   :  { %1904 = vmatprep.subr.bf16.mxu0 %v4929_v3  ;;  %3130 = vmatmul.mubr.msk.bf16.gmra.mrb[56].mxu1 %vm143_vm0, %v3449_v4  ;;  %v5824_v4 = vsub.s32 3, %v5820_v12 }
 0x768   :  { %1944 = vmatpush1.bf16.msra.mxu1 %v4935_v6  ;;  %1690 = vmatprep.mubr.bf16.mxu1 %v5797_v63 }
 0x769   :  { %1945 = vmatprep.subr.bf16.mxu1 %v4942_v36 }
 0x76a   :  { %1905 = vmatpush1.bf16.msra.mxu0 %v4948_v1 }
 0x76b   :  { %1906 = vmatprep.subr.bf16.mxu0 %v4955_v27 }
 0x76c   :  { %1946 = vmatpush1.bf16.msra.mxu1 %v4962_v49 }
 0x76d   :  { %3127 = vmatmul.mubr.msk.bf16.gmra.mrb[60].mxu0 %vm143_vm0, %v3462_v55  ;;  %1947 = vmatprep.subr.bf16.mxu1 %v4972_v10 }
 0x76e   :  { %1907 = vmatpush1.bf16.msra.mxu0 %v4978_v13  ;;  %1926 = vmatprep.mubr.bf16.mxu0 %v5797_v63 }
 0x76f   :  { %1908 = vmatprep.subr.bf16.mxu0 %v4984_v14  ;;  %3131 = vmatmul.mubr.msk.bf16.gmra.mrb[60].mxu1 %vm143_vm0, %v3462_v55  ;;  %v5077_v55 = vrot.slane %v1461_v24, %v5824_v4 }
 0x770   :  { %1948 = vmatpush1.bf16.msra.mxu1 %v4990_v16  ;;  %1967 = vmatprep.mubr.bf16.mxu1 %v5797_v63 }
 0x771   :  { %1949 = vmatprep.subr.bf16.mxu1 %v4997_v18 }
 0x772   :  { %1909 = vmatpush1.bf16.msra.mxu0 %v5003_v19 }
 0x773   :  { %2013 = vmatprep.subr.bf16.mxu0 %v4797_v60 }
 0x774   :  { %1950 = vmatpush1.bf16.msra.mxu1 %v5012_v51 }
 0x775   :  { %1927 = vmatmul.mubr.bf16.vlgmr.msra.gmra.mrb[64].mxu0 %v5797_v63  ;;  %2054 = vmatprep.subr.bf16.mxu1 %v4806_v50 }
 0x776   :  { %2014 = vmatpush1.bf16.msra.mxu0 %v4814_v57  ;;  %2045 = vmatprep.mubr.bf16.mxu0 %v5797_v63 }
 0x777   :  { %1968 = vmatmul.mubr.bf16.vlgmr.msra.gmra.mrb[64].mxu1 %v5797_v63  ;;  %2015 = vmatprep.subr.bf16.mxu0 %v4820_v8 }
 0x778   :  { %2055 = vmatpush1.bf16.msra.mxu1 %v4826_v52  ;;  %2086 = vmatprep.mubr.bf16.mxu1 %v5797_v63 }
 0x779   :  { %2056 = vmatprep.subr.bf16.mxu1 %v4832_v58 }
 0x77a   :  { %2016 = vmatpush1.bf16.msra.mxu0 %v4838_v5 }
 0x77b   :  { %2017 = vmatprep.subr.bf16.mxu0 %v4845_v62 }
 0x77c   :  { %2057 = vmatpush1.bf16.msra.mxu1 %v4852_v47 }
 0x77d   :  { %2058 = vmatprep.subr.bf16.mxu1 %v4862_v43 }
 0x77e   :  { %2018 = vmatpush1.bf16.msra.mxu0 %v4868_v46 }
 0x77f   :  { %2019 = vmatprep.subr.bf16.mxu0 %v4874_v48 }
 0x780   :  { %2059 = vmatpush1.bf16.msra.mxu1 %v4880_v20 }
 0x781   :  { %2060 = vmatprep.subr.bf16.mxu1 %v4887_v21 }
 0x782   :  { %2020 = vmatpush1.bf16.msra.mxu0 %v4893_v22 }
 0x783   :  { %2021 = vmatprep.subr.bf16.mxu0 %v4900_v7 }
 0x784   :  { %2061 = vmatpush1.bf16.msra.mxu1 %v4907_v53 }
 0x785   :  { %2062 = vmatprep.subr.bf16.mxu1 %v4917_v11 }
 0x786   :  { %2022 = vmatpush1.bf16.msra.mxu0 %v4923_v44 }
 0x787   :  { %2023 = vmatprep.subr.bf16.mxu0 %v4929_v3 }
 0x788   :  { %2063 = vmatpush1.bf16.msra.mxu1 %v4935_v6 }
 0x789   :  { %2064 = vmatprep.subr.bf16.mxu1 %v4942_v36 }
 0x78a   :  { %2024 = vmatpush1.bf16.msra.mxu0 %v4948_v1 }
 0x78b   :  { %2025 = vmatprep.subr.bf16.mxu0 %v4955_v27 }
 0x78c   :  { %2065 = vmatpush1.bf16.msra.mxu1 %v4962_v49 }
 0x78d   :  { %2066 = vmatprep.subr.bf16.mxu1 %v4972_v10 }
 0x78e   :  { %2026 = vmatpush1.bf16.msra.mxu0 %v4978_v13 }
 0x78f   :  { %2027 = vmatprep.subr.bf16.mxu0 %v4984_v14 }
 0x790   :  { %2067 = vmatpush1.bf16.msra.mxu1 %v4990_v16 }
 0x791   :  { %2068 = vmatprep.subr.bf16.mxu1 %v4997_v18 }
 0x792   :  { %2028 = vmatpush1.bf16.msra.mxu0 %v5003_v19 }
 0x793   :  { %2132 = vmatprep.subr.bf16.mxu0 %v4797_v60 }
 0x794   :  { %2069 = vmatpush1.bf16.msra.mxu1 %v5012_v51 }
 0x795   :  { %2173 = vmatprep.subr.bf16.mxu1 %v4806_v50 }
 0x820   :  { %v1362_v37 = vpop.f32.mrb[44].mxu0  ;;  %v1403_v2 = vpop.f32.mrb[44].mxu1 }
 0x821   :  { %v1410_v56 = vadd.f32 %v1362_v37, %v5816_v59  ;;  %v1412_v54 = vadd.f32 %v1403_v2, %v5817_v41  ;;  %v1364_v33 = vpop.f32.mrb[45].mxu0  ;;  %v1405_v34 = vpop.f32.mrb[45].mxu1 }
 0x822   :  { %v1411_v38 = vadd.f32 %v1364_v33, %v5818_v35  ;;  %v1413_v40 = vadd.f32 %v1405_v34, %v5819_v39  ;;  %v1366_v42 = vpop.f32.mrb[46].mxu0  ;;  %v1407_v23 = vpop.f32.mrb[46].mxu1 }
 0x823   :  { %v3109_v26 = vmul.f32 -1.442695, %v1410_v56  ;;  %v1367_v28 = vpop.f32.mrb[47].mxu0  ;;  %v1408_v29 = vpop.f32.mrb[47].mxu1 }
 0x824   :  { %v3110_v31 = vmul.f32 -1.442695, %v1411_v38  ;;  %v3111_v39 = vmul.f32 -1.442695, %v1413_v40 }
 0x825   :  { %3593 = vpow2.f32 %v3109_v26 }
 0x826   :  { %3595 = vpow2.f32 %v3110_v31 }
 0x827   :  { %3597 = vpow2.f32 %v3111_v39 }
 0x828   :  { %v1589_v45 = vpop.f32.mrb[48].mxu0  ;;  %3599 = vtanh.f32 %v1412_v54 }
 0x829   :  { %v5080_v37 = vadd.f32 %v1589_v45, %v5065_v9  ;;  %v1591_v2 = vpop.f32.mrb[49].mxu0 }
 0x82a   :  { %v5083_v59 = vadd.f32 %v1591_v2, %v5069_v0  ;;  %v1593_v56 = vpop.f32.mrb[50].mxu0  ;;  %v1662_v41 = vpop.f32.mrb[48].mxu1 }
 0x82b   :  { %5825 = vst [vmem:[#allocation18_spill] sm:$0xff] %v5080_v37  ;;  %v5086_v33 = vadd.f32 %v1593_v56, %v5065_v9  ;;  %v1595_v34 = vpop.f32.mrb[51].mxu0  ;;  %v5089_v35 = vadd.f32 %v1662_v41, %v5073_v61  ;;  %v1664_v38 = vpop.f32.mrb[49].mxu1 }
 0x82c   :  { %5826 = vst [vmem:[#allocation21_spill] sm:$0xff] %v5083_v59  ;;  %v5092_v42 = vadd.f32 %v1595_v34, %v5069_v0  ;;  %v5095_v23 = vadd.f32 %v1664_v38, %v5077_v55  ;;  %v1666_v24 = vpop.f32.mrb[50].mxu1 }
 0x82d   :  { %5827 = vst [vmem:[#allocation20_spill] sm:$0xff] %v5086_v33  ;;  %5828 = vst [vmem:[#allocation22_spill] sm:$0xff] %v5089_v35  ;;  %v5098_v26 = vadd.f32 %v1666_v24, %v5073_v61  ;;  %v1668_v28 = vpop.f32.mrb[51].mxu1 }
 0x82e   :  { %5829 = vst [vmem:[#allocation13_spill] sm:$0xff] %v5092_v42  ;;  %5830 = vst [vmem:[#allocation17_spill] sm:$0xff] %v5095_v23  ;;  %v5101_v29 = vadd.f32 %v1668_v28, %v5077_v55 }
 0x82f   :  { %5831 = vst [vmem:[#allocation14_spill] sm:$0xff] %v5098_v26  ;;  %v3594_v31 = vpop.eup %3593 }
 0x830   :  { %5832 = vst [vmem:[#allocation19_spill] sm:$0xff] %v5101_v29  ;;  %v3596_v12 = vpop.eup %3595  ;;  %v1417_v15 = vadd.f32 1.0, %v3594_v31  ;;  %v1599_v32 = vpop.f32.mrb[52].mxu0 }
 0x831   :  { %v1423_v40 = vadd.f32 1.0, %v3596_v12  ;;  %v5104_v17 = vadd.f32 %v1599_v32, %v5065_v9  ;;  %v1601_v45 = vpop.f32.mrb[53].mxu0 }
 0x832   :  { %3601 = vrcp.f32 %v1417_v15  ;;  %v5107_v4 = vadd.f32 %v1601_v45, %v5069_v0  ;;  %v1603_v2 = vpop.f32.mrb[54].mxu0  ;;  %v1672_v56 = vpop.f32.mrb[52].mxu1 }
 0x833   :  { %5833 = vst [vmem:[#allocation10_spill] sm:$0xff] %v5104_v17  ;;  %3603 = vrcp.f32 %v1423_v40  ;;  %v5110_v41 = vadd.f32 %v1603_v2, %v5065_v9  ;;  %v1605_v34 = vpop.f32.mrb[55].mxu0  ;;  %v5113_v38 = vadd.f32 %v1672_v56, %v5073_v61  ;;  %v1674_v54 = vpop.f32.mrb[53].mxu1 }
 0x834   :  { %5834 = vst [vmem:[#allocation15_spill] sm:$0xff] %v5107_v4  ;;  %v5116_v39 = vadd.f32 %v1605_v34, %v5069_v0  ;;  %v5119_v24 = vadd.f32 %v1674_v54, %v5077_v55  ;;  %v1676_v28 = vpop.f32.mrb[54].mxu1  ;;  %v3598_v2 = vpop.eup %3597 }
 0x835   :  { %5835 = vst [vmem:[#allocation12_spill] sm:$0xff] %v5110_v41  ;;  %5836 = vst [vmem:[#allocation16_spill] sm:$0xff] %v5113_v38  ;;  %v5122_v31 = vadd.f32 %v1676_v28, %v5073_v61  ;;  %v1678_v12 = vpop.f32.mrb[55].mxu1  ;;  %v3600_v23 = vpop.eup %3599  ;;  %v1430_v26 = vadd.f32 1.0, %v3598_v2 }
 0x836   :  { %5837 = vst [vmem:[#allocation5_spill] sm:$0xff] %v5116_v39  ;;  %5838 = vst [vmem:[#allocation9_spill] sm:$0xff] %v5119_v24  ;;  %v5125_v15 = vadd.f32 %v1678_v12, %v5077_v55 }
 0x837   :  { %5839 = vst [vmem:[#allocation6_spill] sm:$0xff] %v5122_v31  ;;  %3605 = vrcp.f32 %v1430_v26 }
 0x838   :  { %5840 = vst [vmem:[#allocation11_spill] sm:$0xff] %v5125_v15  ;;  %v1609_v32 = vpop.f32.mrb[56].mxu0 }
 0x839   :  { %v5128_v40 = vadd.f32 %v1609_v32, %v5065_v9  ;;  %v1611_v45 = vpop.f32.mrb[57].mxu0 }
 0x83a   :  { %v5131_v56 = vadd.f32 %v1611_v45, %v5069_v0  ;;  %v1613_v34 = vpop.f32.mrb[58].mxu0  ;;  %v1682_v54 = vpop.f32.mrb[56].mxu1 }
 0x83b   :  { %5841 = vst [vmem:[#allocation3_spill] sm:$0xff] %v5128_v40  ;;  %v5134_v59 = vadd.f32 %v1613_v34, %v5065_v9  ;;  %v1615_v28 = vpop.f32.mrb[59].mxu0  ;;  %v5137_v35 = vadd.f32 %v1682_v54, %v5073_v61  ;;  %v1684_v12 = vpop.f32.mrb[57].mxu1 }
 0x83c   :  { %5842 = vst [vmem:[#allocation7_spill] sm:$0xff] %v5131_v56  ;;  %v3602_v37 = vpop.eup %3601  ;;  %v5140_v32 = vadd.f32 %v1615_v28, %v5069_v0  ;;  %v5143_v30 = vadd.f32 %v1684_v12, %v5077_v55  ;;  %v1686_v45 = vpop.f32.mrb[58].mxu1 }
 0x83d   :  { %5843 = vst [vmem:[#allocation4_spill] sm:$0xff] %v5137_v35  ;;  %v3604_v29 = vpop.eup %3603  ;;  %v1434_v42 = vmul.f32 %v3602_v37, %v3600_v23  ;;  %v5146_v33 = vadd.f32 %v1686_v45, %v5073_v61  ;;  %v1688_v34 = vpop.f32.mrb[59].mxu1 }
 0x83e   :  { %5844 = vst [vmem:[#allocation8_spill] sm:$0xff] %v5140_v32  ;;  %5845 = vst [vmem:[#allocation2_spill] sm:$0xff] %v5143_v30  ;;  %v1433_v24 = vmul.f32 %v3604_v29, %v4771_v25  ;;  %v5150_v54 = vadd.f32 %v1688_v34, %v5077_v55 }
 0x840   :  { %5846 = vst [vmem:[#allocation24_spill] sm:$0xff] %v5150_v54  ;;  %v1435_v4 = vadd.f32 %v1434_v42, %v1433_v24  ;;  %v1619_v38 = vpop.f32.mrb[60].mxu0 }
 0x841   :  { %v5153_v28 = vadd.f32 %v1619_v38, %v5065_v9  ;;  %v1621_v12 = vpop.f32.mrb[61].mxu0  ;;  %v3606_v30 = vpop.eup %3605 }
 0x842   :  { %3607 = vtanh.f32 %v1435_v4  ;;  %v5156_v37 = vadd.f32 %v1621_v12, %v5069_v0  ;;  %v1623_v23 = vpop.f32.mrb[62].mxu0  ;;  %v1692_v2 = vpop.f32.mrb[60].mxu1 }
 0x843   :  { %v1625_v45 = vpop.f32.mrb[63].mxu0  ;;  %v5159_v17 = vadd.f32 %v1692_v2, %v5073_v61  ;;  %v1694_v25 = vpop.f32.mrb[61].mxu1  ;;  %v1624_v38 = vadd.f32 %v1623_v23, %v5065_v9 }
 0x844   :  { %v5162_v29 = vadd.f32 %v1694_v25, %v5077_v55  ;;  %v1696_v42 = vpop.f32.mrb[62].mxu1  ;;  %v1626_v4 = vadd.f32 %v1625_v45, %v5069_v0 }
 0x845   :  { %v1698_v26 = vpop.f32.mrb[63].mxu1  ;;  %v1697_v24 = vadd.f32 %v1696_v42, %v5073_v61 }
 0x846   :  { %v1699_v12 = vadd.f32 %v1698_v26, %v5077_v55 }
 0x848   :  { %v1928_v34 = vpop.f32.mrb[64].mxu0 }
 0x849   :  { %v1976_v15 = vadd.f32 %v1928_v34, %v1624_v38  ;;  %v1930_v39 = vpop.f32.mrb[65].mxu0 }
 0x84a   :  { %v1977_v31 = vadd.f32 %v1930_v39, %v1626_v4  ;;  %v1932_v2 = vpop.f32.mrb[66].mxu0  ;;  %v1969_v41 = vpop.f32.mrb[64].mxu1 }
 0x84b   :  { %v3164_v56 = vmul.f32 -1.442695, %v1976_v15  ;;  %v1933_v25 = vpop.f32.mrb[67].mxu0  ;;  %v1978_v35 = vadd.f32 %v1969_v41, %v1697_v24  ;;  %v1971_v40 = vpop.f32.mrb[65].mxu1 }
 0x84c   :  { %v3608_v54 = vpop.eup %3607  ;;  %v3165_v32 = vmul.f32 -1.442695, %v1977_v31  ;;  %v1979_v9 = vadd.f32 %v1971_v40, %v1699_v12  ;;  %v1973_v23 = vpop.f32.mrb[66].mxu1 }
 0x84d   :  { %3609 = vpow2.f32 %v3164_v56  ;;  %v1974_v61 = vpop.f32.mrb[67].mxu1  ;;  %v5168_v0 = vmul.f32 %v3608_v54, %v3606_v30  ;;  %v5173_v54 = vpop.permute.xlu1 %2007 }
 0x84e   :  { %3611 = vpow2.f32 %v3165_v32  ;;  %v3166_v55 = vmul.f32 -1.442695, %v1979_v9  ;;  %vm2009_vm0 = vcmp.eq.s32.totalorder %v5173_v54, 1 }
 0x84f   :  { %vm3167_vm10 = vmpackc.low %vm2009_vm0, %vm2009_vm0 }
 0x850   :  { %3613 = vpow2.f32 %v3166_v55 }
 0x851   :  { %3615 = vtanh.f32 %v1978_v35 }
 0x857   :  { %v3610_v45 = vpop.eup %3609 }
 0x858   :  { %v3612_v42 = vpop.eup %3611  ;;  %v1983_v39 = vadd.f32 1.0, %v3610_v45 }
 0x859   :  { %v1989_v26 = vadd.f32 1.0, %v3612_v42 }
 0x85a   :  { %3617 = vrcp.f32 %v1983_v39  ;;  %v3614_v41 = vpop.eup %3613 }
 0x85b   :  { %3619 = vrcp.f32 %v1989_v26  ;;  %v3616_v15 = vpop.eup %3615  ;;  %v1996_v24 = vadd.f32 1.0, %v3614_v41 }
 0x85d   :  { %3621 = vrcp.f32 %v1996_v24 }
 0x864   :  { %v3618_v38 = vpop.eup %3617 }
 0x865   :  { %v3620_v31 = vpop.eup %3619  ;;  %v2000_v40 = vmul.f32 %v3618_v38, %v3616_v15 }
 0x866   :  { %v1999_v56 = vmul.f32 0.0, %v3620_v31 }
 0x867   :  { %v3622_v30 = vpop.eup %3621 }
 0x868   :  { %v5170_v4 = vadd.f32 %v2000_v40, %v1999_v56 }
 0x86a   :  { %3623 = vtanh.f32 %v5170_v4 }
 0x874   :  { %v3624_v32 = vpop.eup %3623 }
 0x875   :  { %v5176_v35 = vmul.f32 %v3624_v32, %v3622_v30  ;;  %v2011_v32 = vsel %vm2009_vm0, %v5170_v4, 0.0 }
 0x877   :  { %v3168_v34 = vpack.c.bf16 %v5176_v35, %v5176_v35 }
 0x879   :  { %3169 = vmatmul.mubr.msk.bf16.vlgmr.msra.gmra.mrb[68].mxu0 %vm3167_vm10, %v3168_v34  ;;  %3172 = vmatmul.mubr.msk.bf16.vlgmr.msra.gmra.mrb[68].mxu1 %vm3167_vm10, %v3168_v34 }
 0x87a   :  { %2133 = vmatpush1.bf16.msra.mxu0 %v4814_v57  ;;  %2174 = vmatpush1.bf16.msra.mxu1 %v4826_v52 }
 0x87b   :  { %2134 = vmatprep.subr.bf16.mxu0 %v4820_v8  ;;  %2175 = vmatprep.subr.bf16.mxu1 %v4832_v58 }
 0x87c   :  { %2164 = vmatprep.mubr.bf16.mxu0 %v5797_v63  ;;  %2205 = vmatprep.mubr.bf16.mxu1 %v5797_v63 }
 0x87e   :  { %2135 = vmatpush1.bf16.msra.mxu0 %v4838_v5  ;;  %2176 = vmatpush1.bf16.msra.mxu1 %v4852_v47 }
 0x87f   :  { %2136 = vmatprep.subr.bf16.mxu0 %v4845_v62  ;;  %2177 = vmatprep.subr.bf16.mxu1 %v4862_v43 }
 0x882   :  { %2137 = vmatpush1.bf16.msra.mxu0 %v4868_v46  ;;  %2178 = vmatpush1.bf16.msra.mxu1 %v4880_v20 }
 0x883   :  { %2138 = vmatprep.subr.bf16.mxu0 %v4874_v48  ;;  %2179 = vmatprep.subr.bf16.mxu1 %v4887_v21 }
 0x886   :  { %2139 = vmatpush1.bf16.msra.mxu0 %v4893_v22  ;;  %2180 = vmatpush1.bf16.msra.mxu1 %v4907_v53 }
 0x887   :  { %2140 = vmatprep.subr.bf16.mxu0 %v4900_v7  ;;  %2181 = vmatprep.subr.bf16.mxu1 %v4917_v11 }
 0x88a   :  { %2141 = vmatpush1.bf16.msra.mxu0 %v4923_v44  ;;  %2182 = vmatpush1.bf16.msra.mxu1 %v4935_v6 }
 0x88b   :  { %2142 = vmatprep.subr.bf16.mxu0 %v4929_v3  ;;  %2183 = vmatprep.subr.bf16.mxu1 %v4942_v36 }
 0x88e   :  { %2143 = vmatpush1.bf16.msra.mxu0 %v4948_v1  ;;  %2184 = vmatpush1.bf16.msra.mxu1 %v4962_v49 }
 0x88f   :  { %2144 = vmatprep.subr.bf16.mxu0 %v4955_v27  ;;  %2185 = vmatprep.subr.bf16.mxu1 %v4972_v10 }
 0x892   :  { %2145 = vmatpush1.bf16.msra.mxu0 %v4978_v13  ;;  %2186 = vmatpush1.bf16.msra.mxu1 %v4990_v16 }
 0x893   :  { %2146 = vmatprep.subr.bf16.mxu0 %v4984_v14  ;;  %2187 = vmatprep.subr.bf16.mxu1 %v4997_v18 }
 0x896   :  { %2147 = vmatpush1.bf16.msra.mxu0 %v5003_v19  ;;  %2188 = vmatpush1.bf16.msra.mxu1 %v5012_v51 }
 0x897   :  { %2251 = vmatprep.subr.bf16.mxu0 %v4797_v60  ;;  %2292 = vmatprep.subr.bf16.mxu1 %v4806_v50 }
 0x94c   :  { %v2047_v12 = vpop.f32.mrb[68].mxu0  ;;  %v2088_v2 = vpop.f32.mrb[68].mxu1 }
 0x94d   :  { %v2095_v25 = vadd.f32 %v2047_v12, %v5153_v28  ;;  %v2097_v9 = vadd.f32 %v2088_v2, %v5159_v17  ;;  %v2049_v23 = vpop.f32.mrb[69].mxu0  ;;  %v2090_v61 = vpop.f32.mrb[69].mxu1 }
 0x94e   :  { %v2096_v55 = vadd.f32 %v2049_v23, %v5156_v37  ;;  %v2098_v45 = vadd.f32 %v2090_v61, %v5162_v29  ;;  %v2051_v42 = vpop.f32.mrb[70].mxu0  ;;  %v2092_v39 = vpop.f32.mrb[70].mxu1 }
 0x94f   :  { %v3173_v26 = vmul.f32 -1.442695, %v2095_v25  ;;  %v2052_v41 = vpop.f32.mrb[71].mxu0  ;;  %v2093_v15 = vpop.f32.mrb[71].mxu1  ;;  %v2010_v42 = vsel %vm2009_vm0, %v5176_v35, 0.0 }
 0x950   :  { %v3174_v38 = vmul.f32 -1.442695, %v2096_v55  ;;  %v3175_v31 = vmul.f32 -1.442695, %v2098_v45  ;;  %v2127_v25 = vpop.permute.xlu0 %2126 }
 0x951   :  { %3625 = vpow2.f32 %v3173_v26  ;;  %vm2128_vm11 = vcmp.eq.s32.totalorder %v2127_v25, 1 }
 0x952   :  { %3627 = vpow2.f32 %v3174_v38 }
 0x953   :  { %3629 = vpow2.f32 %v3175_v31  ;;  %v5847_v31 = vld [vmem:[#allocation8_spill] sm:$0xff] }
 0x954   :  { %3631 = vtanh.f32 %v2097_v9 }
 0x95b   :  { %v3626_v40 = vpop.eup %3625 }
 0x95c   :  { %v3628_v24 = vpop.eup %3627  ;;  %v2102_v28 = vadd.f32 1.0, %v3626_v40 }
 0x95d   :  { %v2108_v17 = vadd.f32 1.0, %v3628_v24  ;;  %v3630_v37 = vpop.eup %3629  ;;  %v5848_v24 = vld [vmem:[#allocation24_spill] sm:$0xff] }
 0x95e   :  { %3633 = vrcp.f32 %v2102_v28  ;;  %v3632_v56 = vpop.eup %3631  ;;  %v2115_v12 = vadd.f32 1.0, %v3630_v37 }
 0x95f   :  { %3635 = vrcp.f32 %v2108_v17 }
 0x960   :  { %3637 = vrcp.f32 %v2115_v12 }
 0x968   :  { %v3634_v29 = vpop.eup %3633 }
 0x969   :  { %v3636_v30 = vpop.eup %3635  ;;  %v2119_v34 = vmul.f32 %v3634_v29, %v3632_v56 }
 0x96a   :  { %v2118_v2 = vmul.f32 %v3636_v30, %v2011_v32  ;;  %v3638_v61 = vpop.eup %3637 }
 0x96c   :  { %v2120_v23 = vadd.f32 %v2119_v34, %v2118_v2 }
 0x96e   :  { %3639 = vtanh.f32 %v2120_v23  ;;  %v5224_v9 = vsel %vm2128_vm11, %v2120_v23, %v2011_v32 }
 0x978   :  { %v3640_v55 = vpop.eup %3639 }
 0x979   :  { %v2122_v45 = vmul.f32 %v3640_v55, %v3638_v61 }
 0x97b   :  { %v5229_v39 = vsel %vm2128_vm11, %v2122_v45, %v2010_v42 }
 0x97c   :  { %v2131_v4 = vpack.c.bf16 %v5229_v39, %v5229_v39 }
 0x97e   :  { %2165 = vmatmul.mubr.bf16.vlgmr.msra.gmra.mrb[72].mxu0 %v2131_v4  ;;  %2206 = vmatmul.mubr.bf16.vlgmr.msra.gmra.mrb[72].mxu1 %v2131_v4 }
 0x97f   :  { %2252 = vmatpush1.bf16.msra.mxu0 %v4814_v57  ;;  %2293 = vmatpush1.bf16.msra.mxu1 %v4826_v52 }
 0x980   :  { %2253 = vmatprep.subr.bf16.mxu0 %v4820_v8  ;;  %2294 = vmatprep.subr.bf16.mxu1 %v4832_v58 }
 0x981   :  { %2283 = vmatprep.mubr.bf16.mxu0 %v5797_v63  ;;  %2324 = vmatprep.mubr.bf16.mxu1 %v5797_v63 }
 0x983   :  { %2254 = vmatpush1.bf16.msra.mxu0 %v4838_v5  ;;  %2295 = vmatpush1.bf16.msra.mxu1 %v4852_v47 }
 0x984   :  { %2255 = vmatprep.subr.bf16.mxu0 %v4845_v62  ;;  %2296 = vmatprep.subr.bf16.mxu1 %v4862_v43 }
 0x987   :  { %2256 = vmatpush1.bf16.msra.mxu0 %v4868_v46  ;;  %2297 = vmatpush1.bf16.msra.mxu1 %v4880_v20 }
 0x988   :  { %2257 = vmatprep.subr.bf16.mxu0 %v4874_v48  ;;  %2298 = vmatprep.subr.bf16.mxu1 %v4887_v21 }
 0x98b   :  { %2258 = vmatpush1.bf16.msra.mxu0 %v4893_v22  ;;  %2299 = vmatpush1.bf16.msra.mxu1 %v4907_v53 }
 0x98c   :  { %2259 = vmatprep.subr.bf16.mxu0 %v4900_v7  ;;  %2300 = vmatprep.subr.bf16.mxu1 %v4917_v11 }
 0x98f   :  { %2260 = vmatpush1.bf16.msra.mxu0 %v4923_v44  ;;  %2301 = vmatpush1.bf16.msra.mxu1 %v4935_v6 }
 0x990   :  { %2261 = vmatprep.subr.bf16.mxu0 %v4929_v3  ;;  %2302 = vmatprep.subr.bf16.mxu1 %v4942_v36 }
 0x993   :  { %2262 = vmatpush1.bf16.msra.mxu0 %v4948_v1  ;;  %2303 = vmatpush1.bf16.msra.mxu1 %v4962_v49 }
 0x994   :  { %2263 = vmatprep.subr.bf16.mxu0 %v4955_v27  ;;  %2304 = vmatprep.subr.bf16.mxu1 %v4972_v10 }
 0x997   :  { %2264 = vmatpush1.bf16.msra.mxu0 %v4978_v13  ;;  %2305 = vmatpush1.bf16.msra.mxu1 %v4990_v16 }
 0x998   :  { %2265 = vmatprep.subr.bf16.mxu0 %v4984_v14  ;;  %2306 = vmatprep.subr.bf16.mxu1 %v4997_v18 }
 0x99b   :  { %2266 = vmatpush1.bf16.msra.mxu0 %v5003_v19  ;;  %2307 = vmatpush1.bf16.msra.mxu1 %v5012_v51 }
 0x99c   :  { %2370 = vmatprep.subr.bf16.mxu0 %v4797_v60  ;;  %2411 = vmatprep.subr.bf16.mxu1 %v4806_v50 }
 0xa51   :  { %v2166_v54 = vpop.f32.mrb[72].mxu0  ;;  %v2207_v35 = vpop.f32.mrb[72].mxu1 }
 0xa52   :  { %v2214_v26 = vadd.f32 %v2166_v54, %v5134_v59  ;;  %v2216_v41 = vadd.f32 %v2207_v35, %v5146_v33  ;;  %v2168_v15 = vpop.f32.mrb[73].mxu0  ;;  %v2209_v38 = vpop.f32.mrb[73].mxu1 }
 0xa53   :  { %v2215_v40 = vadd.f32 %v2168_v15, %v5847_v31  ;;  %v2217_v28 = vadd.f32 %v2209_v38, %v5848_v24  ;;  %v2170_v17 = vpop.f32.mrb[74].mxu0  ;;  %v2211_v37 = vpop.f32.mrb[74].mxu1  ;;  %v5849_v24 = vld [vmem:[#allocation3_spill] sm:$0xff] }
 0xa54   :  { %v3176_v56 = vmul.f32 -1.442695, %v2214_v26  ;;  %v2171_v29 = vpop.f32.mrb[75].mxu0  ;;  %v2212_v30 = vpop.f32.mrb[75].mxu1  ;;  %v5850_v17 = vld [vmem:[#allocation4_spill] sm:$0xff] }
 0xa55   :  { %v3177_v32 = vmul.f32 -1.442695, %v2215_v40  ;;  %v3178_v34 = vmul.f32 -1.442695, %v2217_v28  ;;  %v2246_v54 = vpop.permute.xlu1 %2245  ;;  %v5851_v30 = vld [vmem:[#allocation7_spill] sm:$0xff] }
 0xa56   :  { %3641 = vpow2.f32 %v3176_v56  ;;  %vm2247_vm12 = vcmp.eq.s32.totalorder %v2246_v54, 1 }
 0xa57   :  { %3643 = vpow2.f32 %v3177_v32 }
 0xa58   :  { %3645 = vpow2.f32 %v3178_v34  ;;  %v5852_v34 = vld [vmem:[#allocation2_spill] sm:$0xff] }
 0xa59   :  { %3647 = vtanh.f32 %v2216_v41 }
 0xa60   :  { %v3642_v12 = vpop.eup %3641 }
 0xa61   :  { %v3644_v2 = vpop.eup %3643  ;;  %v2221_v59 = vadd.f32 1.0, %v3642_v12 }
 0xa62   :  { %v2227_v33 = vadd.f32 1.0, %v3644_v2  ;;  %v3646_v25 = vpop.eup %3645 }
 0xa63   :  { %3649 = vrcp.f32 %v2221_v59  ;;  %v3648_v23 = vpop.eup %3647  ;;  %v2234_v42 = vadd.f32 1.0, %v3646_v25 }
 0xa64   :  { %3651 = vrcp.f32 %v2227_v33 }
 0xa65   :  { %3653 = vrcp.f32 %v2234_v42 }
 0xa6d   :  { %v3650_v61 = vpop.eup %3649 }
 0xa6e   :  { %v3652_v55 = vpop.eup %3651  ;;  %v2238_v45 = vmul.f32 %v3650_v61, %v3648_v23 }
 0xa6f   :  { %v2237_v4 = vmul.f32 %v3652_v55, %v5224_v9  ;;  %v3654_v41 = vpop.eup %3653 }
 0xa71   :  { %v2239_v35 = vadd.f32 %v2238_v45, %v2237_v4 }
 0xa73   :  { %3655 = vtanh.f32 %v2239_v35  ;;  %v5273_v26 = vsel %vm2247_vm12, %v2239_v35, %v5224_v9 }
 0xa7d   :  { %v3656_v15 = vpop.eup %3655 }
 0xa7e   :  { %v2241_v38 = vmul.f32 %v3656_v15, %v3654_v41 }
 0xa80   :  { %v5276_v31 = vsel %vm2247_vm12, %v2241_v38, %v5229_v39 }
 0xa81   :  { %v2250_v40 = vpack.c.bf16 %v5276_v31, %v5276_v31 }
 0xa83   :  { %2284 = vmatmul.mubr.bf16.vlgmr.msra.gmra.mrb[76].mxu0 %v2250_v40  ;;  %2325 = vmatmul.mubr.bf16.vlgmr.msra.gmra.mrb[76].mxu1 %v2250_v40 }
 0xa84   :  { %2371 = vmatpush1.bf16.msra.mxu0 %v4814_v57  ;;  %2412 = vmatpush1.bf16.msra.mxu1 %v4826_v52 }
 0xa85   :  { %2372 = vmatprep.subr.bf16.mxu0 %v4820_v8  ;;  %2413 = vmatprep.subr.bf16.mxu1 %v4832_v58 }
 0xa86   :  { %2402 = vmatprep.mubr.bf16.mxu0 %v5797_v63  ;;  %2443 = vmatprep.mubr.bf16.mxu1 %v5797_v63 }
 0xa88   :  { %2373 = vmatpush1.bf16.msra.mxu0 %v4838_v5  ;;  %2414 = vmatpush1.bf16.msra.mxu1 %v4852_v47 }
 0xa89   :  { %2374 = vmatprep.subr.bf16.mxu0 %v4845_v62  ;;  %2415 = vmatprep.subr.bf16.mxu1 %v4862_v43 }
 0xa8c   :  { %2375 = vmatpush1.bf16.msra.mxu0 %v4868_v46  ;;  %2416 = vmatpush1.bf16.msra.mxu1 %v4880_v20 }
 0xa8d   :  { %2376 = vmatprep.subr.bf16.mxu0 %v4874_v48  ;;  %2417 = vmatprep.subr.bf16.mxu1 %v4887_v21 }
 0xa90   :  { %2377 = vmatpush1.bf16.msra.mxu0 %v4893_v22  ;;  %2418 = vmatpush1.bf16.msra.mxu1 %v4907_v53 }
 0xa91   :  { %2378 = vmatprep.subr.bf16.mxu0 %v4900_v7  ;;  %2419 = vmatprep.subr.bf16.mxu1 %v4917_v11 }
 0xa94   :  { %2379 = vmatpush1.bf16.msra.mxu0 %v4923_v44  ;;  %2420 = vmatpush1.bf16.msra.mxu1 %v4935_v6 }
 0xa95   :  { %2380 = vmatprep.subr.bf16.mxu0 %v4929_v3  ;;  %2421 = vmatprep.subr.bf16.mxu1 %v4942_v36 }
 0xa98   :  { %2381 = vmatpush1.bf16.msra.mxu0 %v4948_v1  ;;  %2422 = vmatpush1.bf16.msra.mxu1 %v4962_v49 }
 0xa99   :  { %2382 = vmatprep.subr.bf16.mxu0 %v4955_v27  ;;  %2423 = vmatprep.subr.bf16.mxu1 %v4972_v10 }
 0xa9c   :  { %2383 = vmatpush1.bf16.msra.mxu0 %v4978_v13  ;;  %2424 = vmatpush1.bf16.msra.mxu1 %v4990_v16 }
 0xa9d   :  { %2384 = vmatprep.subr.bf16.mxu0 %v4984_v14  ;;  %2425 = vmatprep.subr.bf16.mxu1 %v4997_v18 }
 0xaa0   :  { %2385 = vmatpush1.bf16.msra.mxu0 %v5003_v19  ;;  %2426 = vmatpush1.bf16.msra.mxu1 %v5012_v51 }
 0xaa1   :  { %2489 = vmatprep.subr.bf16.mxu0 %v4797_v60  ;;  %2530 = vmatprep.subr.bf16.mxu1 %v4806_v50 }
 0xb56   :  { %v2285_v9 = vpop.f32.mrb[76].mxu0  ;;  %v2326_v39 = vpop.f32.mrb[76].mxu1 }
 0xb57   :  { %v2333_v28 = vadd.f32 %v2285_v9, %v5849_v24  ;;  %v2335_v37 = vadd.f32 %v2326_v39, %v5850_v17  ;;  %v2287_v56 = vpop.f32.mrb[77].mxu0  ;;  %v2328_v29 = vpop.f32.mrb[77].mxu1 }
 0xb58   :  { %v2334_v32 = vadd.f32 %v2287_v56, %v5851_v30  ;;  %v2336_v12 = vadd.f32 %v2328_v29, %v5852_v34  ;;  %v2289_v2 = vpop.f32.mrb[78].mxu0  ;;  %v2330_v59 = vpop.f32.mrb[78].mxu1 }
 0xb59   :  { %v3179_v33 = vmul.f32 -1.442695, %v2333_v28  ;;  %v2290_v25 = vpop.f32.mrb[79].mxu0  ;;  %v2331_v23 = vpop.f32.mrb[79].mxu1 }
 0xb5a   :  { %v3180_v60 = vmul.f32 -1.442695, %v2334_v32  ;;  %v3181_v50 = vmul.f32 -1.442695, %v2336_v12  ;;  %v2365_v9 = vpop.permute.xlu0 %2364  ;;  %v2484_v30 = vpop.permute.xlu1 %2483  ;;  %v5387_v23 = vld [vmem:[%s5760_s8] ss:$16 sps:$4 sm:$0xff]  }
 0xb5b   :  { %3657 = vpow2.f32 %v3179_v33  ;;  %vm2366_vm13 = vcmp.eq.s32.totalorder %v2365_v9, 1  ;;  %vm2485_vm14 = vcmp.eq.s32.totalorder %v2484_v30, 1  ;;  %v5473_v9 = vld [vmem:[%s5760_s8 + $0x84] ss:$16 sps:$4 sm:$0xff]  }
 0xb5c   :  { %3659 = vpow2.f32 %v3180_v60  ;;  %v5393_v60 = vld [vmem:[%s5760_s8 + $0x8] ss:$16 sps:$4 sm:$0xff]  }
 0xb5d   :  { %3661 = vpow2.f32 %v3181_v50  ;;  %v5399_v50 = vld [vmem:[%s5760_s8 + $0x24] ss:$16 sps:$4 sm:$0xff]  }
 0xb5e   :  { %3663 = vtanh.f32 %v2335_v37 }
 0xb65   :  { %v3658_v61 = vpop.eup %3657 }
 0xb66   :  { %v3660_v55 = vpop.eup %3659  ;;  %v2340_v45 = vadd.f32 1.0, %v3658_v61  ;;  %v5405_v61 = vld [vmem:[%s5760_s8 + $0x2c] ss:$16 sps:$4 sm:$0xff]  }
 0xb67   :  { %v2346_v42 = vadd.f32 1.0, %v3660_v55  ;;  %v3662_v4 = vpop.eup %3661  ;;  %v5413_v55 = vld [vmem:[%s5760_s8 + $0x20] ss:$16 sps:$4 sm:$0xff]  }
 0xb68   :  { %3665 = vrcp.f32 %v2340_v45  ;;  %v3664_v54 = vpop.eup %3663  ;;  %v2353_v38 = vadd.f32 1.0, %v3662_v4  ;;  %v5419_v45 = vld [vmem:[%s5760_s8 + $0x28] ss:$16 sps:$4 sm:$0xff]   ;;  %v5431_v4 = vld [vmem:[%s5760_s8 + $0x4c] ss:$16 sps:$4 sm:$0xff]  }
 0xb69   :  { %3667 = vrcp.f32 %v2346_v42  ;;  %v5425_v42 = vld [vmem:[%s5760_s8 + $0x44] ss:$16 sps:$4 sm:$0xff]  }
 0xb6a   :  { %3669 = vrcp.f32 %v2353_v38  ;;  %v5461_v38 = vld [vmem:[%s5760_s8 + $0x60] ss:$16 sps:$4 sm:$0xff]  }
 0xb72   :  { %v3666_v35 = vpop.eup %3665 }
 0xb73   :  { %v3668_v41 = vpop.eup %3667  ;;  %v2357_v15 = vmul.f32 %v3666_v35, %v3664_v54  ;;  %v5437_v54 = vld [vmem:[%s5760_s8 + $0x40] ss:$16 sps:$4 sm:$0xff]   ;;  %v5443_v35 = vld [vmem:[%s5760_s8 + $0x48] ss:$16 sps:$4 sm:$0xff]  }
 0xb74   :  { %v2356_v40 = vmul.f32 %v3668_v41, %v5273_v26  ;;  %v3670_v28 = vpop.eup %3669  ;;  %v5449_v41 = vld [vmem:[%s5760_s8 + $0x64] ss:$16 sps:$4 sm:$0xff]  }
 0xb76   :  { %v2358_v39 = vadd.f32 %v2357_v15, %v2356_v40  ;;  %v5455_v15 = vld [vmem:[%s5760_s8 + $0x6c] ss:$16 sps:$4 sm:$0xff]   ;;  %v5467_v40 = vld [vmem:[%s5760_s8 + $0x68] ss:$16 sps:$4 sm:$0xff]  }
 0xb78   :  { %3671 = vtanh.f32 %v2358_v39  ;;  %v5320_v24 = vsel %vm2366_vm13, %v2358_v39, %v5273_v26  ;;  %v5479_v39 = vld [vmem:[%s5760_s8 + $0x8c] ss:$16 sps:$4 sm:$0xff]  }
 0xb82   :  { %v3672_v17 = vpop.eup %3671 }
 0xb83   :  { %v2360_v37 = vmul.f32 %v3672_v17, %v3670_v28  ;;  %v5491_v28 = vld [vmem:[%s5760_s8 + $0x88] ss:$16 sps:$4 sm:$0xff]   ;;  %v5497_v17 = vld [vmem:[%s5760_s8 + $0xa4] ss:$16 sps:$4 sm:$0xff]  }
 0xb85   :  { %v5323_v56 = vsel %vm2366_vm13, %v2360_v37, %v5276_v31  ;;  %v5503_v37 = vld [vmem:[%s5760_s8 + $0xac] ss:$16 sps:$4 sm:$0xff]  }
 0xb86   :  { %v2369_v29 = vpack.c.bf16 %v5323_v56, %v5323_v56 }
 0xb88   :  { %2403 = vmatmul.mubr.bf16.vlgmr.msra.gmra.mrb[80].mxu0 %v2369_v29  ;;  %2444 = vmatmul.mubr.bf16.vlgmr.msra.gmra.mrb[80].mxu1 %v2369_v29  ;;  %v5515_v29 = vld [vmem:[%s5760_s8 + $0xa8] ss:$16 sps:$4 sm:$0xff]  }
 0xb89   :  { %2490 = vmatpush1.bf16.msra.mxu0 %v4814_v57  ;;  %2531 = vmatpush1.bf16.msra.mxu1 %v4826_v52  ;;  %v5362_v57 = vld [vmem:[%s5760_s8 + $0x4] ss:$16 sps:$4 sm:$0xff]  }
 0xb8a   :  { %2491 = vmatprep.subr.bf16.mxu0 %v4820_v8  ;;  %2532 = vmatprep.subr.bf16.mxu1 %v4832_v58  ;;  %v5368_v8 = vld [vmem:[%s5760_s8 + $0xc] ss:$16 sps:$4 sm:$0xff]  }
 0xb8b   :  { %2521 = vmatprep.mubr.bf16.mxu0 %v5797_v63  ;;  %2562 = vmatprep.mubr.bf16.mxu1 %v5797_v63 }
 0xb8d   :  { %2492 = vmatpush1.bf16.msra.mxu0 %v4838_v5  ;;  %2533 = vmatpush1.bf16.msra.mxu1 %v4852_v47  ;;  %v5853_v5 = vld [vmem:[#allocation12_spill] sm:$0xff]  ;;  %v5854_v47 = vld [vmem:[#allocation6_spill] sm:$0xff] }
 0xb8e   :  { %2493 = vmatprep.subr.bf16.mxu0 %v4845_v62  ;;  %2534 = vmatprep.subr.bf16.mxu1 %v4862_v43 }
 0xb91   :  { %2494 = vmatpush1.bf16.msra.mxu0 %v4868_v46  ;;  %2535 = vmatpush1.bf16.msra.mxu1 %v4880_v20  ;;  %v5855_v20 = vld [vmem:[#allocation5_spill] sm:$0xff] }
 0xb92   :  { %2495 = vmatprep.subr.bf16.mxu0 %v4874_v48  ;;  %2536 = vmatprep.subr.bf16.mxu1 %v4887_v21 }
 0xb95   :  { %2496 = vmatpush1.bf16.msra.mxu0 %v4893_v22  ;;  %2537 = vmatpush1.bf16.msra.mxu1 %v4907_v53  ;;  %v5856_v22 = vld [vmem:[#allocation11_spill] sm:$0xff] }
 0xb96   :  { %2497 = vmatprep.subr.bf16.mxu0 %v4900_v7  ;;  %2538 = vmatprep.subr.bf16.mxu1 %v4917_v11 }
 0xb99   :  { %2498 = vmatpush1.bf16.msra.mxu0 %v4923_v44  ;;  %2539 = vmatpush1.bf16.msra.mxu1 %v4935_v6 }
 0xb9a   :  { %2499 = vmatprep.subr.bf16.mxu0 %v4929_v3  ;;  %2540 = vmatprep.subr.bf16.mxu1 %v4942_v36 }
 0xb9d   :  { %2500 = vmatpush1.bf16.msra.mxu0 %v4948_v1  ;;  %2541 = vmatpush1.bf16.msra.mxu1 %v4962_v49 }
 0xb9e   :  { %2501 = vmatprep.subr.bf16.mxu0 %v4955_v27  ;;  %2542 = vmatprep.subr.bf16.mxu1 %v4972_v10 }
 0xba1   :  { %2502 = vmatpush1.bf16.msra.mxu0 %v4978_v13  ;;  %2543 = vmatpush1.bf16.msra.mxu1 %v4990_v16 }
 0xba2   :  { %2503 = vmatprep.subr.bf16.mxu0 %v4984_v14  ;;  %2544 = vmatprep.subr.bf16.mxu1 %v4997_v18 }
 0xba5   :  { %2504 = vmatpush1.bf16.msra.mxu0 %v5003_v19  ;;  %2545 = vmatpush1.bf16.msra.mxu1 %v5012_v51 }
 0xba6   :  { %2608 = vmatprep.subr.bf16.mxu0 %v5362_v57  ;;  %2649 = vmatprep.subr.bf16.mxu1 %v5368_v8 }
 0xc5b   :  { %v2404_v52 = vpop.f32.mrb[80].mxu0  ;;  %v2445_v58 = vpop.f32.mrb[80].mxu1 }
 0xc5c   :  { %v2452_v62 = vadd.f32 %v2404_v52, %v5853_v5  ;;  %v2454_v43 = vadd.f32 %v2445_v58, %v5854_v47  ;;  %v2406_v46 = vpop.f32.mrb[81].mxu0  ;;  %v2447_v48 = vpop.f32.mrb[81].mxu1  ;;  %v5521_v52 = vld [vmem:[%s5760_s8 + $0xc4] ss:$16 sps:$4 sm:$0xff]   ;;  %v5527_v58 = vld [vmem:[%s5760_s8 + $0xcc] ss:$16 sps:$4 sm:$0xff]  }
 0xc5d   :  { %v2453_v21 = vadd.f32 %v2406_v46, %v5855_v20  ;;  %v2455_v7 = vadd.f32 %v2447_v48, %v5856_v22  ;;  %v2408_v53 = vpop.f32.mrb[82].mxu0  ;;  %v2449_v11 = vpop.f32.mrb[82].mxu1  ;;  %v5533_v5 = vld [vmem:[%s5760_s8 + $0xc0] ss:$16 sps:$4 sm:$0xff]   ;;  %v5545_v47 = vld [vmem:[%s5760_s8 + $0xe4] ss:$16 sps:$4 sm:$0xff]  }
 0xc5e   :  { %v3182_v44 = vmul.f32 -1.442695, %v2452_v62  ;;  %v2409_v3 = vpop.f32.mrb[83].mxu0  ;;  %v2450_v6 = vpop.f32.mrb[83].mxu1  ;;  %v5539_v62 = vld [vmem:[%s5760_s8 + $0xc8] ss:$16 sps:$4 sm:$0xff]  }
 0xc5f   :  { %v3183_v36 = vmul.f32 -1.442695, %v2453_v21  ;;  %v3184_v1 = vmul.f32 -1.442695, %v2455_v7  ;;  %v5557_v46 = vld [vmem:[%s5760_s8 + $0xe0] ss:$16 sps:$4 sm:$0xff]  }
 0xc60   :  { %3673 = vpow2.f32 %v3182_v44  ;;  %v5563_v48 = vld [vmem:[%s5760_s8 + $0xe8] ss:$16 sps:$4 sm:$0xff]   ;;  %v5857_v22 = vld [vmem:[#allocation10_spill] sm:$0xff]  ;;  %v5858_v53 = vld [vmem:[#allocation16_spill] sm:$0xff] }
 0xc61   :  { %3675 = vpow2.f32 %v3183_v36  ;;  %v5859_v6 = vld [vmem:[#allocation15_spill] sm:$0xff] }
 0xc62   :  { %3677 = vpow2.f32 %v3184_v1  ;;  %v5860_v1 = vld [vmem:[#allocation9_spill] sm:$0xff] }
 0xc63   :  { %3679 = vtanh.f32 %v2454_v43  ;;  %v5551_v43 = vld [vmem:[%s5760_s8 + $0xec] ss:$16 sps:$4 sm:$0xff]  }
 0xc6a   :  { %v3674_v27 = vpop.eup %3673 }
 0xc6b   :  { %v3676_v49 = vpop.eup %3675  ;;  %v2459_v10 = vadd.f32 1.0, %v3674_v27 }
 0xc6c   :  { %v2465_v13 = vadd.f32 1.0, %v3676_v49  ;;  %v3678_v14 = vpop.eup %3677 }
 0xc6d   :  { %3681 = vrcp.f32 %v2459_v10  ;;  %v3680_v16 = vpop.eup %3679  ;;  %v2472_v26 = vadd.f32 1.0, %v3678_v14 }
 0xc6e   :  { %3683 = vrcp.f32 %v2465_v13 }
 0xc6f   :  { %3685 = vrcp.f32 %v2472_v26 }
 0xc77   :  { %v3682_v18 = vpop.eup %3681 }
 0xc78   :  { %v3684_v19 = vpop.eup %3683  ;;  %v2476_v51 = vmul.f32 %v3682_v18, %v3680_v16 }
 0xc79   :  { %v2475_v31 = vmul.f32 %v3684_v19, %v5320_v24  ;;  %v3686_v12 = vpop.eup %3685 }
 0xc7b   :  { %v2477_v32 = vadd.f32 %v2476_v51, %v2475_v31 }
 0xc7d   :  { %3687 = vtanh.f32 %v2477_v32  ;;  %v5377_v34 = vsel %vm2485_vm14, %v2477_v32, %v5320_v24  ;;  %v5485_v24 = vld [vmem:[%s5760_s8 + $0x80] ss:$16 sps:$4 sm:$0xff]  }
 0xc87   :  { %v3688_v2 = vpop.eup %3687 }
 0xc88   :  { %v2479_v59 = vmul.f32 %v3688_v2, %v3686_v12 }
 0xc8a   :  { %v5380_v33 = vsel %vm2485_vm14, %v2479_v59, %v5323_v56  ;;  %v5509_v56 = vld [vmem:[%s5760_s8 + $0xa0] ss:$16 sps:$4 sm:$0xff]  }
 0xc8b   :  { %v2488_v25 = vpack.c.bf16 %v5380_v33, %v5380_v33 }
 0xc8d   :  { %2522 = vmatmul.mubr.bf16.vlgmr.msra.gmra.mrb[84].mxu0 %v2488_v25  ;;  %2563 = vmatmul.mubr.bf16.vlgmr.msra.gmra.mrb[84].mxu1 %v2488_v25 }
 0xc8e   :  { %2609 = vmatpush1.bf16.msra.mxu0 %v5387_v23  ;;  %2650 = vmatpush1.bf16.msra.mxu1 %v5393_v60 }
 0xc8f   :  { %2610 = vmatprep.subr.bf16.mxu0 %v5399_v50  ;;  %2651 = vmatprep.subr.bf16.mxu1 %v5405_v61 }
 0xc90   :  { %2640 = vmatprep.mubr.bf16.mxu0 %v5797_v63  ;;  %2681 = vmatprep.mubr.bf16.mxu1 %v5797_v63 }
 0xc92   :  { %2611 = vmatpush1.bf16.msra.mxu0 %v5413_v55  ;;  %2652 = vmatpush1.bf16.msra.mxu1 %v5419_v45 }
 0xc93   :  { %2612 = vmatprep.subr.bf16.mxu0 %v5425_v42  ;;  %2653 = vmatprep.subr.bf16.mxu1 %v5431_v4 }
 0xc96   :  { %2613 = vmatpush1.bf16.msra.mxu0 %v5437_v54  ;;  %2654 = vmatpush1.bf16.msra.mxu1 %v5443_v35 }
 0xc97   :  { %2614 = vmatprep.subr.bf16.mxu0 %v5449_v41  ;;  %2655 = vmatprep.subr.bf16.mxu1 %v5455_v15 }
 0xc9a   :  { %2615 = vmatpush1.bf16.msra.mxu0 %v5461_v38  ;;  %2656 = vmatpush1.bf16.msra.mxu1 %v5467_v40 }
 0xc9b   :  { %2616 = vmatprep.subr.bf16.mxu0 %v5473_v9  ;;  %2657 = vmatprep.subr.bf16.mxu1 %v5479_v39 }
 0xc9e   :  { %2617 = vmatpush1.bf16.msra.mxu0 %v5485_v24  ;;  %2658 = vmatpush1.bf16.msra.mxu1 %v5491_v28 }
 0xc9f   :  { %2618 = vmatprep.subr.bf16.mxu0 %v5497_v17  ;;  %2659 = vmatprep.subr.bf16.mxu1 %v5503_v37 }
 0xca2   :  { %2619 = vmatpush1.bf16.msra.mxu0 %v5509_v56  ;;  %2660 = vmatpush1.bf16.msra.mxu1 %v5515_v29 }
 0xca3   :  { %2620 = vmatprep.subr.bf16.mxu0 %v5521_v52  ;;  %2661 = vmatprep.subr.bf16.mxu1 %v5527_v58 }
 0xca6   :  { %2621 = vmatpush1.bf16.msra.mxu0 %v5533_v5  ;;  %2662 = vmatpush1.bf16.msra.mxu1 %v5539_v62 }
 0xca7   :  { %2622 = vmatprep.subr.bf16.mxu0 %v5545_v47  ;;  %2663 = vmatprep.subr.bf16.mxu1 %v5551_v43 }
 0xcaa   :  { %2623 = vmatpush1.bf16.msra.mxu0 %v5557_v46  ;;  %2664 = vmatpush1.bf16.msra.mxu1 %v5563_v48 }
 0xcab   :  { %2727 = vmatprep.subr.bf16.mxu0 %v5362_v57  ;;  %2768 = vmatprep.subr.bf16.mxu1 %v5368_v8 }
 0xd60   :  { %v2523_v20 = vpop.f32.mrb[84].mxu0  ;;  %v2564_v21 = vpop.f32.mrb[84].mxu1 }
 0xd61   :  { %v2571_v7 = vadd.f32 %v2523_v20, %v5857_v22  ;;  %v2573_v11 = vadd.f32 %v2564_v21, %v5858_v53  ;;  %v2525_v44 = vpop.f32.mrb[85].mxu0  ;;  %v2566_v3 = vpop.f32.mrb[85].mxu1 }
 0xd62   :  { %v2572_v36 = vadd.f32 %v2525_v44, %v5859_v6  ;;  %v2574_v27 = vadd.f32 %v2566_v3, %v5860_v1  ;;  %v2527_v49 = vpop.f32.mrb[86].mxu0  ;;  %v2568_v10 = vpop.f32.mrb[86].mxu1 }
 0xd63   :  { %v3185_v13 = vmul.f32 -1.442695, %v2571_v7  ;;  %v2528_v14 = vpop.f32.mrb[87].mxu0  ;;  %v2569_v16 = vpop.f32.mrb[87].mxu1  ;;  %v2861_v49 = vld [vmem:[%s5762_s11 + $0x8] sm:$0xff] }
 0xd64   :  { %v3186_v57 = vmul.f32 -1.442695, %v2572_v36  ;;  %v3187_v8 = vmul.f32 -1.442695, %v2574_v27  ;;  %v2603_v20 = vpop.permute.xlu0 %2602  ;;  %v2860_v27 = vld [vmem:[%s5762_s11] sm:$0xff] }
 0xd65   :  { %3689 = vpow2.f32 %v3185_v13  ;;  %vm2604_vm15 = vcmp.eq.s32.totalorder %v2603_v20, 1  ;;  %v3300_v14 = vpack.c.bf16 %v2861_v49, %v2860_v27  ;;  %v2870_v20 = vld [vmem:[%s5762_s11 + $0x50] sm:$0xff]  ;;  %v5868_v49 = vld [vmem:[#allocation21_spill] sm:$0xff] }
 0xd66   :  { %3691 = vpow2.f32 %v3186_v57  ;;  %v2862_v57 = vld [vmem:[%s5762_s11 + $0x10] sm:$0xff] }
 0xd67   :  { %3693 = vpow2.f32 %v3187_v8  ;;  %v2863_v8 = vld [vmem:[%s5762_s11 + $0x18] sm:$0xff] }
 0xd68   :  { %3695 = vtanh.f32 %v2573_v11 }
 0xd6f   :  { %v3690_v18 = vpop.eup %3689 }
 0xd70   :  { %v3692_v19 = vpop.eup %3691  ;;  %v2578_v51 = vadd.f32 1.0, %v3690_v18  ;;  %v3303_v18 = vpack.c.bf16 %v2863_v8, %v2862_v57 }
 0xd71   :  { %v2584_v26 = vadd.f32 1.0, %v3692_v19  ;;  %v3694_v31 = vpop.eup %3693  ;;  %v3804_v19 = vmov 0.0  }
 0xd72   :  { %3697 = vrcp.f32 %v2578_v51  ;;  %v3696_v30 = vpop.eup %3695  ;;  %v2591_v59 = vadd.f32 1.0, %v3694_v31  ;;  %v2864_v51 = vld [vmem:[%s5762_s11 + $0x20] sm:$0xff] }
 0xd73   :  { %3699 = vrcp.f32 %v2584_v26  ;;  %v2865_v26 = vld [vmem:[%s5762_s11 + $0x28] sm:$0xff] }
 0xd74   :  { %3701 = vrcp.f32 %v2591_v59  ;;  %v3306_v31 = vpack.c.bf16 %v2865_v26, %v2864_v51  ;;  %v2869_v59 = vld [vmem:[%s5762_s11 + $0x48] sm:$0xff] }
 0xd7c   :  { %v3698_v32 = vpop.eup %3697 }
 0xd7d   :  { %v3700_v12 = vpop.eup %3699  ;;  %v2595_v2 = vmul.f32 %v3698_v32, %v3696_v30  ;;  %v2866_v30 = vld [vmem:[%s5762_s11 + $0x30] sm:$0xff]  ;;  %v2867_v32 = vld [vmem:[%s5762_s11 + $0x38] sm:$0xff] }
 0xd7e   :  { %v2594_v25 = vmul.f32 %v3700_v12, %v5377_v34  ;;  %v3702_v7 = vpop.eup %3701  ;;  %v3309_v12 = vpack.c.bf16 %v2867_v32, %v2866_v30 }
 0xd80   :  { %v2596_v21 = vadd.f32 %v2595_v2, %v2594_v25  ;;  %v2868_v2 = vld [vmem:[%s5762_s11 + $0x40] sm:$0xff] }
 0xd81   :  { %v3312_v25 = vpack.c.bf16 %v2869_v59, %v2868_v2 }
 0xd82   :  { %3703 = vtanh.f32 %v2596_v21  ;;  %v5574_v22 = vsel %vm2604_vm15, %v2596_v21, %v5377_v34  ;;  %v2871_v21 = vld [vmem:[%s5762_s11 + $0x58] sm:$0xff] }
 0xd8c   :  { %v3704_v53 = vpop.eup %3703 }
 0xd8d   :  { %v2598_v11 = vmul.f32 %v3704_v53, %v3702_v7  ;;  %v2872_v7 = vld [vmem:[%s5762_s11 + $0x60] sm:$0xff]  ;;  %v2873_v53 = vld [vmem:[%s5762_s11 + $0x68] sm:$0xff] }
 0xd8f   :  { %v5577_v44 = vsel %vm2604_vm15, %v2598_v11, %v5380_v33  ;;  %v3318_v11 = vpack.c.bf16 %v2873_v53, %v2872_v7 }
 0xd90   :  { %v2607_v3 = vpack.c.bf16 %v5577_v44, %v5577_v44 }
 0xd92   :  { %2641 = vmatmul.mubr.bf16.vlgmr.msra.gmra.mrb[88].mxu0 %v2607_v3  ;;  %2682 = vmatmul.mubr.bf16.vlgmr.msra.gmra.mrb[88].mxu1 %v2607_v3  ;;  %v2875_v3 = vld [vmem:[%s5762_s11 + $0x78] sm:$0xff] }
 0xd93   :  { %2728 = vmatpush1.bf16.msra.mxu0 %v5387_v23  ;;  %2769 = vmatpush1.bf16.msra.mxu1 %v5393_v60  ;;  %v5861_v23 = vld [vmem:[#allocation20_spill] sm:$0xff] }
 0xd94   :  { %2729 = vmatprep.subr.bf16.mxu0 %v5399_v50  ;;  %2770 = vmatprep.subr.bf16.mxu1 %v5405_v61  ;;  %v5862_v50 = vld [vmem:[#allocation14_spill] sm:$0xff] }
 0xd95   :  { %2759 = vmatprep.mubr.bf16.mxu0 %v5797_v63  ;;  %2800 = vmatprep.mubr.bf16.mxu1 %v5797_v63  ;;  %v3802_v63 = vmov 0.0|0.0  }
 0xd97   :  { %2730 = vmatpush1.bf16.msra.mxu0 %v5413_v55  ;;  %2771 = vmatpush1.bf16.msra.mxu1 %v5419_v45 }
 0xd98   :  { %2731 = vmatprep.subr.bf16.mxu0 %v5425_v42  ;;  %2772 = vmatprep.subr.bf16.mxu1 %v5431_v4  ;;  %v5863_v42 = vld [vmem:[#allocation13_spill] sm:$0xff] }
 0xd9b   :  { %2732 = vmatpush1.bf16.msra.mxu0 %v5437_v54  ;;  %2773 = vmatpush1.bf16.msra.mxu1 %v5443_v35  ;;  %v5864_v54 = vld [vmem:[#allocation19_spill] sm:$0xff] }
 0xd9c   :  { %2733 = vmatprep.subr.bf16.mxu0 %v5449_v41  ;;  %2774 = vmatprep.subr.bf16.mxu1 %v5455_v15 }
 0xd9f   :  { %2734 = vmatpush1.bf16.msra.mxu0 %v5461_v38  ;;  %2775 = vmatpush1.bf16.msra.mxu1 %v5467_v40 }
 0xda0   :  { %2735 = vmatprep.subr.bf16.mxu0 %v5473_v9  ;;  %2776 = vmatprep.subr.bf16.mxu1 %v5479_v39 }
 0xda3   :  { %2736 = vmatpush1.bf16.msra.mxu0 %v5485_v24  ;;  %2777 = vmatpush1.bf16.msra.mxu1 %v5491_v28 }
 0xda4   :  { %2737 = vmatprep.subr.bf16.mxu0 %v5497_v17  ;;  %2778 = vmatprep.subr.bf16.mxu1 %v5503_v37 }
 0xda7   :  { %2738 = vmatpush1.bf16.msra.mxu0 %v5509_v56  ;;  %2779 = vmatpush1.bf16.msra.mxu1 %v5515_v29 }
 0xda8   :  { %2739 = vmatprep.subr.bf16.mxu0 %v5521_v52  ;;  %2780 = vmatprep.subr.bf16.mxu1 %v5527_v58 }
 0xdab   :  { %2740 = vmatpush1.bf16.msra.mxu0 %v5533_v5  ;;  %2781 = vmatpush1.bf16.msra.mxu1 %v5539_v62 }
 0xdac   :  { %2741 = vmatprep.subr.bf16.mxu0 %v5545_v47  ;;  %2782 = vmatprep.subr.bf16.mxu1 %v5551_v43 }
 0xdaf   :  { %2742 = vmatpush1.bf16.msra.mxu0 %v5557_v46  ;;  %2783 = vmatpush1.bf16.msra.mxu1 %v5563_v48  ;;  %v2722_v46 = vpop.permute.xlu1 %2721 }
 0xdb0   :  { %3299 = vmatprep.subr.bf16.mxu0 %v3802_v63  ;;  %3323 = vmatprep.subr.bf16.mxu1 %v3802_v63  ;;  %vm2723_vm1 = vcmp.eq.s32.totalorder %v2722_v46, 1 }
 0xe65   :  { %v2642_v34 = vpop.f32.mrb[88].mxu0  ;;  %v2683_v33 = vpop.f32.mrb[88].mxu1 }
 0xe66   :  { %v2690_v60 = vadd.f32 %v2642_v34, %v5861_v23  ;;  %v2692_v61 = vadd.f32 %v2683_v33, %v5862_v50  ;;  %v2644_v55 = vpop.f32.mrb[89].mxu0  ;;  %v2685_v45 = vpop.f32.mrb[89].mxu1  ;;  %v5865_v23 = vld [vmem:[#allocation23_spill] sm:$0xff]  ;;  %v2844_v50 = vld [vmem:[%s5763_s10] sm:$0xff] }
 0xe67   :  { %v2691_v4 = vadd.f32 %v2644_v55, %v5863_v42  ;;  %v2693_v35 = vadd.f32 %v2685_v45, %v5864_v54  ;;  %v2646_v41 = vpop.f32.mrb[90].mxu0  ;;  %v2687_v15 = vpop.f32.mrb[90].mxu1  ;;  %v2846_v45 = vld [vmem:[%s5763_s10 + $0x10] sm:$0xff]  ;;  %v2849_v54 = vld [vmem:[%s5763_s10 + $0x28] sm:$0xff] }
 0xe68   :  { %v3188_v38 = vmul.f32 -1.442695, %v2690_v60  ;;  %v2647_v40 = vpop.f32.mrb[91].mxu0  ;;  %v2688_v9 = vpop.f32.mrb[91].mxu1  ;;  %v2850_v41 = vld [vmem:[%s5763_s10 + $0x30] sm:$0xff]  ;;  %v2851_v15 = vld [vmem:[%s5763_s10 + $0x38] sm:$0xff] }
 0xe69   :  { %v3189_v39 = vmul.f32 -1.442695, %v2691_v4  ;;  %v3190_v24 = vmul.f32 -1.442695, %v2693_v35  ;;  %v1442_v33 = vpop.permute.xlu0 %1441  ;;  %v2848_v4 = vld [vmem:[%s5763_s10 + $0x20] sm:$0xff]  ;;  %v2853_v9 = vld [vmem:[%s5763_s10 + $0x48] sm:$0xff] }
 0xe6a   :  { %3705 = vpow2.f32 %v3188_v38  ;;  %vm1443_vm3 = vcmp.eq.s32.totalorder %v1442_v33, 1  ;;  %v3330_v35 = vpack.c.bf16 %v2849_v54, %v2848_v4  ;;  %v3333_v38 = vpack.c.bf16 %v2851_v15, %v2850_v41  ;;  %v2852_v40 = vld [vmem:[%s5763_s10 + $0x40] sm:$0xff] }
 0xe6b   :  { %3707 = vpow2.f32 %v3189_v39  ;;  %v1444_v60 = vsel %vm1443_vm3, %v5168_v0, %v5865_v23  ;;  %v2847_v0 = vld [vmem:[%s5763_s10 + $0x18] sm:$0xff]  ;;  %v3336_v39 = vpack.c.bf16 %v2853_v9, %v2852_v40 }
 0xe6c   :  { %3709 = vpow2.f32 %v3190_v24  ;;  %v3327_v42 = vpack.c.bf16 %v2847_v0, %v2846_v45  ;;  %v2854_v24 = vld [vmem:[%s5763_s10 + $0x50] sm:$0xff] }
 0xe6d   :  { %3711 = vtanh.f32 %v2692_v61  ;;  %v2845_v61 = vld [vmem:[%s5763_s10 + $0x8] sm:$0xff] }
 0xe6e   :  { %v3324_v55 = vpack.c.bf16 %v2845_v61, %v2844_v50  ;;  %v3194_v61 = vld [vmem:[%s5764_s12] ss:$0 sm:$0xff] }
 0xe74   :  { %v3706_v28 = vpop.eup %3705 }
 0xe75   :  { %v3708_v17 = vpop.eup %3707  ;;  %v2697_v37 = vadd.f32 1.0, %v3706_v28  ;;  %v2855_v28 = vld [vmem:[%s5763_s10 + $0x58] sm:$0xff] }
 0xe76   :  { %v2703_v56 = vadd.f32 1.0, %v3708_v17  ;;  %v3710_v29 = vpop.eup %3709  ;;  %v3339_v17 = vpack.c.bf16 %v2855_v28, %v2854_v24 }
 0xe77   :  { %3713 = vrcp.f32 %v2697_v37  ;;  %v3712_v52 = vpop.eup %3711  ;;  %v2710_v47 = vadd.f32 1.0, %v3710_v29  ;;  %v2856_v37 = vld [vmem:[%s5763_s10 + $0x60] sm:$0xff] }
 0xe78   :  { %3715 = vrcp.f32 %v2703_v56  ;;  %v2857_v56 = vld [vmem:[%s5763_s10 + $0x68] sm:$0xff] }
 0xe79   :  { %3717 = vrcp.f32 %v2710_v47  ;;  %v3342_v29 = vpack.c.bf16 %v2857_v56, %v2856_v37 }
 0xe81   :  { %v3714_v58 = vpop.eup %3713 }
 0xe82   :  { %v3716_v5 = vpop.eup %3715  ;;  %v2714_v62 = vmul.f32 %v3714_v58, %v3712_v52  ;;  %v2858_v52 = vld [vmem:[%s5763_s10 + $0x70] sm:$0xff]  ;;  %v2859_v58 = vld [vmem:[%s5763_s10 + $0x78] sm:$0xff] }
 0xe83   :  { %v2713_v43 = vmul.f32 %v3716_v5, %v5574_v22  ;;  %v3718_v36 = vpop.eup %3717  ;;  %v3345_v5 = vpack.c.bf16 %v2859_v58, %v2858_v52 }
 0xe85   :  { %v2715_v48 = vadd.f32 %v2714_v62, %v2713_v43  ;;  %v5866_v43 = vld [vmem:[#allocation18_spill] sm:$0xff] }
 0xe87   :  { %3719 = vtanh.f32 %v2715_v48  ;;  %v5621_v6 = vsel %vm2723_vm1, %v2715_v48, %v5574_v22  ;;  %v3315_v22 = vpack.c.bf16 %v2871_v21, %v2870_v20  ;;  %v5867_v48 = vld [vmem:[#allocation22_spill] sm:$0xff] }
 0xe91   :  { %v3720_v1 = vpop.eup %3719 }
 0xe92   :  { %v2717_v10 = vmul.f32 %v3720_v1, %v3718_v36 }
 0xe94   :  { %v5630_v13 = vsel %vm2723_vm1, %v2717_v10, %v5577_v44  ;;  %v2874_v44 = vld [vmem:[%s5762_s11 + $0x70] sm:$0xff] }
 0xe95   :  { %v2726_v16 = vpack.c.bf16 %v5630_v13, %v5630_v13  ;;  %v3321_v34 = vpack.c.bf16 %v2875_v3, %v2874_v44 }
 0xe97   :  { %2760 = vmatmul.mubr.bf16.vlgmr.msra.gmra.mrb[92].mxu0 %v2726_v16  ;;  %2801 = vmatmul.mubr.bf16.vlgmr.msra.gmra.mrb[92].mxu1 %v2726_v16 }
 0xe98   :  { %3301 = vmatpush3.bf16.msra.mxu0 %v3300_v14  ;;  %3261 = vmatprep.mubr.msk.f32.mxu0 %vm3803_vm2, %v3804_v19  ;;  %v5869_v14 = vld [vmem:[#allocation17_spill] sm:$0xff] }
 0xe99   :  { %3302 = vmatprep.subr.bf16.mxu0 %v3802_v63  ;;  %3296 = vmatprep.mubr.msk.f32.mxu1 %vm3803_vm2, %v3804_v19 }
 0xe9a   :  { %3325 = vmatpush3.bf16.msra.mxu1 %v3324_v55 }
 0xe9b   :  { %3326 = vmatprep.subr.bf16.mxu1 %v3802_v63 }
 0xe9c   :  { %3304 = vmatpush3.bf16.msra.mxu0 %v3303_v18 }
 0xe9d   :  { %3305 = vmatprep.subr.bf16.mxu0 %v3802_v63 }
 0xe9e   :  { %3328 = vmatpush3.bf16.msra.mxu1 %v3327_v42 }
 0xe9f   :  { %3329 = vmatprep.subr.bf16.mxu1 %v3802_v63 }
 0xea0   :  { %3307 = vmatpush3.bf16.msra.mxu0 %v3306_v31 }
 0xea1   :  { %3308 = vmatprep.subr.bf16.mxu0 %v3802_v63 }
 0xea2   :  { %3331 = vmatpush3.bf16.msra.mxu1 %v3330_v35 }
 0xea3   :  { %3332 = vmatprep.subr.bf16.mxu1 %v3802_v63 }
 0xea4   :  { %3310 = vmatpush3.bf16.msra.mxu0 %v3309_v12 }
 0xea5   :  { %3311 = vmatprep.subr.bf16.mxu0 %v3802_v63 }
 0xea6   :  { %3334 = vmatpush3.bf16.msra.mxu1 %v3333_v38 }
 0xea7   :  { %3335 = vmatprep.subr.bf16.mxu1 %v3802_v63 }
 0xea8   :  { %3313 = vmatpush3.bf16.msra.mxu0 %v3312_v25 }
 0xea9   :  { %3314 = vmatprep.subr.bf16.mxu0 %v3802_v63 }
 0xeaa   :  { %3337 = vmatpush3.bf16.msra.mxu1 %v3336_v39 }
 0xeab   :  { %3338 = vmatprep.subr.bf16.mxu1 %v3802_v63 }
 0xeac   :  { %3316 = vmatpush3.bf16.msra.mxu0 %v3315_v22 }
 0xead   :  { %3317 = vmatprep.subr.bf16.mxu0 %v3802_v63 }
 0xeae   :  { %3340 = vmatpush3.bf16.msra.mxu1 %v3339_v17 }
 0xeaf   :  { %3341 = vmatprep.subr.bf16.mxu1 %v3802_v63 }
 0xeb0   :  { %3319 = vmatpush3.bf16.msra.mxu0 %v3318_v11 }
 0xeb1   :  { %3320 = vmatprep.subr.bf16.mxu0 %v3802_v63 }
 0xeb2   :  { %3343 = vmatpush3.bf16.msra.mxu1 %v3342_v29 }
 0xeb3   :  { %3344 = vmatprep.subr.bf16.mxu1 %v3802_v63 }
 0xeb4   :  { %3322 = vmatpush3.bf16.msra.mxu0 %v3321_v34  ;;  %v2841_v34 = vpop.permute.xlu1 %2840 }
 0xeb5   :  { %vm2842_vm4 = vcmp.eq.s32.totalorder %v2841_v34, 1 }
 0xeb6   :  { %3346 = vmatpush3.bf16.msra.mxu1 %v3345_v5 }
 0xeb7   :  { %3262 = vmatmul.mubr.f32.vlgmr.msra.gmra.mrb[96].mxu0 %v1444_v60 }
 0xf6a   :  { %v2761_v62 = vpop.f32.mrb[92].mxu0  ;;  %v2802_v47 = vpop.f32.mrb[92].mxu1 }
 0xf6b   :  { %v2809_v46 = vadd.f32 %v2761_v62, %v5866_v43  ;;  %v2811_v36 = vadd.f32 %v2802_v47, %v5867_v48  ;;  %v2763_v1 = vpop.f32.mrb[93].mxu0  ;;  %v2804_v27 = vpop.f32.mrb[93].mxu1 }
 0xf6c   :  { %v2810_v10 = vadd.f32 %v2763_v1, %v5868_v49  ;;  %v2812_v16 = vadd.f32 %v2804_v27, %v5869_v14  ;;  %v2765_v57 = vpop.f32.mrb[94].mxu0  ;;  %v2806_v8 = vpop.f32.mrb[94].mxu1 }
 0xf6d   :  { %v3191_v18 = vmul.f32 -1.442695, %v2809_v46  ;;  %v2766_v19 = vpop.f32.mrb[95].mxu0  ;;  %v2807_v51 = vpop.f32.mrb[95].mxu1 }
 0xf6e   :  { %v3192_v26 = vmul.f32 -1.442695, %v2810_v10  ;;  %v3193_v63 = vmul.f32 -1.442695, %v2812_v16 }
 0xf6f   :  { %3721 = vpow2.f32 %v3191_v18 }
 0xf70   :  { %3723 = vpow2.f32 %v3192_v26 }
 0xf71   :  { %3725 = vpow2.f32 %v3193_v63 }
 0xf72   :  { %3727 = vtanh.f32 %v2811_v36 }
 0xf79   :  { %v3722_v31 = vpop.eup %3721 }
 0xf7a   :  { %v3724_v30 = vpop.eup %3723  ;;  %v2816_v32 = vadd.f32 1.0, %v3722_v31 }
 0xf7b   :  { %v2822_v12 = vadd.f32 1.0, %v3724_v30  ;;  %v3726_v2 = vpop.eup %3725 }
 0xf7c   :  { %3729 = vrcp.f32 %v2816_v32  ;;  %v3728_v59 = vpop.eup %3727  ;;  %v2829_v22 = vadd.f32 1.0, %v3726_v2 }
 0xf7d   :  { %3731 = vrcp.f32 %v2822_v12 }
 0xf7e   :  { %3733 = vrcp.f32 %v2829_v22 }
 0xf86   :  { %v3730_v25 = vpop.eup %3729 }
 0xf87   :  { %v3732_v20 = vpop.eup %3731  ;;  %v2833_v21 = vmul.f32 %v3730_v25, %v3728_v59 }
 0xf88   :  { %v2832_v7 = vmul.f32 %v3732_v20, %v5621_v6  ;;  %v3734_v3 = vpop.eup %3733 }
 0xf8a   :  { %v2834_v53 = vadd.f32 %v2833_v21, %v2832_v7  ;;  %v2942_v11 = vpop.f32.mrb[96].mxu0 }
 0xf8b   :  { %v3263_v44 = vpop.f32.mrb[97].mxu0 }
 0xf8c   :  { %3735 = vtanh.f32 %v2834_v53 }
 0xf96   :  { %v3736_v33 = vpop.eup %3735 }
 0xf97   :  { %v2836_v23 = vmul.f32 %v3736_v33, %v3734_v3 }
 0xf99   :  { %v2843_v60 = vsel %vm2842_vm4, %v2836_v23, %v5630_v13 }
 0xf9a   :  { %3297 = vmatmul.mubr.f32.vlgmr.msra.gmra.mrb[96].mxu1 %v2843_v60 }
0x106d   :  { %v3012_v50 = vpop.f32.mrb[96].mxu1 }
0x106e   :  { %v3013_v55 = vadd.f32 %v3012_v50, %v2942_v11  ;;  %v3298_v6 = vpop.f32.mrb[97].mxu1 }
0x1070   :  { %v3023_v45 = vadd.f32 %v3194_v61, %v3013_v55 }
0x1072   :  { %v3024_v0 = vmax.f32 %v3023_v45, 0.0 }
0x1074   :  { %3025 = vst [vmem:[%s5765_s13] sm:$0xff] %v3024_v0 }

</bundles_post_ra>
